<compile_context>
chip_gen: v5e
topology: v5e:2x2
jax: 0.10.0
libtpu: 0.0.40
codegen_flags: <defaults>
</compile_context>

<pallas_src>
import math
import functools

import jax
import jax.numpy as jnp
from jax import lax
from jax.experimental import pallas as pl
from jax.experimental.pallas import tpu as pltpu

_LN_EPS = 1e-5
_BN_EPS = 1e-5


def _gelu_exact(x):
    # PyTorch nn.GELU() default = exact (erf-based) GELU.
    return 0.5 * x * (1.0 + lax.erf(x * (1.0 / math.sqrt(2.0))))


# ----------------------------------------------------------------------------------
# In-kernel helpers (operate on (C, HW) tiles: channels on sublanes, space on lanes)
# ----------------------------------------------------------------------------------
def _conv3x3(act, w9_ref, b_ref, mask9, shifts):
    """3x3 conv with padding=1 on a channels-first flattened tile.

    act:    (Cin, HW) f32
    w9_ref: (9, Cout, Cin) bf16, tap order k = dy*3 + dx
    b_ref:  (Cout, 1) f32
    mask9:  (9, HW) f32 tap-validity masks (implements zero padding at image borders)
    shifts: static per-tap lane-roll amounts
    """
    cout = w9_ref.shape[1]
    hw = act.shape[1]
    z = jnp.zeros((cout, hw), jnp.float32)
    for k, s in enumerate(shifts):
        shifted = act if s == 0 else pltpu.roll(act, shift=s, axis=1)
        part = jnp.dot(w9_ref[k], shifted.astype(jnp.bfloat16),
                       preferred_element_type=jnp.float32)
        z = z + (part if s == 0 else part * mask9[k:k + 1, :])
    return z + b_ref[...]


def _cerebral(z, mult, w4_ref, b4_ref, wi_ref, bi_ref, lnw_ref, lnb_ref):
    """CerebralDynamicsModule on a (C, HW) tile.

    `mult` is the precomputed per-channel-block fractal multiplier
    [m, 1-m, 0.5*m, sin(pi*m)] (shape (C, HW)); the alpha/beta/gamma/theta 1x1 convs
    are fused into the single (C, C) matmul w4.
    """
    p = jnp.dot(w4_ref[...], z.astype(jnp.bfloat16),
                preferred_element_type=jnp.float32) + b4_ref[...]
    comb = (p * mult).astype(jnp.bfloat16)
    integ = jnp.dot(wi_ref[...], comb,
                    preferred_element_type=jnp.float32) + bi_ref[...]
    # LayerNorm over channels (sublane axis), per spatial position
    mu = jnp.mean(integ, axis=0, keepdims=True)
    var = jnp.mean(jnp.square(integ - mu), axis=0, keepdims=True)
    normed = (integ - mu) * lax.rsqrt(var + _LN_EPS) * lnw_ref[...] + lnb_ref[...]
    return normed + z                                        # residual


def _fused_kernel(*refs, shifts):
    x_ref, mask9_ref, mult_ref = refs[0:3]
    d1p = refs[3:11]          # deep block 1 params (BN folded into conv)
    d2p = refs[11:19]         # deep block 2 params (BN folded into conv)
    shp = refs[19:29]         # shallow block params (BN applied after cerebral)
    wa1d_ref, wa1s_ref, ba1_ref, wa2_ref, ba2_ref = refs[29:34]
    out_ref = refs[34]

    x = x_ref[0]                                             # (Cin, HW) f32
    mask9 = mask9_ref[...]
    mult = mult_ref[...]

    def level1(act, prm):
        # level-1 FractalNeuralBlock: conv3x3 (+folded eval-BN) -> cerebral -> GELU
        w9, b, w4, b4, wi, bi, lnw, lnb = prm
        z = _conv3x3(act, w9, b, mask9, shifts)
        return _gelu_exact(_cerebral(z, mult, w4, b4, wi, bi, lnw, lnb))

    # deep branch: two level-1 blocks
    deep = level1(level1(x, d1p), d2p)

    # shallow branch: conv3x3 -> cerebral -> BN -> GELU
    w9s, bs, w4s, b4s, wis, bis, lnws, lnbs, bn_s, bn_b = shp
    zs = _conv3x3(x, w9s, bs, mask9, shifts)
    cs = _cerebral(zs, mult, w4s, b4s, wis, bis, lnws, lnbs)
    shallow = _gelu_exact(cs * bn_s[...] + bn_b[...])

    # fractal attention fuse (channel concat folded into two matmuls)
    h = _gelu_exact(
        jnp.dot(wa1d_ref[...], deep.astype(jnp.bfloat16),
                preferred_element_type=jnp.float32)
        + jnp.dot(wa1s_ref[...], shallow.astype(jnp.bfloat16),
                  preferred_element_type=jnp.float32)
        + ba1_ref[...])
    ab = jax.nn.sigmoid(
        jnp.dot(wa2_ref[...], h.astype(jnp.bfloat16),
                preferred_element_type=jnp.float32) + ba2_ref[...])      # (2, HW)
    out_ref[0] = ab[0:1, :] * deep + ab[1:2, :] * shallow


# ----------------------------------------------------------------------------------
# Plain-JAX glue (weight repacking, trace-time folds, pallas_call)
# ----------------------------------------------------------------------------------
def _full_spec(shape):
    nd = len(shape)
    return pl.BlockSpec(shape, lambda b, _nd=nd: (0,) * _nd)


def _col(v):
    return v.reshape(-1, 1).astype(jnp.float32)


def _block_params(prm, fold_bn):
    """Pack one conv-block's params in kernel operand order."""
    scale = prm['bn_gamma'] / jnp.sqrt(prm['bn_var'] + _BN_EPS)
    shift = prm['bn_beta'] - prm['bn_mean'] * scale
    cout, cin = prm['conv_w'].shape[:2]
    w9 = jnp.transpose(prm['conv_w'], (2, 3, 0, 1)).reshape(9, cout, cin)   # k = dy*3+dx
    if fold_bn:                       # level-1 block: conv -> BN -> cerebral (fold BN)
        w9 = w9 * scale[None, :, None]
        b = prm['conv_b'] * scale + shift
    else:                             # shallow branch: BN comes after cerebral (in-kernel)
        b = prm['conv_b']
    w4 = jnp.concatenate([prm['wa'], prm['wb'], prm['wg'], prm['wt']], axis=0)  # (C, C)
    b4 = jnp.concatenate([prm['ba'], prm['bb'], prm['bg'], prm['bt']])
    ops = [w9.astype(jnp.bfloat16), _col(b),
           w4.astype(jnp.bfloat16), _col(b4),
           prm['wi'].astype(jnp.bfloat16), _col(prm['bi']),
           _col(prm['ln_w']), _col(prm['ln_b'])]
    if not fold_bn:
        ops += [_col(scale), _col(shift)]
    return ops


def fractal_neural_block(x_nchw, params, fractal_pattern):
    """FractalNeuralBlock(level=2) forward (inference semantics)."""
    N, Cin, H, W = x_nchw.shape
    C = params['deep1']['conv_w'].shape[0]
    C4 = C // 4
    HW = H * W

    x = x_nchw.reshape(N, Cin, HW).astype(jnp.float32)       # channels-first, flat space

    # TODO(synk): bilinear F.interpolate resize of the fractal pattern when its shape
    # != (H, W) is not implemented; the pattern is supplied at (H, W).
    m = fractal_pattern.reshape(HW).astype(jnp.float32)
    mult = jnp.concatenate([
        jnp.broadcast_to(m, (C4, HW)),
        jnp.broadcast_to(1.0 - m, (C4, HW)),
        jnp.broadcast_to(0.5 * m, (C4, HW)),
        jnp.broadcast_to(jnp.sin(math.pi * m), (C4, HW)),
    ], axis=0)                                               # (C, HW)

    # 3x3-conv tap validity masks (zero padding) + static lane-roll amounts per tap.
    hh = jnp.arange(H)
    ww = jnp.arange(W)
    masks, shifts = [], []
    for dy in range(3):
        for dx in range(3):
            valid = (((hh + dy - 1) >= 0) & ((hh + dy - 1) < H))[:, None] & \
                    (((ww + dx - 1) >= 0) & ((ww + dx - 1) < W))[None, :]
            masks.append(valid.reshape(HW))
            shifts.append(int((-((dy - 1) * W + (dx - 1))) % HW))
    mask9 = jnp.stack(masks, axis=0).astype(jnp.float32)     # (9, HW)
    shifts = tuple(shifts)

    a1w = params['attn']['a1_w']                             # (C//4, 2C): [deep | shallow]
    operands = [x, mask9, mult]
    operands += _block_params(params['deep1'], fold_bn=True)
    operands += _block_params(params['deep2'], fold_bn=True)
    operands += _block_params(params['shallow'], fold_bn=False)
    operands += [a1w[:, :C].astype(jnp.bfloat16),
                 a1w[:, C:].astype(jnp.bfloat16),
                 _col(params['attn']['a1_b']),
                 params['attn']['a2_w'].astype(jnp.bfloat16),
                 _col(params['attn']['a2_b'])]

    in_specs = [pl.BlockSpec((1, Cin, HW), lambda b: (b, 0, 0))]
    in_specs += [_full_spec(op.shape) for op in operands[1:]]

    out = pl.pallas_call(
        functools.partial(_fused_kernel, shifts=shifts),
        out_shape=jax.ShapeDtypeStruct((N, C, HW), jnp.float32),
        grid=(N,),
        in_specs=in_specs,
        out_specs=pl.BlockSpec((1, C, HW), lambda b: (b, 0, 0)),
        compiler_params=pltpu.CompilerParams(dimension_semantics=("parallel",)),
    )(*operands)
    # TODO(synk): nn.Dropout2d(drop_path_prob) is identity in eval mode; training-mode
    # channel dropout is not implemented.
    return out.reshape(N, C, H, W)


# ----------------------------------------------------------------------------------
# Deterministic parameter construction (fresh-module shapes; norms at PyTorch defaults)
# ----------------------------------------------------------------------------------
def _init_block(key, cin, C):
    C4 = C // 4
    k = jax.random.split(key, 12)
    n = lambda kk, shape: 0.1 * jax.random.normal(kk, shape, jnp.float32)
    return dict(
        conv_w=n(k[0], (C, cin, 3, 3)), conv_b=n(k[1], (C,)),
        bn_gamma=jnp.ones((C,), jnp.float32), bn_beta=jnp.zeros((C,), jnp.float32),
        bn_mean=jnp.zeros((C,), jnp.float32), bn_var=jnp.ones((C,), jnp.float32),
        wa=n(k[2], (C4, C)), ba=n(k[3], (C4,)),
        wb=n(k[4], (C4, C)), bb=n(k[5], (C4,)),
        wg=n(k[6], (C4, C)), bg=n(k[7], (C4,)),
        wt=n(k[8], (C4, C)), bt=n(k[9], (C4,)),
        wi=n(k[10], (C, C)), bi=n(k[11], (C,)),
        ln_w=jnp.ones((C,), jnp.float32), ln_b=jnp.zeros((C,), jnp.float32),
    )


def _init_attention(key, C):
    C4 = C // 4
    k = jax.random.split(key, 4)
    n = lambda kk, shape: 0.1 * jax.random.normal(kk, shape, jnp.float32)
    return dict(a1_w=n(k[0], (C4, 2 * C)), a1_b=n(k[1], (C4,)),
                a2_w=n(k[2], (2, C4)), a2_b=n(k[3], (2,)))


if __name__ == "__main__":
    key = jax.random.PRNGKey(0)
    N, Cin, Cout, H, W = 2, 4, 8, 16, 16
    kx, kp, k1, k2, k3, k4 = jax.random.split(key, 6)

    x = jax.random.normal(kx, (N, Cin, H, W), jnp.float32)
    fractal_pattern = jax.random.uniform(kp, (H, W), jnp.float32)
    params = dict(
        deep1=_init_block(k1, Cin, Cout),
        deep2=_init_block(k2, Cout, Cout),
        shallow=_init_block(k3, Cin, Cout),
        attn=_init_attention(k4, Cout),
    )

    out = jax.jit(fractal_neural_block)(x, params, fractal_pattern)
    jax.block_until_ready(out)
    assert out.shape == (N, Cout, H, W) and out.dtype == jnp.float32
    print("KERNEL_OK")
</pallas_src>

<mosaic_0001>
module attributes {stable_mosaic.version = 11 : i64} {
  func.func @_fused_kernel(%arg0: i32, %arg1: memref<1x4x256xf32, #tpu.memory_space<vmem>>, %arg2: memref<9x256xf32, #tpu.memory_space<vmem>>, %arg3: memref<8x256xf32, #tpu.memory_space<vmem>>, %arg4: memref<9x8x4xbf16, #tpu.memory_space<vmem>>, %arg5: memref<8x1xf32, #tpu.memory_space<vmem>>, %arg6: memref<8x8xbf16, #tpu.memory_space<vmem>>, %arg7: memref<8x1xf32, #tpu.memory_space<vmem>>, %arg8: memref<8x8xbf16, #tpu.memory_space<vmem>>, %arg9: memref<8x1xf32, #tpu.memory_space<vmem>>, %arg10: memref<8x1xf32, #tpu.memory_space<vmem>>, %arg11: memref<8x1xf32, #tpu.memory_space<vmem>>, %arg12: memref<9x8x8xbf16, #tpu.memory_space<vmem>>, %arg13: memref<8x1xf32, #tpu.memory_space<vmem>>, %arg14: memref<8x8xbf16, #tpu.memory_space<vmem>>, %arg15: memref<8x1xf32, #tpu.memory_space<vmem>>, %arg16: memref<8x8xbf16, #tpu.memory_space<vmem>>, %arg17: memref<8x1xf32, #tpu.memory_space<vmem>>, %arg18: memref<8x1xf32, #tpu.memory_space<vmem>>, %arg19: memref<8x1xf32, #tpu.memory_space<vmem>>, %arg20: memref<9x8x4xbf16, #tpu.memory_space<vmem>>, %arg21: memref<8x1xf32, #tpu.memory_space<vmem>>, %arg22: memref<8x8xbf16, #tpu.memory_space<vmem>>, %arg23: memref<8x1xf32, #tpu.memory_space<vmem>>, %arg24: memref<8x8xbf16, #tpu.memory_space<vmem>>, %arg25: memref<8x1xf32, #tpu.memory_space<vmem>>, %arg26: memref<8x1xf32, #tpu.memory_space<vmem>>, %arg27: memref<8x1xf32, #tpu.memory_space<vmem>>, %arg28: memref<8x1xf32, #tpu.memory_space<vmem>>, %arg29: memref<8x1xf32, #tpu.memory_space<vmem>>, %arg30: memref<2x8xbf16, #tpu.memory_space<vmem>>, %arg31: memref<2x8xbf16, #tpu.memory_space<vmem>>, %arg32: memref<2x1xf32, #tpu.memory_space<vmem>>, %arg33: memref<2x2xbf16, #tpu.memory_space<vmem>>, %arg34: memref<2x1xf32, #tpu.memory_space<vmem>>, %arg35: memref<1x8x256xf32, #tpu.memory_space<vmem>>) attributes {dimension_semantics = [#tpu.dimension_semantics<parallel>], iteration_bounds = array<i64: 2>, scalar_prefetch = 0 : i64, scratch_operands = 0 : i64, tpu.core_type = #tpu.core_type<tc>, window_params = [{transform_indices = @transform_0, window_bounds = array<i64: 1, 4, 256>}, {pipeline_mode = #tpu.pipeline_mode<synchronous>, transform_indices = @transform_1, window_bounds = array<i64: 9, 256>}, {pipeline_mode = #tpu.pipeline_mode<synchronous>, transform_indices = @transform_2, window_bounds = array<i64: 8, 256>}, {pipeline_mode = #tpu.pipeline_mode<synchronous>, transform_indices = @transform_3, window_bounds = array<i64: 9, 8, 4>}, {pipeline_mode = #tpu.pipeline_mode<synchronous>, transform_indices = @transform_4, window_bounds = array<i64: 8, 1>}, {pipeline_mode = #tpu.pipeline_mode<synchronous>, transform_indices = @transform_5, window_bounds = array<i64: 8, 8>}, {pipeline_mode = #tpu.pipeline_mode<synchronous>, transform_indices = @transform_6, window_bounds = array<i64: 8, 1>}, {pipeline_mode = #tpu.pipeline_mode<synchronous>, transform_indices = @transform_7, window_bounds = array<i64: 8, 8>}, {pipeline_mode = #tpu.pipeline_mode<synchronous>, transform_indices = @transform_8, window_bounds = array<i64: 8, 1>}, {pipeline_mode = #tpu.pipeline_mode<synchronous>, transform_indices = @transform_9, window_bounds = array<i64: 8, 1>}, {pipeline_mode = #tpu.pipeline_mode<synchronous>, transform_indices = @transform_10, window_bounds = array<i64: 8, 1>}, {pipeline_mode = #tpu.pipeline_mode<synchronous>, transform_indices = @transform_11, window_bounds = array<i64: 9, 8, 8>}, {pipeline_mode = #tpu.pipeline_mode<synchronous>, transform_indices = @transform_12, window_bounds = array<i64: 8, 1>}, {pipeline_mode = #tpu.pipeline_mode<synchronous>, transform_indices = @transform_13, window_bounds = array<i64: 8, 8>}, {pipeline_mode = #tpu.pipeline_mode<synchronous>, transform_indices = @transform_14, window_bounds = array<i64: 8, 1>}, {pipeline_mode = #tpu.pipeline_mode<synchronous>, transform_indices = @transform_15, window_bounds = array<i64: 8, 8>}, {pipeline_mode = #tpu.pipeline_mode<synchronous>, transform_indices = @transform_16, window_bounds = array<i64: 8, 1>}, {pipeline_mode = #tpu.pipeline_mode<synchronous>, transform_indices = @transform_17, window_bounds = array<i64: 8, 1>}, {pipeline_mode = #tpu.pipeline_mode<synchronous>, transform_indices = @transform_18, window_bounds = array<i64: 8, 1>}, {pipeline_mode = #tpu.pipeline_mode<synchronous>, transform_indices = @transform_19, window_bounds = array<i64: 9, 8, 4>}, {pipeline_mode = #tpu.pipeline_mode<synchronous>, transform_indices = @transform_20, window_bounds = array<i64: 8, 1>}, {pipeline_mode = #tpu.pipeline_mode<synchronous>, transform_indices = @transform_21, window_bounds = array<i64: 8, 8>}, {pipeline_mode = #tpu.pipeline_mode<synchronous>, transform_indices = @transform_22, window_bounds = array<i64: 8, 1>}, {pipeline_mode = #tpu.pipeline_mode<synchronous>, transform_indices = @transform_23, window_bounds = array<i64: 8, 8>}, {pipeline_mode = #tpu.pipeline_mode<synchronous>, transform_indices = @transform_24, window_bounds = array<i64: 8, 1>}, {pipeline_mode = #tpu.pipeline_mode<synchronous>, transform_indices = @transform_25, window_bounds = array<i64: 8, 1>}, {pipeline_mode = #tpu.pipeline_mode<synchronous>, transform_indices = @transform_26, window_bounds = array<i64: 8, 1>}, {pipeline_mode = #tpu.pipeline_mode<synchronous>, transform_indices = @transform_27, window_bounds = array<i64: 8, 1>}, {pipeline_mode = #tpu.pipeline_mode<synchronous>, transform_indices = @transform_28, window_bounds = array<i64: 8, 1>}, {pipeline_mode = #tpu.pipeline_mode<synchronous>, transform_indices = @transform_29, window_bounds = array<i64: 2, 8>}, {pipeline_mode = #tpu.pipeline_mode<synchronous>, transform_indices = @transform_30, window_bounds = array<i64: 2, 8>}, {pipeline_mode = #tpu.pipeline_mode<synchronous>, transform_indices = @transform_31, window_bounds = array<i64: 2, 1>}, {pipeline_mode = #tpu.pipeline_mode<synchronous>, transform_indices = @transform_32, window_bounds = array<i64: 2, 2>}, {pipeline_mode = #tpu.pipeline_mode<synchronous>, transform_indices = @transform_33, window_bounds = array<i64: 2, 1>}, {transform_indices = @transform_34, window_bounds = array<i64: 1, 8, 256>}]} {
    %c0 = arith.constant 0 : index
    %c0_0 = arith.constant 0 : index
    %c0_1 = arith.constant 0 : index
    %0 = vector.load %arg1[%c0, %c0_0, %c0_1] : memref<1x4x256xf32, #tpu.memory_space<vmem>>, vector<1x4x256xf32>
    %1 = vector.shape_cast %0 : vector<1x4x256xf32> to vector<4x256xf32>
    %c0_2 = arith.constant 0 : index
    %c0_3 = arith.constant 0 : index
    %2 = vector.load %arg2[%c0_2, %c0_3] : memref<9x256xf32, #tpu.memory_space<vmem>>, vector<9x256xf32>
    %c0_4 = arith.constant 0 : index
    %c0_5 = arith.constant 0 : index
    %3 = vector.load %arg3[%c0_4, %c0_5] : memref<8x256xf32, #tpu.memory_space<vmem>>, vector<8x256xf32>
    %cst = arith.constant 0.000000e+00 : f32
    %4 = vector.broadcast %cst : f32 to vector<8x256xf32>
    %c17_i32 = arith.constant 17 : i32
    %5 = tpu.dynamic_rotate %1 by %c17_i32 dim 1 : vector<4x256xf32>, i32 -> vector<4x256xf32>
    %c0_6 = arith.constant 0 : index
    %c0_7 = arith.constant 0 : index
    %c0_8 = arith.constant 0 : index
    %6 = vector.load %arg4[%c0_6, %c0_7, %c0_8] : memref<9x8x4xbf16, #tpu.memory_space<vmem>>, vector<1x8x4xbf16>
    %7 = vector.shape_cast %6 : vector<1x8x4xbf16> to vector<8x4xbf16>
    %8 = arith.truncf %5 : vector<4x256xf32> to vector<4x256xbf16>
    %cst_9 = arith.constant dense<0.000000e+00> : vector<8x256xf32>
    %9 = tpu.matmul %7, %8, %cst_9 {dimension_numbers = #tpu.dot_dimension_numbers<[1], [0], [0], [1], [0, 0, 1, 1], [], []>} : vector<8x4xbf16>, vector<4x256xbf16>, vector<8x256xf32> -> vector<8x256xf32>
    %10 = vector.extract_strided_slice %2 {offsets = [0, 0], sizes = [1, 256], strides = [1, 1]} : vector<9x256xf32> to vector<1x256xf32>
    %11 = vector.broadcast %10 : vector<1x256xf32> to vector<8x256xf32>
    %12 = arith.mulf %9, %11 : vector<8x256xf32>
    %13 = arith.addf %4, %12 : vector<8x256xf32>
    %c16_i32 = arith.constant 16 : i32
    %14 = tpu.dynamic_rotate %1 by %c16_i32 dim 1 : vector<4x256xf32>, i32 -> vector<4x256xf32>
    %c1 = arith.constant 1 : index
    %c0_10 = arith.constant 0 : index
    %c0_11 = arith.constant 0 : index
    %15 = vector.load %arg4[%c1, %c0_10, %c0_11] : memref<9x8x4xbf16, #tpu.memory_space<vmem>>, vector<1x8x4xbf16>
    %16 = vector.shape_cast %15 : vector<1x8x4xbf16> to vector<8x4xbf16>
    %17 = arith.truncf %14 : vector<4x256xf32> to vector<4x256xbf16>
    %cst_12 = arith.constant dense<0.000000e+00> : vector<8x256xf32>
    %18 = tpu.matmul %16, %17, %cst_12 {dimension_numbers = #tpu.dot_dimension_numbers<[1], [0], [0], [1], [0, 0, 1, 1], [], []>} : vector<8x4xbf16>, vector<4x256xbf16>, vector<8x256xf32> -> vector<8x256xf32>
    %19 = vector.extract_strided_slice %2 {offsets = [1, 0], sizes = [1, 256], strides = [1, 1]} : vector<9x256xf32> to vector<1x256xf32>
    %20 = vector.broadcast %19 : vector<1x256xf32> to vector<8x256xf32>
    %21 = arith.mulf %18, %20 : vector<8x256xf32>
    %22 = arith.addf %13, %21 : vector<8x256xf32>
    %c15_i32 = arith.constant 15 : i32
    %23 = tpu.dynamic_rotate %1 by %c15_i32 dim 1 : vector<4x256xf32>, i32 -> vector<4x256xf32>
    %c2 = arith.constant 2 : index
    %c0_13 = arith.constant 0 : index
    %c0_14 = arith.constant 0 : index
    %24 = vector.load %arg4[%c2, %c0_13, %c0_14] : memref<9x8x4xbf16, #tpu.memory_space<vmem>>, vector<1x8x4xbf16>
    %25 = vector.shape_cast %24 : vector<1x8x4xbf16> to vector<8x4xbf16>
    %26 = arith.truncf %23 : vector<4x256xf32> to vector<4x256xbf16>
    %cst_15 = arith.constant dense<0.000000e+00> : vector<8x256xf32>
    %27 = tpu.matmul %25, %26, %cst_15 {dimension_numbers = #tpu.dot_dimension_numbers<[1], [0], [0], [1], [0, 0, 1, 1], [], []>} : vector<8x4xbf16>, vector<4x256xbf16>, vector<8x256xf32> -> vector<8x256xf32>
    %28 = vector.extract_strided_slice %2 {offsets = [2, 0], sizes = [1, 256], strides = [1, 1]} : vector<9x256xf32> to vector<1x256xf32>
    %29 = vector.broadcast %28 : vector<1x256xf32> to vector<8x256xf32>
    %30 = arith.mulf %27, %29 : vector<8x256xf32>
    %31 = arith.addf %22, %30 : vector<8x256xf32>
    %c1_i32 = arith.constant 1 : i32
    %32 = tpu.dynamic_rotate %1 by %c1_i32 dim 1 : vector<4x256xf32>, i32 -> vector<4x256xf32>
    %c3 = arith.constant 3 : index
    %c0_16 = arith.constant 0 : index
    %c0_17 = arith.constant 0 : index
    %33 = vector.load %arg4[%c3, %c0_16, %c0_17] : memref<9x8x4xbf16, #tpu.memory_space<vmem>>, vector<1x8x4xbf16>
    %34 = vector.shape_cast %33 : vector<1x8x4xbf16> to vector<8x4xbf16>
    %35 = arith.truncf %32 : vector<4x256xf32> to vector<4x256xbf16>
    %cst_18 = arith.constant dense<0.000000e+00> : vector<8x256xf32>
    %36 = tpu.matmul %34, %35, %cst_18 {dimension_numbers = #tpu.dot_dimension_numbers<[1], [0], [0], [1], [0, 0, 1, 1], [], []>} : vector<8x4xbf16>, vector<4x256xbf16>, vector<8x256xf32> -> vector<8x256xf32>
    %37 = vector.extract_strided_slice %2 {offsets = [3, 0], sizes = [1, 256], strides = [1, 1]} : vector<9x256xf32> to vector<1x256xf32>
    %38 = vector.broadcast %37 : vector<1x256xf32> to vector<8x256xf32>
    %39 = arith.mulf %36, %38 : vector<8x256xf32>
    %40 = arith.addf %31, %39 : vector<8x256xf32>
    %c4 = arith.constant 4 : index
    %c0_19 = arith.constant 0 : index
    %c0_20 = arith.constant 0 : index
    %41 = vector.load %arg4[%c4, %c0_19, %c0_20] : memref<9x8x4xbf16, #tpu.memory_space<vmem>>, vector<1x8x4xbf16>
    %42 = vector.shape_cast %41 : vector<1x8x4xbf16> to vector<8x4xbf16>
    %43 = arith.truncf %1 : vector<4x256xf32> to vector<4x256xbf16>
    %cst_21 = arith.constant dense<0.000000e+00> : vector<8x256xf32>
    %44 = tpu.matmul %42, %43, %cst_21 {dimension_numbers = #tpu.dot_dimension_numbers<[1], [0], [0], [1], [0, 0, 1, 1], [], []>} : vector<8x4xbf16>, vector<4x256xbf16>, vector<8x256xf32> -> vector<8x256xf32>
    %45 = arith.addf %40, %44 : vector<8x256xf32>
    %c255_i32 = arith.constant 255 : i32
    %46 = tpu.dynamic_rotate %1 by %c255_i32 dim 1 : vector<4x256xf32>, i32 -> vector<4x256xf32>
    %c5 = arith.constant 5 : index
    %c0_22 = arith.constant 0 : index
    %c0_23 = arith.constant 0 : index
    %47 = vector.load %arg4[%c5, %c0_22, %c0_23] : memref<9x8x4xbf16, #tpu.memory_space<vmem>>, vector<1x8x4xbf16>
    %48 = vector.shape_cast %47 : vector<1x8x4xbf16> to vector<8x4xbf16>
    %49 = arith.truncf %46 : vector<4x256xf32> to vector<4x256xbf16>
    %cst_24 = arith.constant dense<0.000000e+00> : vector<8x256xf32>
    %50 = tpu.matmul %48, %49, %cst_24 {dimension_numbers = #tpu.dot_dimension_numbers<[1], [0], [0], [1], [0, 0, 1, 1], [], []>} : vector<8x4xbf16>, vector<4x256xbf16>, vector<8x256xf32> -> vector<8x256xf32>
    %51 = vector.extract_strided_slice %2 {offsets = [5, 0], sizes = [1, 256], strides = [1, 1]} : vector<9x256xf32> to vector<1x256xf32>
    %52 = vector.broadcast %51 : vector<1x256xf32> to vector<8x256xf32>
    %53 = arith.mulf %50, %52 : vector<8x256xf32>
    %54 = arith.addf %45, %53 : vector<8x256xf32>
    %c241_i32 = arith.constant 241 : i32
    %55 = tpu.dynamic_rotate %1 by %c241_i32 dim 1 : vector<4x256xf32>, i32 -> vector<4x256xf32>
    %c6 = arith.constant 6 : index
    %c0_25 = arith.constant 0 : index
    %c0_26 = arith.constant 0 : index
    %56 = vector.load %arg4[%c6, %c0_25, %c0_26] : memref<9x8x4xbf16, #tpu.memory_space<vmem>>, vector<1x8x4xbf16>
    %57 = vector.shape_cast %56 : vector<1x8x4xbf16> to vector<8x4xbf16>
    %58 = arith.truncf %55 : vector<4x256xf32> to vector<4x256xbf16>
    %cst_27 = arith.constant dense<0.000000e+00> : vector<8x256xf32>
    %59 = tpu.matmul %57, %58, %cst_27 {dimension_numbers = #tpu.dot_dimension_numbers<[1], [0], [0], [1], [0, 0, 1, 1], [], []>} : vector<8x4xbf16>, vector<4x256xbf16>, vector<8x256xf32> -> vector<8x256xf32>
    %60 = vector.extract_strided_slice %2 {offsets = [6, 0], sizes = [1, 256], strides = [1, 1]} : vector<9x256xf32> to vector<1x256xf32>
    %61 = vector.broadcast %60 : vector<1x256xf32> to vector<8x256xf32>
    %62 = arith.mulf %59, %61 : vector<8x256xf32>
    %63 = arith.addf %54, %62 : vector<8x256xf32>
    %c240_i32 = arith.constant 240 : i32
    %64 = tpu.dynamic_rotate %1 by %c240_i32 dim 1 : vector<4x256xf32>, i32 -> vector<4x256xf32>
    %c7 = arith.constant 7 : index
    %c0_28 = arith.constant 0 : index
    %c0_29 = arith.constant 0 : index
    %65 = vector.load %arg4[%c7, %c0_28, %c0_29] : memref<9x8x4xbf16, #tpu.memory_space<vmem>>, vector<1x8x4xbf16>
    %66 = vector.shape_cast %65 : vector<1x8x4xbf16> to vector<8x4xbf16>
    %67 = arith.truncf %64 : vector<4x256xf32> to vector<4x256xbf16>
    %cst_30 = arith.constant dense<0.000000e+00> : vector<8x256xf32>
    %68 = tpu.matmul %66, %67, %cst_30 {dimension_numbers = #tpu.dot_dimension_numbers<[1], [0], [0], [1], [0, 0, 1, 1], [], []>} : vector<8x4xbf16>, vector<4x256xbf16>, vector<8x256xf32> -> vector<8x256xf32>
    %69 = vector.extract_strided_slice %2 {offsets = [7, 0], sizes = [1, 256], strides = [1, 1]} : vector<9x256xf32> to vector<1x256xf32>
    %70 = vector.broadcast %69 : vector<1x256xf32> to vector<8x256xf32>
    %71 = arith.mulf %68, %70 : vector<8x256xf32>
    %72 = arith.addf %63, %71 : vector<8x256xf32>
    %c239_i32 = arith.constant 239 : i32
    %73 = tpu.dynamic_rotate %1 by %c239_i32 dim 1 : vector<4x256xf32>, i32 -> vector<4x256xf32>
    %c8 = arith.constant 8 : index
    %c0_31 = arith.constant 0 : index
    %c0_32 = arith.constant 0 : index
    %74 = vector.load %arg4[%c8, %c0_31, %c0_32] : memref<9x8x4xbf16, #tpu.memory_space<vmem>>, vector<1x8x4xbf16>
    %75 = vector.shape_cast %74 : vector<1x8x4xbf16> to vector<8x4xbf16>
    %76 = arith.truncf %73 : vector<4x256xf32> to vector<4x256xbf16>
    %cst_33 = arith.constant dense<0.000000e+00> : vector<8x256xf32>
    %77 = tpu.matmul %75, %76, %cst_33 {dimension_numbers = #tpu.dot_dimension_numbers<[1], [0], [0], [1], [0, 0, 1, 1], [], []>} : vector<8x4xbf16>, vector<4x256xbf16>, vector<8x256xf32> -> vector<8x256xf32>
    %78 = vector.extract_strided_slice %2 {offsets = [8, 0], sizes = [1, 256], strides = [1, 1]} : vector<9x256xf32> to vector<1x256xf32>
    %79 = vector.broadcast %78 : vector<1x256xf32> to vector<8x256xf32>
    %80 = arith.mulf %77, %79 : vector<8x256xf32>
    %81 = arith.addf %72, %80 : vector<8x256xf32>
    %c0_34 = arith.constant 0 : index
    %c0_35 = arith.constant 0 : index
    %82 = vector.load %arg5[%c0_34, %c0_35] : memref<8x1xf32, #tpu.memory_space<vmem>>, vector<8x1xf32>
    %83 = vector.broadcast %82 : vector<8x1xf32> to vector<8x256xf32>
    %84 = arith.addf %81, %83 : vector<8x256xf32>
    %c0_36 = arith.constant 0 : index
    %c0_37 = arith.constant 0 : index
    %85 = vector.load %arg6[%c0_36, %c0_37] : memref<8x8xbf16, #tpu.memory_space<vmem>>, vector<8x8xbf16>
    %86 = arith.truncf %84 : vector<8x256xf32> to vector<8x256xbf16>
    %cst_38 = arith.constant dense<0.000000e+00> : vector<8x256xf32>
    %87 = tpu.matmul %85, %86, %cst_38 {dimension_numbers = #tpu.dot_dimension_numbers<[1], [0], [0], [1], [0, 0, 1, 1], [], []>} : vector<8x8xbf16>, vector<8x256xbf16>, vector<8x256xf32> -> vector<8x256xf32>
    %c0_39 = arith.constant 0 : index
    %c0_40 = arith.constant 0 : index
    %88 = vector.load %arg7[%c0_39, %c0_40] : memref<8x1xf32, #tpu.memory_space<vmem>>, vector<8x1xf32>
    %89 = vector.broadcast %88 : vector<8x1xf32> to vector<8x256xf32>
    %90 = arith.addf %87, %89 : vector<8x256xf32>
    %91 = arith.mulf %90, %3 : vector<8x256xf32>
    %92 = arith.truncf %91 : vector<8x256xf32> to vector<8x256xbf16>
    %c0_41 = arith.constant 0 : index
    %c0_42 = arith.constant 0 : index
    %93 = vector.load %arg8[%c0_41, %c0_42] : memref<8x8xbf16, #tpu.memory_space<vmem>>, vector<8x8xbf16>
    %cst_43 = arith.constant dense<0.000000e+00> : vector<8x256xf32>
    %94 = tpu.matmul %93, %92, %cst_43 {dimension_numbers = #tpu.dot_dimension_numbers<[1], [0], [0], [1], [0, 0, 1, 1], [], []>} : vector<8x8xbf16>, vector<8x256xbf16>, vector<8x256xf32> -> vector<8x256xf32>
    %c0_44 = arith.constant 0 : index
    %c0_45 = arith.constant 0 : index
    %95 = vector.load %arg9[%c0_44, %c0_45] : memref<8x1xf32, #tpu.memory_space<vmem>>, vector<8x1xf32>
    %96 = vector.broadcast %95 : vector<8x1xf32> to vector<8x256xf32>
    %97 = arith.addf %94, %96 : vector<8x256xf32>
    %cst_46 = arith.constant dense<0.000000e+00> : vector<256xf32>
    %98 = vector.multi_reduction <add>, %97, %cst_46 [0] : vector<8x256xf32> to vector<256xf32>
    %99 = vector.shape_cast %98 : vector<256xf32> to vector<1x256xf32>
    %cst_47 = arith.constant 8.000000e+00 : f32
    %100 = vector.broadcast %cst_47 : f32 to vector<1x256xf32>
    %101 = arith.divf %99, %100 : vector<1x256xf32>
    %102 = vector.broadcast %101 : vector<1x256xf32> to vector<8x256xf32>
    %103 = arith.subf %97, %102 : vector<8x256xf32>
    %104 = arith.mulf %103, %103 : vector<8x256xf32>
    %cst_48 = arith.constant dense<0.000000e+00> : vector<256xf32>
    %105 = vector.multi_reduction <add>, %104, %cst_48 [0] : vector<8x256xf32> to vector<256xf32>
    %106 = vector.shape_cast %105 : vector<256xf32> to vector<1x256xf32>
    %cst_49 = arith.constant 8.000000e+00 : f32
    %107 = vector.broadcast %cst_49 : f32 to vector<1x256xf32>
    %108 = arith.divf %106, %107 : vector<1x256xf32>
    %109 = vector.broadcast %101 : vector<1x256xf32> to vector<8x256xf32>
    %110 = arith.subf %97, %109 : vector<8x256xf32>
    %cst_50 = arith.constant 9.99999974E-6 : f32
    %111 = vector.broadcast %cst_50 : f32 to vector<1x256xf32>
    %112 = arith.addf %108, %111 : vector<1x256xf32>
    %113 = math.rsqrt %112 : vector<1x256xf32>
    %114 = vector.broadcast %113 : vector<1x256xf32> to vector<8x256xf32>
    %115 = arith.mulf %110, %114 : vector<8x256xf32>
    %c0_51 = arith.constant 0 : index
    %c0_52 = arith.constant 0 : index
    %116 = vector.load %arg10[%c0_51, %c0_52] : memref<8x1xf32, #tpu.memory_space<vmem>>, vector<8x1xf32>
    %117 = vector.broadcast %116 : vector<8x1xf32> to vector<8x256xf32>
    %118 = arith.mulf %115, %117 : vector<8x256xf32>
    %c0_53 = arith.constant 0 : index
    %c0_54 = arith.constant 0 : index
    %119 = vector.load %arg11[%c0_53, %c0_54] : memref<8x1xf32, #tpu.memory_space<vmem>>, vector<8x1xf32>
    %120 = vector.broadcast %119 : vector<8x1xf32> to vector<8x256xf32>
    %121 = arith.addf %118, %120 : vector<8x256xf32>
    %122 = arith.addf %121, %84 : vector<8x256xf32>
    %cst_55 = arith.constant 5.000000e-01 : f32
    %123 = vector.broadcast %cst_55 : f32 to vector<8x256xf32>
    %124 = arith.mulf %123, %122 : vector<8x256xf32>
    %cst_56 = arith.constant 0.707106769 : f32
    %125 = vector.broadcast %cst_56 : f32 to vector<8x256xf32>
    %126 = arith.mulf %122, %125 : vector<8x256xf32>
    %127 = math.erf %126 : vector<8x256xf32>
    %cst_57 = arith.constant 1.000000e+00 : f32
    %128 = vector.broadcast %cst_57 : f32 to vector<8x256xf32>
    %129 = arith.addf %128, %127 : vector<8x256xf32>
    %130 = arith.mulf %124, %129 : vector<8x256xf32>
    %cst_58 = arith.constant 0.000000e+00 : f32
    %131 = vector.broadcast %cst_58 : f32 to vector<8x256xf32>
    %c17_i32_59 = arith.constant 17 : i32
    %132 = tpu.dynamic_rotate %130 by %c17_i32_59 dim 1 : vector<8x256xf32>, i32 -> vector<8x256xf32>
    %c0_60 = arith.constant 0 : index
    %c0_61 = arith.constant 0 : index
    %c0_62 = arith.constant 0 : index
    %133 = vector.load %arg12[%c0_60, %c0_61, %c0_62] : memref<9x8x8xbf16, #tpu.memory_space<vmem>>, vector<1x8x8xbf16>
    %134 = vector.shape_cast %133 : vector<1x8x8xbf16> to vector<8x8xbf16>
    %135 = arith.truncf %132 : vector<8x256xf32> to vector<8x256xbf16>
    %cst_63 = arith.constant dense<0.000000e+00> : vector<8x256xf32>
    %136 = tpu.matmul %134, %135, %cst_63 {dimension_numbers = #tpu.dot_dimension_numbers<[1], [0], [0], [1], [0, 0, 1, 1], [], []>} : vector<8x8xbf16>, vector<8x256xbf16>, vector<8x256xf32> -> vector<8x256xf32>
    %137 = vector.extract_strided_slice %2 {offsets = [0, 0], sizes = [1, 256], strides = [1, 1]} : vector<9x256xf32> to vector<1x256xf32>
    %138 = vector.broadcast %137 : vector<1x256xf32> to vector<8x256xf32>
    %139 = arith.mulf %136, %138 : vector<8x256xf32>
    %140 = arith.addf %131, %139 : vector<8x256xf32>
    %c16_i32_64 = arith.constant 16 : i32
    %141 = tpu.dynamic_rotate %130 by %c16_i32_64 dim 1 : vector<8x256xf32>, i32 -> vector<8x256xf32>
    %c1_65 = arith.constant 1 : index
    %c0_66 = arith.constant 0 : index
    %c0_67 = arith.constant 0 : index
    %142 = vector.load %arg12[%c1_65, %c0_66, %c0_67] : memref<9x8x8xbf16, #tpu.memory_space<vmem>>, vector<1x8x8xbf16>
    %143 = vector.shape_cast %142 : vector<1x8x8xbf16> to vector<8x8xbf16>
    %144 = arith.truncf %141 : vector<8x256xf32> to vector<8x256xbf16>
    %cst_68 = arith.constant dense<0.000000e+00> : vector<8x256xf32>
    %145 = tpu.matmul %143, %144, %cst_68 {dimension_numbers = #tpu.dot_dimension_numbers<[1], [0], [0], [1], [0, 0, 1, 1], [], []>} : vector<8x8xbf16>, vector<8x256xbf16>, vector<8x256xf32> -> vector<8x256xf32>
    %146 = vector.extract_strided_slice %2 {offsets = [1, 0], sizes = [1, 256], strides = [1, 1]} : vector<9x256xf32> to vector<1x256xf32>
    %147 = vector.broadcast %146 : vector<1x256xf32> to vector<8x256xf32>
    %148 = arith.mulf %145, %147 : vector<8x256xf32>
    %149 = arith.addf %140, %148 : vector<8x256xf32>
    %c15_i32_69 = arith.constant 15 : i32
    %150 = tpu.dynamic_rotate %130 by %c15_i32_69 dim 1 : vector<8x256xf32>, i32 -> vector<8x256xf32>
    %c2_70 = arith.constant 2 : index
    %c0_71 = arith.constant 0 : index
    %c0_72 = arith.constant 0 : index
    %151 = vector.load %arg12[%c2_70, %c0_71, %c0_72] : memref<9x8x8xbf16, #tpu.memory_space<vmem>>, vector<1x8x8xbf16>
    %152 = vector.shape_cast %151 : vector<1x8x8xbf16> to vector<8x8xbf16>
    %153 = arith.truncf %150 : vector<8x256xf32> to vector<8x256xbf16>
    %cst_73 = arith.constant dense<0.000000e+00> : vector<8x256xf32>
    %154 = tpu.matmul %152, %153, %cst_73 {dimension_numbers = #tpu.dot_dimension_numbers<[1], [0], [0], [1], [0, 0, 1, 1], [], []>} : vector<8x8xbf16>, vector<8x256xbf16>, vector<8x256xf32> -> vector<8x256xf32>
    %155 = vector.extract_strided_slice %2 {offsets = [2, 0], sizes = [1, 256], strides = [1, 1]} : vector<9x256xf32> to vector<1x256xf32>
    %156 = vector.broadcast %155 : vector<1x256xf32> to vector<8x256xf32>
    %157 = arith.mulf %154, %156 : vector<8x256xf32>
    %158 = arith.addf %149, %157 : vector<8x256xf32>
    %c1_i32_74 = arith.constant 1 : i32
    %159 = tpu.dynamic_rotate %130 by %c1_i32_74 dim 1 : vector<8x256xf32>, i32 -> vector<8x256xf32>
    %c3_75 = arith.constant 3 : index
    %c0_76 = arith.constant 0 : index
    %c0_77 = arith.constant 0 : index
    %160 = vector.load %arg12[%c3_75, %c0_76, %c0_77] : memref<9x8x8xbf16, #tpu.memory_space<vmem>>, vector<1x8x8xbf16>
    %161 = vector.shape_cast %160 : vector<1x8x8xbf16> to vector<8x8xbf16>
    %162 = arith.truncf %159 : vector<8x256xf32> to vector<8x256xbf16>
    %cst_78 = arith.constant dense<0.000000e+00> : vector<8x256xf32>
    %163 = tpu.matmul %161, %162, %cst_78 {dimension_numbers = #tpu.dot_dimension_numbers<[1], [0], [0], [1], [0, 0, 1, 1], [], []>} : vector<8x8xbf16>, vector<8x256xbf16>, vector<8x256xf32> -> vector<8x256xf32>
    %164 = vector.extract_strided_slice %2 {offsets = [3, 0], sizes = [1, 256], strides = [1, 1]} : vector<9x256xf32> to vector<1x256xf32>
    %165 = vector.broadcast %164 : vector<1x256xf32> to vector<8x256xf32>
    %166 = arith.mulf %163, %165 : vector<8x256xf32>
    %167 = arith.addf %158, %166 : vector<8x256xf32>
    %c4_79 = arith.constant 4 : index
    %c0_80 = arith.constant 0 : index
    %c0_81 = arith.constant 0 : index
    %168 = vector.load %arg12[%c4_79, %c0_80, %c0_81] : memref<9x8x8xbf16, #tpu.memory_space<vmem>>, vector<1x8x8xbf16>
    %169 = vector.shape_cast %168 : vector<1x8x8xbf16> to vector<8x8xbf16>
    %170 = arith.truncf %130 : vector<8x256xf32> to vector<8x256xbf16>
    %cst_82 = arith.constant dense<0.000000e+00> : vector<8x256xf32>
    %171 = tpu.matmul %169, %170, %cst_82 {dimension_numbers = #tpu.dot_dimension_numbers<[1], [0], [0], [1], [0, 0, 1, 1], [], []>} : vector<8x8xbf16>, vector<8x256xbf16>, vector<8x256xf32> -> vector<8x256xf32>
    %172 = arith.addf %167, %171 : vector<8x256xf32>
    %c255_i32_83 = arith.constant 255 : i32
    %173 = tpu.dynamic_rotate %130 by %c255_i32_83 dim 1 : vector<8x256xf32>, i32 -> vector<8x256xf32>
    %c5_84 = arith.constant 5 : index
    %c0_85 = arith.constant 0 : index
    %c0_86 = arith.constant 0 : index
    %174 = vector.load %arg12[%c5_84, %c0_85, %c0_86] : memref<9x8x8xbf16, #tpu.memory_space<vmem>>, vector<1x8x8xbf16>
    %175 = vector.shape_cast %174 : vector<1x8x8xbf16> to vector<8x8xbf16>
    %176 = arith.truncf %173 : vector<8x256xf32> to vector<8x256xbf16>
    %cst_87 = arith.constant dense<0.000000e+00> : vector<8x256xf32>
    %177 = tpu.matmul %175, %176, %cst_87 {dimension_numbers = #tpu.dot_dimension_numbers<[1], [0], [0], [1], [0, 0, 1, 1], [], []>} : vector<8x8xbf16>, vector<8x256xbf16>, vector<8x256xf32> -> vector<8x256xf32>
    %178 = vector.extract_strided_slice %2 {offsets = [5, 0], sizes = [1, 256], strides = [1, 1]} : vector<9x256xf32> to vector<1x256xf32>
    %179 = vector.broadcast %178 : vector<1x256xf32> to vector<8x256xf32>
    %180 = arith.mulf %177, %179 : vector<8x256xf32>
    %181 = arith.addf %172, %180 : vector<8x256xf32>
    %c241_i32_88 = arith.constant 241 : i32
    %182 = tpu.dynamic_rotate %130 by %c241_i32_88 dim 1 : vector<8x256xf32>, i32 -> vector<8x256xf32>
    %c6_89 = arith.constant 6 : index
    %c0_90 = arith.constant 0 : index
    %c0_91 = arith.constant 0 : index
    %183 = vector.load %arg12[%c6_89, %c0_90, %c0_91] : memref<9x8x8xbf16, #tpu.memory_space<vmem>>, vector<1x8x8xbf16>
    %184 = vector.shape_cast %183 : vector<1x8x8xbf16> to vector<8x8xbf16>
    %185 = arith.truncf %182 : vector<8x256xf32> to vector<8x256xbf16>
    %cst_92 = arith.constant dense<0.000000e+00> : vector<8x256xf32>
    %186 = tpu.matmul %184, %185, %cst_92 {dimension_numbers = #tpu.dot_dimension_numbers<[1], [0], [0], [1], [0, 0, 1, 1], [], []>} : vector<8x8xbf16>, vector<8x256xbf16>, vector<8x256xf32> -> vector<8x256xf32>
    %187 = vector.extract_strided_slice %2 {offsets = [6, 0], sizes = [1, 256], strides = [1, 1]} : vector<9x256xf32> to vector<1x256xf32>
    %188 = vector.broadcast %187 : vector<1x256xf32> to vector<8x256xf32>
    %189 = arith.mulf %186, %188 : vector<8x256xf32>
    %190 = arith.addf %181, %189 : vector<8x256xf32>
    %c240_i32_93 = arith.constant 240 : i32
    %191 = tpu.dynamic_rotate %130 by %c240_i32_93 dim 1 : vector<8x256xf32>, i32 -> vector<8x256xf32>
    %c7_94 = arith.constant 7 : index
    %c0_95 = arith.constant 0 : index
    %c0_96 = arith.constant 0 : index
    %192 = vector.load %arg12[%c7_94, %c0_95, %c0_96] : memref<9x8x8xbf16, #tpu.memory_space<vmem>>, vector<1x8x8xbf16>
    %193 = vector.shape_cast %192 : vector<1x8x8xbf16> to vector<8x8xbf16>
    %194 = arith.truncf %191 : vector<8x256xf32> to vector<8x256xbf16>
    %cst_97 = arith.constant dense<0.000000e+00> : vector<8x256xf32>
    %195 = tpu.matmul %193, %194, %cst_97 {dimension_numbers = #tpu.dot_dimension_numbers<[1], [0], [0], [1], [0, 0, 1, 1], [], []>} : vector<8x8xbf16>, vector<8x256xbf16>, vector<8x256xf32> -> vector<8x256xf32>
    %196 = vector.extract_strided_slice %2 {offsets = [7, 0], sizes = [1, 256], strides = [1, 1]} : vector<9x256xf32> to vector<1x256xf32>
    %197 = vector.broadcast %196 : vector<1x256xf32> to vector<8x256xf32>
    %198 = arith.mulf %195, %197 : vector<8x256xf32>
    %199 = arith.addf %190, %198 : vector<8x256xf32>
    %c239_i32_98 = arith.constant 239 : i32
    %200 = tpu.dynamic_rotate %130 by %c239_i32_98 dim 1 : vector<8x256xf32>, i32 -> vector<8x256xf32>
    %c8_99 = arith.constant 8 : index
    %c0_100 = arith.constant 0 : index
    %c0_101 = arith.constant 0 : index
    %201 = vector.load %arg12[%c8_99, %c0_100, %c0_101] : memref<9x8x8xbf16, #tpu.memory_space<vmem>>, vector<1x8x8xbf16>
    %202 = vector.shape_cast %201 : vector<1x8x8xbf16> to vector<8x8xbf16>
    %203 = arith.truncf %200 : vector<8x256xf32> to vector<8x256xbf16>
    %cst_102 = arith.constant dense<0.000000e+00> : vector<8x256xf32>
    %204 = tpu.matmul %202, %203, %cst_102 {dimension_numbers = #tpu.dot_dimension_numbers<[1], [0], [0], [1], [0, 0, 1, 1], [], []>} : vector<8x8xbf16>, vector<8x256xbf16>, vector<8x256xf32> -> vector<8x256xf32>
    %205 = vector.extract_strided_slice %2 {offsets = [8, 0], sizes = [1, 256], strides = [1, 1]} : vector<9x256xf32> to vector<1x256xf32>
    %206 = vector.broadcast %205 : vector<1x256xf32> to vector<8x256xf32>
    %207 = arith.mulf %204, %206 : vector<8x256xf32>
    %208 = arith.addf %199, %207 : vector<8x256xf32>
    %c0_103 = arith.constant 0 : index
    %c0_104 = arith.constant 0 : index
    %209 = vector.load %arg13[%c0_103, %c0_104] : memref<8x1xf32, #tpu.memory_space<vmem>>, vector<8x1xf32>
    %210 = vector.broadcast %209 : vector<8x1xf32> to vector<8x256xf32>
    %211 = arith.addf %208, %210 : vector<8x256xf32>
    %c0_105 = arith.constant 0 : index
    %c0_106 = arith.constant 0 : index
    %212 = vector.load %arg14[%c0_105, %c0_106] : memref<8x8xbf16, #tpu.memory_space<vmem>>, vector<8x8xbf16>
    %213 = arith.truncf %211 : vector<8x256xf32> to vector<8x256xbf16>
    %cst_107 = arith.constant dense<0.000000e+00> : vector<8x256xf32>
    %214 = tpu.matmul %212, %213, %cst_107 {dimension_numbers = #tpu.dot_dimension_numbers<[1], [0], [0], [1], [0, 0, 1, 1], [], []>} : vector<8x8xbf16>, vector<8x256xbf16>, vector<8x256xf32> -> vector<8x256xf32>
    %c0_108 = arith.constant 0 : index
    %c0_109 = arith.constant 0 : index
    %215 = vector.load %arg15[%c0_108, %c0_109] : memref<8x1xf32, #tpu.memory_space<vmem>>, vector<8x1xf32>
    %216 = vector.broadcast %215 : vector<8x1xf32> to vector<8x256xf32>
    %217 = arith.addf %214, %216 : vector<8x256xf32>
    %218 = arith.mulf %217, %3 : vector<8x256xf32>
    %219 = arith.truncf %218 : vector<8x256xf32> to vector<8x256xbf16>
    %c0_110 = arith.constant 0 : index
    %c0_111 = arith.constant 0 : index
    %220 = vector.load %arg16[%c0_110, %c0_111] : memref<8x8xbf16, #tpu.memory_space<vmem>>, vector<8x8xbf16>
    %cst_112 = arith.constant dense<0.000000e+00> : vector<8x256xf32>
    %221 = tpu.matmul %220, %219, %cst_112 {dimension_numbers = #tpu.dot_dimension_numbers<[1], [0], [0], [1], [0, 0, 1, 1], [], []>} : vector<8x8xbf16>, vector<8x256xbf16>, vector<8x256xf32> -> vector<8x256xf32>
    %c0_113 = arith.constant 0 : index
    %c0_114 = arith.constant 0 : index
    %222 = vector.load %arg17[%c0_113, %c0_114] : memref<8x1xf32, #tpu.memory_space<vmem>>, vector<8x1xf32>
    %223 = vector.broadcast %222 : vector<8x1xf32> to vector<8x256xf32>
    %224 = arith.addf %221, %223 : vector<8x256xf32>
    %cst_115 = arith.constant dense<0.000000e+00> : vector<256xf32>
    %225 = vector.multi_reduction <add>, %224, %cst_115 [0] : vector<8x256xf32> to vector<256xf32>
    %226 = vector.shape_cast %225 : vector<256xf32> to vector<1x256xf32>
    %cst_116 = arith.constant 8.000000e+00 : f32
    %227 = vector.broadcast %cst_116 : f32 to vector<1x256xf32>
    %228 = arith.divf %226, %227 : vector<1x256xf32>
    %229 = vector.broadcast %228 : vector<1x256xf32> to vector<8x256xf32>
    %230 = arith.subf %224, %229 : vector<8x256xf32>
    %231 = arith.mulf %230, %230 : vector<8x256xf32>
    %cst_117 = arith.constant dense<0.000000e+00> : vector<256xf32>
    %232 = vector.multi_reduction <add>, %231, %cst_117 [0] : vector<8x256xf32> to vector<256xf32>
    %233 = vector.shape_cast %232 : vector<256xf32> to vector<1x256xf32>
    %cst_118 = arith.constant 8.000000e+00 : f32
    %234 = vector.broadcast %cst_118 : f32 to vector<1x256xf32>
    %235 = arith.divf %233, %234 : vector<1x256xf32>
    %236 = vector.broadcast %228 : vector<1x256xf32> to vector<8x256xf32>
    %237 = arith.subf %224, %236 : vector<8x256xf32>
    %cst_119 = arith.constant 9.99999974E-6 : f32
    %238 = vector.broadcast %cst_119 : f32 to vector<1x256xf32>
    %239 = arith.addf %235, %238 : vector<1x256xf32>
    %240 = math.rsqrt %239 : vector<1x256xf32>
    %241 = vector.broadcast %240 : vector<1x256xf32> to vector<8x256xf32>
    %242 = arith.mulf %237, %241 : vector<8x256xf32>
    %c0_120 = arith.constant 0 : index
    %c0_121 = arith.constant 0 : index
    %243 = vector.load %arg18[%c0_120, %c0_121] : memref<8x1xf32, #tpu.memory_space<vmem>>, vector<8x1xf32>
    %244 = vector.broadcast %243 : vector<8x1xf32> to vector<8x256xf32>
    %245 = arith.mulf %242, %244 : vector<8x256xf32>
    %c0_122 = arith.constant 0 : index
    %c0_123 = arith.constant 0 : index
    %246 = vector.load %arg19[%c0_122, %c0_123] : memref<8x1xf32, #tpu.memory_space<vmem>>, vector<8x1xf32>
    %247 = vector.broadcast %246 : vector<8x1xf32> to vector<8x256xf32>
    %248 = arith.addf %245, %247 : vector<8x256xf32>
    %249 = arith.addf %248, %211 : vector<8x256xf32>
    %cst_124 = arith.constant 5.000000e-01 : f32
    %250 = vector.broadcast %cst_124 : f32 to vector<8x256xf32>
    %251 = arith.mulf %250, %249 : vector<8x256xf32>
    %cst_125 = arith.constant 0.707106769 : f32
    %252 = vector.broadcast %cst_125 : f32 to vector<8x256xf32>
    %253 = arith.mulf %249, %252 : vector<8x256xf32>
    %254 = math.erf %253 : vector<8x256xf32>
    %cst_126 = arith.constant 1.000000e+00 : f32
    %255 = vector.broadcast %cst_126 : f32 to vector<8x256xf32>
    %256 = arith.addf %255, %254 : vector<8x256xf32>
    %257 = arith.mulf %251, %256 : vector<8x256xf32>
    %cst_127 = arith.constant 0.000000e+00 : f32
    %258 = vector.broadcast %cst_127 : f32 to vector<8x256xf32>
    %c17_i32_128 = arith.constant 17 : i32
    %259 = tpu.dynamic_rotate %1 by %c17_i32_128 dim 1 : vector<4x256xf32>, i32 -> vector<4x256xf32>
    %c0_129 = arith.constant 0 : index
    %c0_130 = arith.constant 0 : index
    %c0_131 = arith.constant 0 : index
    %260 = vector.load %arg20[%c0_129, %c0_130, %c0_131] : memref<9x8x4xbf16, #tpu.memory_space<vmem>>, vector<1x8x4xbf16>
    %261 = vector.shape_cast %260 : vector<1x8x4xbf16> to vector<8x4xbf16>
    %262 = arith.truncf %259 : vector<4x256xf32> to vector<4x256xbf16>
    %cst_132 = arith.constant dense<0.000000e+00> : vector<8x256xf32>
    %263 = tpu.matmul %261, %262, %cst_132 {dimension_numbers = #tpu.dot_dimension_numbers<[1], [0], [0], [1], [0, 0, 1, 1], [], []>} : vector<8x4xbf16>, vector<4x256xbf16>, vector<8x256xf32> -> vector<8x256xf32>
    %264 = vector.extract_strided_slice %2 {offsets = [0, 0], sizes = [1, 256], strides = [1, 1]} : vector<9x256xf32> to vector<1x256xf32>
    %265 = vector.broadcast %264 : vector<1x256xf32> to vector<8x256xf32>
    %266 = arith.mulf %263, %265 : vector<8x256xf32>
    %267 = arith.addf %258, %266 : vector<8x256xf32>
    %c16_i32_133 = arith.constant 16 : i32
    %268 = tpu.dynamic_rotate %1 by %c16_i32_133 dim 1 : vector<4x256xf32>, i32 -> vector<4x256xf32>
    %c1_134 = arith.constant 1 : index
    %c0_135 = arith.constant 0 : index
    %c0_136 = arith.constant 0 : index
    %269 = vector.load %arg20[%c1_134, %c0_135, %c0_136] : memref<9x8x4xbf16, #tpu.memory_space<vmem>>, vector<1x8x4xbf16>
    %270 = vector.shape_cast %269 : vector<1x8x4xbf16> to vector<8x4xbf16>
    %271 = arith.truncf %268 : vector<4x256xf32> to vector<4x256xbf16>
    %cst_137 = arith.constant dense<0.000000e+00> : vector<8x256xf32>
    %272 = tpu.matmul %270, %271, %cst_137 {dimension_numbers = #tpu.dot_dimension_numbers<[1], [0], [0], [1], [0, 0, 1, 1], [], []>} : vector<8x4xbf16>, vector<4x256xbf16>, vector<8x256xf32> -> vector<8x256xf32>
    %273 = vector.extract_strided_slice %2 {offsets = [1, 0], sizes = [1, 256], strides = [1, 1]} : vector<9x256xf32> to vector<1x256xf32>
    %274 = vector.broadcast %273 : vector<1x256xf32> to vector<8x256xf32>
    %275 = arith.mulf %272, %274 : vector<8x256xf32>
    %276 = arith.addf %267, %275 : vector<8x256xf32>
    %c15_i32_138 = arith.constant 15 : i32
    %277 = tpu.dynamic_rotate %1 by %c15_i32_138 dim 1 : vector<4x256xf32>, i32 -> vector<4x256xf32>
    %c2_139 = arith.constant 2 : index
    %c0_140 = arith.constant 0 : index
    %c0_141 = arith.constant 0 : index
    %278 = vector.load %arg20[%c2_139, %c0_140, %c0_141] : memref<9x8x4xbf16, #tpu.memory_space<vmem>>, vector<1x8x4xbf16>
    %279 = vector.shape_cast %278 : vector<1x8x4xbf16> to vector<8x4xbf16>
    %280 = arith.truncf %277 : vector<4x256xf32> to vector<4x256xbf16>
    %cst_142 = arith.constant dense<0.000000e+00> : vector<8x256xf32>
    %281 = tpu.matmul %279, %280, %cst_142 {dimension_numbers = #tpu.dot_dimension_numbers<[1], [0], [0], [1], [0, 0, 1, 1], [], []>} : vector<8x4xbf16>, vector<4x256xbf16>, vector<8x256xf32> -> vector<8x256xf32>
    %282 = vector.extract_strided_slice %2 {offsets = [2, 0], sizes = [1, 256], strides = [1, 1]} : vector<9x256xf32> to vector<1x256xf32>
    %283 = vector.broadcast %282 : vector<1x256xf32> to vector<8x256xf32>
    %284 = arith.mulf %281, %283 : vector<8x256xf32>
    %285 = arith.addf %276, %284 : vector<8x256xf32>
    %c1_i32_143 = arith.constant 1 : i32
    %286 = tpu.dynamic_rotate %1 by %c1_i32_143 dim 1 : vector<4x256xf32>, i32 -> vector<4x256xf32>
    %c3_144 = arith.constant 3 : index
    %c0_145 = arith.constant 0 : index
    %c0_146 = arith.constant 0 : index
    %287 = vector.load %arg20[%c3_144, %c0_145, %c0_146] : memref<9x8x4xbf16, #tpu.memory_space<vmem>>, vector<1x8x4xbf16>
    %288 = vector.shape_cast %287 : vector<1x8x4xbf16> to vector<8x4xbf16>
    %289 = arith.truncf %286 : vector<4x256xf32> to vector<4x256xbf16>
    %cst_147 = arith.constant dense<0.000000e+00> : vector<8x256xf32>
    %290 = tpu.matmul %288, %289, %cst_147 {dimension_numbers = #tpu.dot_dimension_numbers<[1], [0], [0], [1], [0, 0, 1, 1], [], []>} : vector<8x4xbf16>, vector<4x256xbf16>, vector<8x256xf32> -> vector<8x256xf32>
    %291 = vector.extract_strided_slice %2 {offsets = [3, 0], sizes = [1, 256], strides = [1, 1]} : vector<9x256xf32> to vector<1x256xf32>
    %292 = vector.broadcast %291 : vector<1x256xf32> to vector<8x256xf32>
    %293 = arith.mulf %290, %292 : vector<8x256xf32>
    %294 = arith.addf %285, %293 : vector<8x256xf32>
    %c4_148 = arith.constant 4 : index
    %c0_149 = arith.constant 0 : index
    %c0_150 = arith.constant 0 : index
    %295 = vector.load %arg20[%c4_148, %c0_149, %c0_150] : memref<9x8x4xbf16, #tpu.memory_space<vmem>>, vector<1x8x4xbf16>
    %296 = vector.shape_cast %295 : vector<1x8x4xbf16> to vector<8x4xbf16>
    %297 = arith.truncf %1 : vector<4x256xf32> to vector<4x256xbf16>
    %cst_151 = arith.constant dense<0.000000e+00> : vector<8x256xf32>
    %298 = tpu.matmul %296, %297, %cst_151 {dimension_numbers = #tpu.dot_dimension_numbers<[1], [0], [0], [1], [0, 0, 1, 1], [], []>} : vector<8x4xbf16>, vector<4x256xbf16>, vector<8x256xf32> -> vector<8x256xf32>
    %299 = arith.addf %294, %298 : vector<8x256xf32>
    %c255_i32_152 = arith.constant 255 : i32
    %300 = tpu.dynamic_rotate %1 by %c255_i32_152 dim 1 : vector<4x256xf32>, i32 -> vector<4x256xf32>
    %c5_153 = arith.constant 5 : index
    %c0_154 = arith.constant 0 : index
    %c0_155 = arith.constant 0 : index
    %301 = vector.load %arg20[%c5_153, %c0_154, %c0_155] : memref<9x8x4xbf16, #tpu.memory_space<vmem>>, vector<1x8x4xbf16>
    %302 = vector.shape_cast %301 : vector<1x8x4xbf16> to vector<8x4xbf16>
    %303 = arith.truncf %300 : vector<4x256xf32> to vector<4x256xbf16>
    %cst_156 = arith.constant dense<0.000000e+00> : vector<8x256xf32>
    %304 = tpu.matmul %302, %303, %cst_156 {dimension_numbers = #tpu.dot_dimension_numbers<[1], [0], [0], [1], [0, 0, 1, 1], [], []>} : vector<8x4xbf16>, vector<4x256xbf16>, vector<8x256xf32> -> vector<8x256xf32>
    %305 = vector.extract_strided_slice %2 {offsets = [5, 0], sizes = [1, 256], strides = [1, 1]} : vector<9x256xf32> to vector<1x256xf32>
    %306 = vector.broadcast %305 : vector<1x256xf32> to vector<8x256xf32>
    %307 = arith.mulf %304, %306 : vector<8x256xf32>
    %308 = arith.addf %299, %307 : vector<8x256xf32>
    %c241_i32_157 = arith.constant 241 : i32
    %309 = tpu.dynamic_rotate %1 by %c241_i32_157 dim 1 : vector<4x256xf32>, i32 -> vector<4x256xf32>
    %c6_158 = arith.constant 6 : index
    %c0_159 = arith.constant 0 : index
    %c0_160 = arith.constant 0 : index
    %310 = vector.load %arg20[%c6_158, %c0_159, %c0_160] : memref<9x8x4xbf16, #tpu.memory_space<vmem>>, vector<1x8x4xbf16>
    %311 = vector.shape_cast %310 : vector<1x8x4xbf16> to vector<8x4xbf16>
    %312 = arith.truncf %309 : vector<4x256xf32> to vector<4x256xbf16>
    %cst_161 = arith.constant dense<0.000000e+00> : vector<8x256xf32>
    %313 = tpu.matmul %311, %312, %cst_161 {dimension_numbers = #tpu.dot_dimension_numbers<[1], [0], [0], [1], [0, 0, 1, 1], [], []>} : vector<8x4xbf16>, vector<4x256xbf16>, vector<8x256xf32> -> vector<8x256xf32>
    %314 = vector.extract_strided_slice %2 {offsets = [6, 0], sizes = [1, 256], strides = [1, 1]} : vector<9x256xf32> to vector<1x256xf32>
    %315 = vector.broadcast %314 : vector<1x256xf32> to vector<8x256xf32>
    %316 = arith.mulf %313, %315 : vector<8x256xf32>
    %317 = arith.addf %308, %316 : vector<8x256xf32>
    %c240_i32_162 = arith.constant 240 : i32
    %318 = tpu.dynamic_rotate %1 by %c240_i32_162 dim 1 : vector<4x256xf32>, i32 -> vector<4x256xf32>
    %c7_163 = arith.constant 7 : index
    %c0_164 = arith.constant 0 : index
    %c0_165 = arith.constant 0 : index
    %319 = vector.load %arg20[%c7_163, %c0_164, %c0_165] : memref<9x8x4xbf16, #tpu.memory_space<vmem>>, vector<1x8x4xbf16>
    %320 = vector.shape_cast %319 : vector<1x8x4xbf16> to vector<8x4xbf16>
    %321 = arith.truncf %318 : vector<4x256xf32> to vector<4x256xbf16>
    %cst_166 = arith.constant dense<0.000000e+00> : vector<8x256xf32>
    %322 = tpu.matmul %320, %321, %cst_166 {dimension_numbers = #tpu.dot_dimension_numbers<[1], [0], [0], [1], [0, 0, 1, 1], [], []>} : vector<8x4xbf16>, vector<4x256xbf16>, vector<8x256xf32> -> vector<8x256xf32>
    %323 = vector.extract_strided_slice %2 {offsets = [7, 0], sizes = [1, 256], strides = [1, 1]} : vector<9x256xf32> to vector<1x256xf32>
    %324 = vector.broadcast %323 : vector<1x256xf32> to vector<8x256xf32>
    %325 = arith.mulf %322, %324 : vector<8x256xf32>
    %326 = arith.addf %317, %325 : vector<8x256xf32>
    %c239_i32_167 = arith.constant 239 : i32
    %327 = tpu.dynamic_rotate %1 by %c239_i32_167 dim 1 : vector<4x256xf32>, i32 -> vector<4x256xf32>
    %c8_168 = arith.constant 8 : index
    %c0_169 = arith.constant 0 : index
    %c0_170 = arith.constant 0 : index
    %328 = vector.load %arg20[%c8_168, %c0_169, %c0_170] : memref<9x8x4xbf16, #tpu.memory_space<vmem>>, vector<1x8x4xbf16>
    %329 = vector.shape_cast %328 : vector<1x8x4xbf16> to vector<8x4xbf16>
    %330 = arith.truncf %327 : vector<4x256xf32> to vector<4x256xbf16>
    %cst_171 = arith.constant dense<0.000000e+00> : vector<8x256xf32>
    %331 = tpu.matmul %329, %330, %cst_171 {dimension_numbers = #tpu.dot_dimension_numbers<[1], [0], [0], [1], [0, 0, 1, 1], [], []>} : vector<8x4xbf16>, vector<4x256xbf16>, vector<8x256xf32> -> vector<8x256xf32>
    %332 = vector.extract_strided_slice %2 {offsets = [8, 0], sizes = [1, 256], strides = [1, 1]} : vector<9x256xf32> to vector<1x256xf32>
    %333 = vector.broadcast %332 : vector<1x256xf32> to vector<8x256xf32>
    %334 = arith.mulf %331, %333 : vector<8x256xf32>
    %335 = arith.addf %326, %334 : vector<8x256xf32>
    %c0_172 = arith.constant 0 : index
    %c0_173 = arith.constant 0 : index
    %336 = vector.load %arg21[%c0_172, %c0_173] : memref<8x1xf32, #tpu.memory_space<vmem>>, vector<8x1xf32>
    %337 = vector.broadcast %336 : vector<8x1xf32> to vector<8x256xf32>
    %338 = arith.addf %335, %337 : vector<8x256xf32>
    %c0_174 = arith.constant 0 : index
    %c0_175 = arith.constant 0 : index
    %339 = vector.load %arg22[%c0_174, %c0_175] : memref<8x8xbf16, #tpu.memory_space<vmem>>, vector<8x8xbf16>
    %340 = arith.truncf %338 : vector<8x256xf32> to vector<8x256xbf16>
    %cst_176 = arith.constant dense<0.000000e+00> : vector<8x256xf32>
    %341 = tpu.matmul %339, %340, %cst_176 {dimension_numbers = #tpu.dot_dimension_numbers<[1], [0], [0], [1], [0, 0, 1, 1], [], []>} : vector<8x8xbf16>, vector<8x256xbf16>, vector<8x256xf32> -> vector<8x256xf32>
    %c0_177 = arith.constant 0 : index
    %c0_178 = arith.constant 0 : index
    %342 = vector.load %arg23[%c0_177, %c0_178] : memref<8x1xf32, #tpu.memory_space<vmem>>, vector<8x1xf32>
    %343 = vector.broadcast %342 : vector<8x1xf32> to vector<8x256xf32>
    %344 = arith.addf %341, %343 : vector<8x256xf32>
    %345 = arith.mulf %344, %3 : vector<8x256xf32>
    %346 = arith.truncf %345 : vector<8x256xf32> to vector<8x256xbf16>
    %c0_179 = arith.constant 0 : index
    %c0_180 = arith.constant 0 : index
    %347 = vector.load %arg24[%c0_179, %c0_180] : memref<8x8xbf16, #tpu.memory_space<vmem>>, vector<8x8xbf16>
    %cst_181 = arith.constant dense<0.000000e+00> : vector<8x256xf32>
    %348 = tpu.matmul %347, %346, %cst_181 {dimension_numbers = #tpu.dot_dimension_numbers<[1], [0], [0], [1], [0, 0, 1, 1], [], []>} : vector<8x8xbf16>, vector<8x256xbf16>, vector<8x256xf32> -> vector<8x256xf32>
    %c0_182 = arith.constant 0 : index
    %c0_183 = arith.constant 0 : index
    %349 = vector.load %arg25[%c0_182, %c0_183] : memref<8x1xf32, #tpu.memory_space<vmem>>, vector<8x1xf32>
    %350 = vector.broadcast %349 : vector<8x1xf32> to vector<8x256xf32>
    %351 = arith.addf %348, %350 : vector<8x256xf32>
    %cst_184 = arith.constant dense<0.000000e+00> : vector<256xf32>
    %352 = vector.multi_reduction <add>, %351, %cst_184 [0] : vector<8x256xf32> to vector<256xf32>
    %353 = vector.shape_cast %352 : vector<256xf32> to vector<1x256xf32>
    %cst_185 = arith.constant 8.000000e+00 : f32
    %354 = vector.broadcast %cst_185 : f32 to vector<1x256xf32>
    %355 = arith.divf %353, %354 : vector<1x256xf32>
    %356 = vector.broadcast %355 : vector<1x256xf32> to vector<8x256xf32>
    %357 = arith.subf %351, %356 : vector<8x256xf32>
    %358 = arith.mulf %357, %357 : vector<8x256xf32>
    %cst_186 = arith.constant dense<0.000000e+00> : vector<256xf32>
    %359 = vector.multi_reduction <add>, %358, %cst_186 [0] : vector<8x256xf32> to vector<256xf32>
    %360 = vector.shape_cast %359 : vector<256xf32> to vector<1x256xf32>
    %cst_187 = arith.constant 8.000000e+00 : f32
    %361 = vector.broadcast %cst_187 : f32 to vector<1x256xf32>
    %362 = arith.divf %360, %361 : vector<1x256xf32>
    %363 = vector.broadcast %355 : vector<1x256xf32> to vector<8x256xf32>
    %364 = arith.subf %351, %363 : vector<8x256xf32>
    %cst_188 = arith.constant 9.99999974E-6 : f32
    %365 = vector.broadcast %cst_188 : f32 to vector<1x256xf32>
    %366 = arith.addf %362, %365 : vector<1x256xf32>
    %367 = math.rsqrt %366 : vector<1x256xf32>
    %368 = vector.broadcast %367 : vector<1x256xf32> to vector<8x256xf32>
    %369 = arith.mulf %364, %368 : vector<8x256xf32>
    %c0_189 = arith.constant 0 : index
    %c0_190 = arith.constant 0 : index
    %370 = vector.load %arg26[%c0_189, %c0_190] : memref<8x1xf32, #tpu.memory_space<vmem>>, vector<8x1xf32>
    %371 = vector.broadcast %370 : vector<8x1xf32> to vector<8x256xf32>
    %372 = arith.mulf %369, %371 : vector<8x256xf32>
    %c0_191 = arith.constant 0 : index
    %c0_192 = arith.constant 0 : index
    %373 = vector.load %arg27[%c0_191, %c0_192] : memref<8x1xf32, #tpu.memory_space<vmem>>, vector<8x1xf32>
    %374 = vector.broadcast %373 : vector<8x1xf32> to vector<8x256xf32>
    %375 = arith.addf %372, %374 : vector<8x256xf32>
    %376 = arith.addf %375, %338 : vector<8x256xf32>
    %c0_193 = arith.constant 0 : index
    %c0_194 = arith.constant 0 : index
    %377 = vector.load %arg28[%c0_193, %c0_194] : memref<8x1xf32, #tpu.memory_space<vmem>>, vector<8x1xf32>
    %378 = vector.broadcast %377 : vector<8x1xf32> to vector<8x256xf32>
    %379 = arith.mulf %376, %378 : vector<8x256xf32>
    %c0_195 = arith.constant 0 : index
    %c0_196 = arith.constant 0 : index
    %380 = vector.load %arg29[%c0_195, %c0_196] : memref<8x1xf32, #tpu.memory_space<vmem>>, vector<8x1xf32>
    %381 = vector.broadcast %380 : vector<8x1xf32> to vector<8x256xf32>
    %382 = arith.addf %379, %381 : vector<8x256xf32>
    %cst_197 = arith.constant 5.000000e-01 : f32
    %383 = vector.broadcast %cst_197 : f32 to vector<8x256xf32>
    %384 = arith.mulf %383, %382 : vector<8x256xf32>
    %cst_198 = arith.constant 0.707106769 : f32
    %385 = vector.broadcast %cst_198 : f32 to vector<8x256xf32>
    %386 = arith.mulf %382, %385 : vector<8x256xf32>
    %387 = math.erf %386 : vector<8x256xf32>
    %cst_199 = arith.constant 1.000000e+00 : f32
    %388 = vector.broadcast %cst_199 : f32 to vector<8x256xf32>
    %389 = arith.addf %388, %387 : vector<8x256xf32>
    %390 = arith.mulf %384, %389 : vector<8x256xf32>
    %c0_200 = arith.constant 0 : index
    %c0_201 = arith.constant 0 : index
    %391 = vector.load %arg30[%c0_200, %c0_201] : memref<2x8xbf16, #tpu.memory_space<vmem>>, vector<2x8xbf16>
    %392 = arith.truncf %257 : vector<8x256xf32> to vector<8x256xbf16>
    %cst_202 = arith.constant dense<0.000000e+00> : vector<2x256xf32>
    %393 = tpu.matmul %391, %392, %cst_202 {dimension_numbers = #tpu.dot_dimension_numbers<[1], [0], [0], [1], [0, 0, 1, 1], [], []>} : vector<2x8xbf16>, vector<8x256xbf16>, vector<2x256xf32> -> vector<2x256xf32>
    %c0_203 = arith.constant 0 : index
    %c0_204 = arith.constant 0 : index
    %394 = vector.load %arg31[%c0_203, %c0_204] : memref<2x8xbf16, #tpu.memory_space<vmem>>, vector<2x8xbf16>
    %395 = arith.truncf %390 : vector<8x256xf32> to vector<8x256xbf16>
    %cst_205 = arith.constant dense<0.000000e+00> : vector<2x256xf32>
    %396 = tpu.matmul %394, %395, %cst_205 {dimension_numbers = #tpu.dot_dimension_numbers<[1], [0], [0], [1], [0, 0, 1, 1], [], []>} : vector<2x8xbf16>, vector<8x256xbf16>, vector<2x256xf32> -> vector<2x256xf32>
    %397 = arith.addf %393, %396 : vector<2x256xf32>
    %c0_206 = arith.constant 0 : index
    %c0_207 = arith.constant 0 : index
    %398 = vector.load %arg32[%c0_206, %c0_207] : memref<2x1xf32, #tpu.memory_space<vmem>>, vector<2x1xf32>
    %399 = vector.broadcast %398 : vector<2x1xf32> to vector<2x256xf32>
    %400 = arith.addf %397, %399 : vector<2x256xf32>
    %cst_208 = arith.constant 5.000000e-01 : f32
    %401 = vector.broadcast %cst_208 : f32 to vector<2x256xf32>
    %402 = arith.mulf %401, %400 : vector<2x256xf32>
    %cst_209 = arith.constant 0.707106769 : f32
    %403 = vector.broadcast %cst_209 : f32 to vector<2x256xf32>
    %404 = arith.mulf %400, %403 : vector<2x256xf32>
    %405 = math.erf %404 : vector<2x256xf32>
    %cst_210 = arith.constant 1.000000e+00 : f32
    %406 = vector.broadcast %cst_210 : f32 to vector<2x256xf32>
    %407 = arith.addf %406, %405 : vector<2x256xf32>
    %408 = arith.mulf %402, %407 : vector<2x256xf32>
    %c0_211 = arith.constant 0 : index
    %c0_212 = arith.constant 0 : index
    %409 = vector.load %arg33[%c0_211, %c0_212] : memref<2x2xbf16, #tpu.memory_space<vmem>>, vector<2x2xbf16>
    %410 = arith.truncf %408 : vector<2x256xf32> to vector<2x256xbf16>
    %cst_213 = arith.constant dense<0.000000e+00> : vector<2x256xf32>
    %411 = tpu.matmul %409, %410, %cst_213 {dimension_numbers = #tpu.dot_dimension_numbers<[1], [0], [0], [1], [0, 0, 1, 1], [], []>} : vector<2x2xbf16>, vector<2x256xbf16>, vector<2x256xf32> -> vector<2x256xf32>
    %c0_214 = arith.constant 0 : index
    %c0_215 = arith.constant 0 : index
    %412 = vector.load %arg34[%c0_214, %c0_215] : memref<2x1xf32, #tpu.memory_space<vmem>>, vector<2x1xf32>
    %413 = vector.broadcast %412 : vector<2x1xf32> to vector<2x256xf32>
    %414 = arith.addf %411, %413 : vector<2x256xf32>
    %415 = arith.negf %414 : vector<2x256xf32>
    %416 = math.exp %415 : vector<2x256xf32>
    %cst_216 = arith.constant 1.000000e+00 : f32
    %417 = vector.broadcast %cst_216 : f32 to vector<2x256xf32>
    %418 = arith.addf %417, %416 : vector<2x256xf32>
    %419 = arith.divf %417, %418 : vector<2x256xf32>
    %420 = vector.extract_strided_slice %419 {offsets = [0, 0], sizes = [1, 256], strides = [1, 1]} : vector<2x256xf32> to vector<1x256xf32>
    %421 = vector.broadcast %420 : vector<1x256xf32> to vector<8x256xf32>
    %422 = arith.mulf %421, %257 : vector<8x256xf32>
    %423 = vector.extract_strided_slice %419 {offsets = [1, 0], sizes = [1, 256], strides = [1, 1]} : vector<2x256xf32> to vector<1x256xf32>
    %424 = vector.broadcast %423 : vector<1x256xf32> to vector<8x256xf32>
    %425 = arith.mulf %424, %390 : vector<8x256xf32>
    %426 = arith.addf %422, %425 : vector<8x256xf32>
    %c0_217 = arith.constant 0 : index
    %c0_218 = arith.constant 0 : index
    %c0_219 = arith.constant 0 : index
    %427 = vector.load %arg35[%c0_217, %c0_218, %c0_219] : memref<1x8x256xf32, #tpu.memory_space<vmem>>, vector<1x8x256xf32>
    %428 = vector.shape_cast %427 : vector<1x8x256xf32> to vector<8x256xf32>
    %429 = vector.shape_cast %426 : vector<8x256xf32> to vector<1x8x256xf32>
    tpu.vector_store %arg35[%c0_217, %c0_218, %c0_219], %429 {strides = array<i32>} : memref<1x8x256xf32, #tpu.memory_space<vmem>>, vector<1x8x256xf32>,
    return
  }
  func.func @transform_0(%arg0: i32) -> (i32, i32, i32) {
    %c0_i32 = arith.constant 0 : i32
    %c0_i32_0 = arith.constant 0 : i32
    %c0_i32_1 = arith.constant 0 : i32
    return %arg0, %c0_i32, %c0_i32_0 : i32, i32, i32
  }
  func.func @transform_1(%arg0: i32) -> (i32, i32) {
    %c0_i32 = arith.constant 0 : i32
    %c0_i32_0 = arith.constant 0 : i32
    %c0_i32_1 = arith.constant 0 : i32
    return %c0_i32, %c0_i32_0 : i32, i32
  }
  func.func @transform_2(%arg0: i32) -> (i32, i32) {
    %c0_i32 = arith.constant 0 : i32
    %c0_i32_0 = arith.constant 0 : i32
    %c0_i32_1 = arith.constant 0 : i32
    return %c0_i32, %c0_i32_0 : i32, i32
  }
  func.func @transform_3(%arg0: i32) -> (i32, i32, i32) {
    %c0_i32 = arith.constant 0 : i32
    %c0_i32_0 = arith.constant 0 : i32
    %c0_i32_1 = arith.constant 0 : i32
    %c0_i32_2 = arith.constant 0 : i32
    return %c0_i32, %c0_i32_0, %c0_i32_1 : i32, i32, i32
  }
  func.func @transform_4(%arg0: i32) -> (i32, i32) {
    %c0_i32 = arith.constant 0 : i32
    %c0_i32_0 = arith.constant 0 : i32
    %c0_i32_1 = arith.constant 0 : i32
    return %c0_i32, %c0_i32_0 : i32, i32
  }
  func.func @transform_5(%arg0: i32) -> (i32, i32) {
    %c0_i32 = arith.constant 0 : i32
    %c0_i32_0 = arith.constant 0 : i32
    %c0_i32_1 = arith.constant 0 : i32
    return %c0_i32, %c0_i32_0 : i32, i32
  }
  func.func @transform_6(%arg0: i32) -> (i32, i32) {
    %c0_i32 = arith.constant 0 : i32
    %c0_i32_0 = arith.constant 0 : i32
    %c0_i32_1 = arith.constant 0 : i32
    return %c0_i32, %c0_i32_0 : i32, i32
  }
  func.func @transform_7(%arg0: i32) -> (i32, i32) {
    %c0_i32 = arith.constant 0 : i32
    %c0_i32_0 = arith.constant 0 : i32
    %c0_i32_1 = arith.constant 0 : i32
    return %c0_i32, %c0_i32_0 : i32, i32
  }
  func.func @transform_8(%arg0: i32) -> (i32, i32) {
    %c0_i32 = arith.constant 0 : i32
    %c0_i32_0 = arith.constant 0 : i32
    %c0_i32_1 = arith.constant 0 : i32
    return %c0_i32, %c0_i32_0 : i32, i32
  }
  func.func @transform_9(%arg0: i32) -> (i32, i32) {
    %c0_i32 = arith.constant 0 : i32
    %c0_i32_0 = arith.constant 0 : i32
    %c0_i32_1 = arith.constant 0 : i32
    return %c0_i32, %c0_i32_0 : i32, i32
  }
  func.func @transform_10(%arg0: i32) -> (i32, i32) {
    %c0_i32 = arith.constant 0 : i32
    %c0_i32_0 = arith.constant 0 : i32
    %c0_i32_1 = arith.constant 0 : i32
    return %c0_i32, %c0_i32_0 : i32, i32
  }
  func.func @transform_11(%arg0: i32) -> (i32, i32, i32) {
    %c0_i32 = arith.constant 0 : i32
    %c0_i32_0 = arith.constant 0 : i32
    %c0_i32_1 = arith.constant 0 : i32
    %c0_i32_2 = arith.constant 0 : i32
    return %c0_i32, %c0_i32_0, %c0_i32_1 : i32, i32, i32
  }
  func.func @transform_12(%arg0: i32) -> (i32, i32) {
    %c0_i32 = arith.constant 0 : i32
    %c0_i32_0 = arith.constant 0 : i32
    %c0_i32_1 = arith.constant 0 : i32
    return %c0_i32, %c0_i32_0 : i32, i32
  }
  func.func @transform_13(%arg0: i32) -> (i32, i32) {
    %c0_i32 = arith.constant 0 : i32
    %c0_i32_0 = arith.constant 0 : i32
    %c0_i32_1 = arith.constant 0 : i32
    return %c0_i32, %c0_i32_0 : i32, i32
  }
  func.func @transform_14(%arg0: i32) -> (i32, i32) {
    %c0_i32 = arith.constant 0 : i32
    %c0_i32_0 = arith.constant 0 : i32
    %c0_i32_1 = arith.constant 0 : i32
    return %c0_i32, %c0_i32_0 : i32, i32
  }
  func.func @transform_15(%arg0: i32) -> (i32, i32) {
    %c0_i32 = arith.constant 0 : i32
    %c0_i32_0 = arith.constant 0 : i32
    %c0_i32_1 = arith.constant 0 : i32
    return %c0_i32, %c0_i32_0 : i32, i32
  }
  func.func @transform_16(%arg0: i32) -> (i32, i32) {
    %c0_i32 = arith.constant 0 : i32
    %c0_i32_0 = arith.constant 0 : i32
    %c0_i32_1 = arith.constant 0 : i32
    return %c0_i32, %c0_i32_0 : i32, i32
  }
  func.func @transform_17(%arg0: i32) -> (i32, i32) {
    %c0_i32 = arith.constant 0 : i32
    %c0_i32_0 = arith.constant 0 : i32
    %c0_i32_1 = arith.constant 0 : i32
    return %c0_i32, %c0_i32_0 : i32, i32
  }
  func.func @transform_18(%arg0: i32) -> (i32, i32) {
    %c0_i32 = arith.constant 0 : i32
    %c0_i32_0 = arith.constant 0 : i32
    %c0_i32_1 = arith.constant 0 : i32
    return %c0_i32, %c0_i32_0 : i32, i32
  }
  func.func @transform_19(%arg0: i32) -> (i32, i32, i32) {
    %c0_i32 = arith.constant 0 : i32
    %c0_i32_0 = arith.constant 0 : i32
    %c0_i32_1 = arith.constant 0 : i32
    %c0_i32_2 = arith.constant 0 : i32
    return %c0_i32, %c0_i32_0, %c0_i32_1 : i32, i32, i32
  }
  func.func @transform_20(%arg0: i32) -> (i32, i32) {
    %c0_i32 = arith.constant 0 : i32
    %c0_i32_0 = arith.constant 0 : i32
    %c0_i32_1 = arith.constant 0 : i32
    return %c0_i32, %c0_i32_0 : i32, i32
  }
  func.func @transform_21(%arg0: i32) -> (i32, i32) {
    %c0_i32 = arith.constant 0 : i32
    %c0_i32_0 = arith.constant 0 : i32
    %c0_i32_1 = arith.constant 0 : i32
    return %c0_i32, %c0_i32_0 : i32, i32
  }
  func.func @transform_22(%arg0: i32) -> (i32, i32) {
    %c0_i32 = arith.constant 0 : i32
    %c0_i32_0 = arith.constant 0 : i32
    %c0_i32_1 = arith.constant 0 : i32
    return %c0_i32, %c0_i32_0 : i32, i32
  }
  func.func @transform_23(%arg0: i32) -> (i32, i32) {
    %c0_i32 = arith.constant 0 : i32
    %c0_i32_0 = arith.constant 0 : i32
    %c0_i32_1 = arith.constant 0 : i32
    return %c0_i32, %c0_i32_0 : i32, i32
  }
  func.func @transform_24(%arg0: i32) -> (i32, i32) {
    %c0_i32 = arith.constant 0 : i32
    %c0_i32_0 = arith.constant 0 : i32
    %c0_i32_1 = arith.constant 0 : i32
    return %c0_i32, %c0_i32_0 : i32, i32
  }
  func.func @transform_25(%arg0: i32) -> (i32, i32) {
    %c0_i32 = arith.constant 0 : i32
    %c0_i32_0 = arith.constant 0 : i32
    %c0_i32_1 = arith.constant 0 : i32
    return %c0_i32, %c0_i32_0 : i32, i32
  }
  func.func @transform_26(%arg0: i32) -> (i32, i32) {
    %c0_i32 = arith.constant 0 : i32
    %c0_i32_0 = arith.constant 0 : i32
    %c0_i32_1 = arith.constant 0 : i32
    return %c0_i32, %c0_i32_0 : i32, i32
  }
  func.func @transform_27(%arg0: i32) -> (i32, i32) {
    %c0_i32 = arith.constant 0 : i32
    %c0_i32_0 = arith.constant 0 : i32
    %c0_i32_1 = arith.constant 0 : i32
    return %c0_i32, %c0_i32_0 : i32, i32
  }
  func.func @transform_28(%arg0: i32) -> (i32, i32) {
    %c0_i32 = arith.constant 0 : i32
    %c0_i32_0 = arith.constant 0 : i32
    %c0_i32_1 = arith.constant 0 : i32
    return %c0_i32, %c0_i32_0 : i32, i32
  }
  func.func @transform_29(%arg0: i32) -> (i32, i32) {
    %c0_i32 = arith.constant 0 : i32
    %c0_i32_0 = arith.constant 0 : i32
    %c0_i32_1 = arith.constant 0 : i32
    return %c0_i32, %c0_i32_0 : i32, i32
  }
  func.func @transform_30(%arg0: i32) -> (i32, i32) {
    %c0_i32 = arith.constant 0 : i32
    %c0_i32_0 = arith.constant 0 : i32
    %c0_i32_1 = arith.constant 0 : i32
    return %c0_i32, %c0_i32_0 : i32, i32
  }
  func.func @transform_31(%arg0: i32) -> (i32, i32) {
    %c0_i32 = arith.constant 0 : i32
    %c0_i32_0 = arith.constant 0 : i32
    %c0_i32_1 = arith.constant 0 : i32
    return %c0_i32, %c0_i32_0 : i32, i32
  }
  func.func @transform_32(%arg0: i32) -> (i32, i32) {
    %c0_i32 = arith.constant 0 : i32
    %c0_i32_0 = arith.constant 0 : i32
    %c0_i32_1 = arith.constant 0 : i32
    return %c0_i32, %c0_i32_0 : i32, i32
  }
  func.func @transform_33(%arg0: i32) -> (i32, i32) {
    %c0_i32 = arith.constant 0 : i32
    %c0_i32_0 = arith.constant 0 : i32
    %c0_i32_1 = arith.constant 0 : i32
    return %c0_i32, %c0_i32_0 : i32, i32
  }
  func.func @transform_34(%arg0: i32) -> (i32, i32, i32) {
    %c0_i32 = arith.constant 0 : i32
    %c0_i32_0 = arith.constant 0 : i32
    %c0_i32_1 = arith.constant 0 : i32
    return %arg0, %c0_i32, %c0_i32_0 : i32, i32, i32
  }
}

</mosaic_0001>

<bundles_post_ra>
// kernel: fractal_neural_block.1
= control target key start
LH: loop header
LB: loop body
LE: loop exit
PB: predicated region body
PF: predicated region fallthrough
CT: control target
= control target key end

     0   :  { %s3769_s6 = smov 1   ;;  %s3770_s10 = smov 2   ;;  %s4625_s0 = inlined_call_operand.smem [shape: u32[35], index: -1, kind: input, shape index: {}] }
   0x1   :  { %s3821_s5 = sld [smem:[%s4625_s0]]   ;;  %s3771_s14 = smov 3  }
   0x2   :  { %s3826_s9 = sld [smem:[%s4625_s0 + %s3769_s6]]   ;;  %s3772_s18 = smov 4  }
   0x3   :  { %s3831_s13 = sld [smem:[%s4625_s0 + %s3770_s10]]   ;;  %s3773_s22 = smov 5  }
   0x4   :  { %s3836_s17 = sld [smem:[%s4625_s0 + %s3771_s14]]   ;;  %s3774_s26 = smov 6  }
   0x5   :  { %s3841_s21 = sld [smem:[%s4625_s0 + %s3772_s18]]   ;;  %s3775_s30 = smov 7  }
   0x6   :  { %s3846_s25 = sld [smem:[%s4625_s0 + %s3773_s22]]   ;;  %s3776_s4 = smov 8  }
   0x7   :  { %4638 = sst [smem:[#allocation2_spill]] %s3821_s5  ;;  %s3777_s10 = smov 9  }
   0x8   :  { %s3851_s29 = sld [smem:[%s4625_s0 + %s3774_s26]]   ;;  %s3778_s15 = smov 10  }
   0x9   :  { %s3856_s3 = sld [smem:[%s4625_s0 + %s3775_s30]]   ;;  %s3779_s20 = smov 11  }
   0xa   :  { %s3861_s8 = sld [smem:[%s4625_s0 + %s3776_s4]]   ;;  %s3780_s26 = smov 12  }
   0xb   :  { %s3866_s14 = sld [smem:[%s4625_s0 + %s3777_s10]]   ;;  %s3781_s1 = smov 13  }
   0xc   :  { %s3871_s19 = sld [smem:[%s4625_s0 + %s3778_s15]]   ;;  %s3782_s7 = smov 14  }
   0xd   :  { %s3876_s24 = sld [smem:[%s4625_s0 + %s3779_s20]]   ;;  %s3783_s15 = smov 15  }
   0xe   :  { %s3881_s30 = sld [smem:[%s4625_s0 + %s3780_s26]]   ;;  %s3784_s22 = smov 16  }
   0xf   :  { %4639 = sst [smem:[#allocation3_spill]] %s3856_s3  ;;  %s3785_s28 = smov 17  }
  0x10   :  { %4640 = sst [smem:[#allocation4_spill]] %s3861_s8 }
  0x11   :  { %s3886_s6 = sld [smem:[%s4625_s0 + %s3781_s1]]  }
  0x12   :  { %s3891_s12 = sld [smem:[%s4625_s0 + %s3782_s7]]   ;;  %s3786_s7 = smov 18  }
  0x13   :  { %4641 = sst [smem:[#allocation5_spill]] %s3876_s24 }
  0x14   :  { %s3896_s20 = sld [smem:[%s4625_s0 + %s3783_s15]]   ;;  %s3787_s15 = smov 19  }
  0x15   :  { %s3901_s27 = sld [smem:[%s4625_s0 + %s3784_s22]]   ;;  %s3788_s22 = smov 20  }
  0x16   :  { %s3906_s4 = sld [smem:[%s4625_s0 + %s3785_s28]]   ;;  %s3789_s28 = smov 21  }
  0x17   :  { %4642 = sst [smem:[#allocation6_spill]] %s3886_s6 }
  0x18   :  { %4643 = sst [smem:[#allocation7_spill]] %s3891_s12 }
  0x19   :  { %s3911_s6 = sld [smem:[%s4625_s0 + %s3786_s7]]   ;;  %s3790_s7 = smov 22  }
  0x1a   :  { %4644 = sst [smem:[#allocation8_spill]] %s3896_s20 }
  0x1b   :  { %4645 = sst [smem:[#allocation9_spill]] %s3901_s27 }
  0x1c   :  { %4646 = sst [smem:[#allocation10_spill]] %s3906_s4 }
  0x1d   :  { %s3916_s20 = sld [smem:[%s4625_s0 + %s3787_s15]]   ;;  %s3791_s15 = smov 23  }
  0x1e   :  { %s3921_s24 = sld [smem:[%s4625_s0 + %s3788_s22]]   ;;  %s3792_s22 = smov 24  }
  0x1f   :  { %4647 = sst [smem:[#allocation11_spill]] %s3911_s6 }
  0x20   :  { %s3926_s4 = sld [smem:[%s4625_s0 + %s3789_s28]]   ;;  %s3793_s28 = smov 25  }
  0x21   :  { %s3931_s6 = sld [smem:[%s4625_s0 + %s3790_s7]]   ;;  %s3794_s7 = smov 26  }
  0x22   :  { %s3941_s27 = sld [smem:[%s4625_s0 + %s3792_s22]]   ;;  %s3796_s22 = smov 28  }
  0x23   :  { %4648 = sst [smem:[#allocation12_spill]] %s3916_s20 }
  0x24   :  { %s3936_s20 = sld [smem:[%s4625_s0 + %s3791_s15]]   ;;  %s3795_s15 = smov 27  }
  0x25   :  { %s3951_s12 = sld [smem:[%s4625_s0 + %s3794_s7]]   ;;  %s3798_s7 = smov 30  }
  0x26   :  { %4649 = sst [smem:[#allocation13_spill]] %s3926_s4 }
  0x27   :  { %s3946_s4 = sld [smem:[%s4625_s0 + %s3793_s28]]   ;;  %s3797_s28 = smov 29  }
  0x28   :  { %4651 = sst [smem:[#allocation15_spill]] %s3941_s27 }
  0x29   :  { %s3961_s27 = sld [smem:[%s4625_s0 + %s3796_s22]]   ;;  %s3800_s22 = smov 32  }
  0x2a   :  { %4650 = sst [smem:[#allocation14_spill]] %s3936_s20 }
  0x2b   :  { %4653 = sst [smem:[#allocation17_spill]] %s3951_s12 }
  0x2c   :  { %s3956_s20 = sld [smem:[%s4625_s0 + %s3795_s15]]   ;;  %s3799_s15 = smov 31  }
  0x2d   :  { %4652 = sst [smem:[#allocation16_spill]] %s3946_s4 }
  0x2e   :  { %s3966_s4 = sld [smem:[%s4625_s0 + %s3797_s28]]   ;;  %s3801_s28 = smov 33  }
  0x2f   :  { %4655 = sst [smem:[#allocation19_spill]] %s3961_s27 }
  0x30   :  { %s3971_s12 = sld [smem:[%s4625_s0 + %s3798_s7]]   ;;  %s3802_s7 = smov 34  }
  0x31   :  { %s3981_s27 = sld [smem:[%s4625_s0 + %s3800_s22]]  }
  0x32   :  { %4654 = sst [smem:[#allocation18_spill]] %s3956_s20 }
  0x33   :  { %s3976_s20 = sld [smem:[%s4625_s0 + %s3799_s15]]   ;;  %s3993_s15 = smov 0  }
  0x34   :  { %4656 = sst [smem:[#allocation20_spill]] %s3966_s4 }
  0x35   :  { %s3986_s4 = sld [smem:[%s4625_s0 + %s3801_s28]]  }
  0x36   :  { %4657 = sst [smem:[#allocation21_spill]] %s3971_s12 }
  0x37   :  { %s3991_s12 = sld [smem:[%s4625_s0 + %s3802_s7]]  }
  0x38 LB: > { %s3463_s16 = sadd.s32 4294967295, %s3767_s15   ;;  %p3467_p0 = scmp.ge.s32.totalorder %s3767_s15, 1  ;;  %s3767_s15 = sphi %s3993_s15, %s79_s15  }
  0x39   : > { %p947_p1 = scmp.lt.s32.totalorder %s3767_s15, 3 }
  0x3b   : > { %p948_p2 = pnand %p3467_p0, %p947_p1 }
  0x3d   : > { %951 = sbr.rel (%p948_p2) target bundleno = 2213 (0x8a5), region = 156 }
  0x42   : > { %p1033_p3 = scmp.lt.s32.totalorder %s3463_s16, 1  ;;  %s4658_s5 = sld [smem:[#allocation2_spill]]  ;;  %v1061_v27 = vlaneseq  ;;  %vm1073_vm1 = vcmask 1041408   ;;  %v1066_v38 = vld [vmem:[%s3836_s17] sm:$0xf]  ;;  %vm4628_vm2 = vcmask 31744  }
  0x43   : > { %s3803_s22 = smov 17   ;;  %s3804_s23 = smov 16   ;;  %v3474_v48 = vld [vmem:[%s3836_s17 + $0x4] sm:$0xf]  ;;  %vm1578_vm10 = vcmask 1043456   ;;  %vm1574_vm11 = vcmask 64512  }
  0x44   : > { %s4711_s16 = smov (!%p1033_p3, %s3463_s16), 1  ;;  %s3805_s26 = smov 15   ;;  %v4017_v28 = vand.u32 127, %v1061_v27  ;;  %v3483_v27 = vld [vmem:[%s3836_s17 + $0x10] sm:$0xf] }
  0x45   : > { %s3580_s0 = sshll.u32 %s4711_s16, 3  ;;  %s3806_s28 = smov 1  }
  0x46   : > { %s3807_s1 = smov 127   ;;  %s3808_s2 = smov 113   ;;  %vm1063_vm0 = vcmp.lt.s32.totalorder %v4017_v28, 17  ;;  %vm1121_vm3 = vcmp.lt.s32.totalorder %v4017_v28, 16  ;;  %vm1178_vm4 = vcmp.lt.s32.totalorder %v4017_v28, 15  ;;  %vm1338_vm5 = vcmp.lt.s32.totalorder %v4017_v28, 127 }
  0x47   : > { %s4637_s7 = smov 112   ;;  %s4636_s10 = smov 111   ;;  %vm1235_vm6 = vcmp.lt.s32.totalorder %v4017_v28, 1  ;;  %vm1395_vm7 = vcmp.lt.s32.totalorder %v4017_v28, 113  ;;  %vm4635_vm8 = vcmp.lt.s32.totalorder %v4017_v28, 112  ;;  %vm4634_vm9 = vcmp.lt.s32.totalorder %v4017_v28, 111 }
  0x48   : > { %s1037_s18 = scalar_lea.vmem %s4658_s5, %s3580_s0  ;;  %s4662_s8 = sld [smem:[#allocation4_spill]] }
  0x49   : > { %v1044_v0 = vld [vmem:[%s1037_s18] sm:$0xff]  ;;  %s4663_s3 = sld [smem:[#allocation3_spill]] }
  0x4a   : > { %1052 = vst [vmem:[#allocation1] ss:$2 sm:$0xff] %v1044_v0  ;;  %s4665_s11 = sld [smem:[#allocation7_spill]] }
  0x4b   : > { %s4666_s0 = sld [smem:[#allocation16_spill]] }
  0x4c   : > { %s4667_s18 = sld [smem:[#allocation9_spill]] }
  0x4d   : > { %s4671_s5 = sld [smem:[#allocation18_spill]] }
  0x51   : > { %v1053_v1 = vld.sshfl [vmem:[#allocation1] sm:$0xff pattern:$0x75316420]  ;;  %v1054_v2 = vld.sshfl [vmem:[#allocation1 + $0x8] sm:$0xff pattern:$0x75316420] }
  0x52   : > { %v3634_v3 = vpack.i.bf16 %v1054_v2, %v1053_v1  ;;  %1112 = vst [vmem:[#allocation1] ss:$2 sm:$0xff] %v1044_v0 }
  0x54   : > { %3635 = vrot.lane.b32.xlu0 %v3634_v3, %s3803_s22  ;;  %v3477_v3 = vld [vmem:[%s3836_s17 + $0x8] sm:$0xf] }
  0x59   : > { %v1113_v4 = vld.sshfl [vmem:[#allocation1] sm:$0xff pattern:$0x75316420]  ;;  %v1114_v5 = vld.sshfl [vmem:[#allocation1 + $0x8] sm:$0xff pattern:$0x75316420] }
  0x5a   : > { %v3639_v6 = vpack.i.bf16 %v1114_v5, %v1113_v4  ;;  %1169 = vst [vmem:[#allocation1] ss:$2 sm:$0xff] %v1044_v0 }
  0x5c   : > { %3640 = vrot.lane.b32.xlu0 %v3639_v6, %s3804_s23 }
  0x61   : > { %v1170_v7 = vld.sshfl [vmem:[#allocation1] sm:$0xff pattern:$0x75316420]  ;;  %v1171_v8 = vld.sshfl [vmem:[#allocation1 + $0x8] sm:$0xff pattern:$0x75316420] }
  0x62   : > { %v3644_v9 = vpack.i.bf16 %v1171_v8, %v1170_v7  ;;  %1226 = vst [vmem:[#allocation1] ss:$2 sm:$0xff] %v1044_v0 }
  0x64   : > { %3645 = vrot.lane.b32.xlu1 %v3644_v9, %s3805_s26 }
  0x69   : > { %v1227_v10 = vld.sshfl [vmem:[#allocation1] sm:$0xff pattern:$0x75316420]  ;;  %v1228_v11 = vld.sshfl [vmem:[#allocation1 + $0x8] sm:$0xff pattern:$0x75316420] }
  0x6a   : > { %v3649_v12 = vpack.i.bf16 %v1228_v11, %v1227_v10  ;;  %1285 = vst [vmem:[#allocation1] ss:$2 sm:$0xff] %v1044_v0 }
  0x6c   : > { %3650 = vrot.lane.b32.xlu1 %v3649_v12, %s3806_s28 }
  0x71   : > { %v4009_v13 = vld.sshfl [vmem:[#allocation1] sm:$0xff pattern:$0x75316420]  ;;  %v4011_v14 = vld.sshfl [vmem:[#allocation1 + $0x8] sm:$0xff pattern:$0x75316420] }
  0x72   : > { %1329 = vst [vmem:[#allocation1] ss:$2 sm:$0xff] %v1044_v0  ;;  %v1290_v50 = vpack.c.bf16 %v4009_v13, %v4009_v13  ;;  %v1291_v51 = vpack.c.bf16 %v4011_v14, %v4011_v14 }
  0x74   : > { %v4062_v61 = vsel %vm1073_vm1, %v1290_v50, 0  ;;  %v4065_v62 = vsel %vm1073_vm1, %v1291_v51, 0 }
  0x79   : > { %v1330_v15 = vld.sshfl [vmem:[#allocation1] sm:$0xff pattern:$0x75316420]  ;;  %v1331_v16 = vld.sshfl [vmem:[#allocation1 + $0x8] sm:$0xff pattern:$0x75316420] }
  0x7a   : > { %1386 = vst [vmem:[#allocation1] ss:$2 sm:$0xff] %v1044_v0  ;;  %v3654_v17 = vpack.i.bf16 %v1331_v16, %v1330_v15 }
  0x7c   : > { %3655 = vrot.lane.b32.xlu2 %v3654_v17, %s3807_s1 }
  0x81   : > { %v1387_v18 = vld.sshfl [vmem:[#allocation1] sm:$0xff pattern:$0x75316420]  ;;  %v1388_v19 = vld.sshfl [vmem:[#allocation1 + $0x8] sm:$0xff pattern:$0x75316420] }
  0x82   : > { %1443 = vst [vmem:[#allocation1] ss:$2 sm:$0xff] %v1044_v0  ;;  %v3659_v20 = vpack.i.bf16 %v1388_v19, %v1387_v18 }
  0x84   : > { %3660 = vrot.lane.b32.xlu2 %v3659_v20, %s3808_s2 }
  0x89   : > { %v1444_v21 = vld.sshfl [vmem:[#allocation1] sm:$0xff pattern:$0x75316420]  ;;  %v1445_v22 = vld.sshfl [vmem:[#allocation1 + $0x8] sm:$0xff pattern:$0x75316420] }
  0x8a   : > { %v3664_v23 = vpack.i.bf16 %v1445_v22, %v1444_v21  ;;  %1500 = vst [vmem:[#allocation1] ss:$2 sm:$0xff] %v1044_v0 }
  0x8c   : > { %3665 = vrot.lane.b32.xlu0 %v3664_v23, %s4637_s7  ;;  %s4669_s7 = sld [smem:[#allocation19_spill]] }
  0x91   : > { %v1501_v24 = vld.sshfl [vmem:[#allocation1] sm:$0xff pattern:$0x75316420]  ;;  %v1502_v25 = vld.sshfl [vmem:[#allocation1 + $0x8] sm:$0xff pattern:$0x75316420] }
  0x92   : > { %v3669_v26 = vpack.i.bf16 %v1502_v25, %v1501_v24 }
  0x94   : > { %3670 = vrot.lane.b32.xlu1 %v3669_v26, %s4636_s10  ;;  %v3480_v26 = vld [vmem:[%s3836_s17 + $0xc] sm:$0xf]  ;;  %s4668_s10 = sld [smem:[#allocation15_spill]] }
  0xc6   : > { %v3636_v29 = vpop.permute.xlu0 %3635 }
  0xc7   : > { %v3638_v30 = vunpack.i.h.bf16 %v3636_v29  ;;  %v3637_v31 = vunpack.i.l.bf16 %v3636_v29  ;;  %v1557_v29 = vld [vmem:[%s3841_s21] sm:$0xff] }
  0xc9   : > { %v1065_v32 = vsel %vm1063_vm0, %v3638_v30, %v3637_v31  ;;  %v1064_v33 = vsel %vm1063_vm0, %v3637_v31, %v3638_v30  ;;  %v3811_v30 = vmov 0   ;;  %v3486_v31 = vld [vmem:[%s3836_s17 + $0x14] sm:$0xf] }
  0xca   : > { %v1067_v34 = vpack.c.bf16 %v1065_v32, %v1065_v32  ;;  %v1068_v35 = vpack.c.bf16 %v1064_v33, %v1064_v33  ;;  %3674 = vset.pattern.permute.xlu2 %v3811_v30  ;;  %3675 = vset.pattern.permute.xlu0 %v3811_v30  ;;  %v1720_v32 = vld [vmem:[%s3866_s14] sm:$0xff]  ;;  %v3489_v33 = vld [vmem:[%s3836_s17 + $0x18] sm:$0xf] }
  0xcb   : > { %1560 = vperm.xlu2 %3674, %v1557_v29   ;;  %3676 = vset.pattern.permute.xlu1 %v3811_v30 }
  0xcc   : > { %v4025_v36 = vsel %vm1073_vm1, %v1067_v34, 0  ;;  %v4028_v37 = vsel %vm1073_vm1, %v1068_v35, 0 }
  0xcd   : > { %1087 = vmatpush.bf16.msra.mxu0 %v4025_v36  ;;  %1100 = vmatpush.bf16.msra.mxu1 %v4028_v37 }
  0xce   : > { %v3641_v39 = vpop.permute.xlu0 %3640 }
  0xcf   : > { %v3643_v40 = vunpack.i.h.bf16 %v3641_v39  ;;  %v3642_v41 = vunpack.i.l.bf16 %v3641_v39 }
  0xd0   : > { %3472 = vmatmul.msk.bf16.vlgmr.msra.gmra.mxu0 %vm4628_vm2, %v1066_v38  ;;  %3473 = vmatmul.msk.bf16.vlgmr.msra.gmra.mxu1 %vm4628_vm2, %v1066_v38 }
  0xd1   : > { %v1123_v42 = vsel %vm1121_vm3, %v3643_v40, %v3642_v41  ;;  %v1122_v43 = vsel %vm1121_vm3, %v3642_v41, %v3643_v40 }
  0xd2   : > { %v1126_v44 = vpack.c.bf16 %v1123_v42, %v1123_v42  ;;  %v1127_v45 = vpack.c.bf16 %v1122_v43, %v1122_v43 }
  0xd3   : > { %1723 = vperm.xlu2 %3674, %v1720_v32  }
  0xd4   : > { %v4041_v46 = vsel %vm1073_vm1, %v1126_v44, 0  ;;  %v4044_v47 = vsel %vm1073_vm1, %v1127_v45, 0  ;;  %v3492_v45 = vld [vmem:[%s3836_s17 + $0x1c] sm:$0xf] }
  0xd5   : > { %1144 = vmatpush.bf16.msra.mxu2 %v4041_v46  ;;  %1157 = vmatpush.bf16.msra.mxu3 %v4044_v47 }
  0xd6   : > { %v3646_v49 = vpop.permute.xlu1 %3645  ;;  %v3656_v52 = vpop.permute.xlu2 %3655 }
  0xd7   : > { %v3648_v53 = vunpack.i.h.bf16 %v3646_v49  ;;  %v3647_v54 = vunpack.i.l.bf16 %v3646_v49  ;;  %v3658_v55 = vunpack.i.h.bf16 %v3656_v52  ;;  %v3657_v56 = vunpack.i.l.bf16 %v3656_v52 }
  0xd8   : > { %3475 = vmatmul.msk.bf16.vlgmr.msra.gmra.mxu2 %vm4628_vm2, %v3474_v48  ;;  %3476 = vmatmul.msk.bf16.vlgmr.msra.gmra.mxu3 %vm4628_vm2, %v3474_v48 }
  0xd9   : > { %v1180_v57 = vsel %vm1178_vm4, %v3648_v53, %v3647_v54  ;;  %v1179_v58 = vsel %vm1178_vm4, %v3647_v54, %v3648_v53  ;;  %v1339_v63 = vsel %vm1338_vm5, %v3657_v56, %v3658_v55  ;;  %v1340_v0 = vsel %vm1338_vm5, %v3658_v55, %v3657_v56 }
  0xda   : > { %v1183_v59 = vpack.c.bf16 %v1180_v57, %v1180_v57  ;;  %v1184_v60 = vpack.c.bf16 %v1179_v58, %v1179_v58  ;;  %v1343_v5 = vpack.c.bf16 %v1339_v63, %v1339_v63  ;;  %v1344_v6 = vpack.c.bf16 %v1340_v0, %v1340_v0  ;;  %v3495_v57 = vld [vmem:[%s3836_s17 + $0x20] sm:$0xf] }
  0xdc   : > { %v4072_v1 = vsel %vm1073_vm1, %v1183_v59, 0  ;;  %v4075_v2 = vsel %vm1073_vm1, %v1184_v60, 0  ;;  %v4095_v20 = vsel %vm1073_vm1, %v1343_v5, 0  ;;  %v4098_v21 = vsel %vm1073_vm1, %v1344_v6, 0 }
  0xdd   : > { %1201 = vmatpush.bf16.msrb.mxu0 %v4072_v1  ;;  %1214 = vmatpush.bf16.msrb.mxu1 %v4075_v2  ;;  %4659 = vst [vmem:[#allocation22_spill] sm:$0xff] %v4098_v21 }
  0xde   : > { %v3651_v4 = vpop.permute.xlu1 %3650  ;;  %v3661_v7 = vpop.permute.xlu2 %3660 }
  0xdf   : > { %v3653_v8 = vunpack.i.h.bf16 %v3651_v4  ;;  %v3652_v9 = vunpack.i.l.bf16 %v3651_v4  ;;  %v3663_v10 = vunpack.i.h.bf16 %v3661_v7  ;;  %v3662_v11 = vunpack.i.l.bf16 %v3661_v7 }
  0xe0   : > { %3478 = vmatmul.msk.bf16.vlgmr.msrb.gmra.mxu0 %vm4628_vm2, %v3477_v3  ;;  %3479 = vmatmul.msk.bf16.vlgmr.msrb.gmra.mxu1 %vm4628_vm2, %v3477_v3 }
  0xe1   : > { %1308 = vmatpush.bf16.msra.mxu0 %v4062_v61  ;;  %1321 = vmatpush.bf16.msra.mxu1 %v4065_v62  ;;  %v1237_v12 = vsel %vm1235_vm6, %v3653_v8, %v3652_v9  ;;  %v1236_v13 = vsel %vm1235_vm6, %v3652_v9, %v3653_v8  ;;  %v1396_v14 = vsel %vm1395_vm7, %v3662_v11, %v3663_v10 }
  0xe2   : > { %v1397_v15 = vsel %vm1395_vm7, %v3663_v10, %v3662_v11  ;;  %v1240_v16 = vpack.c.bf16 %v1237_v12, %v1237_v12  ;;  %v1241_v17 = vpack.c.bf16 %v1236_v13, %v1236_v13  ;;  %v1400_v18 = vpack.c.bf16 %v1396_v14, %v1396_v14  ;;  %v1045_v14 = vld [vmem:[%s3826_s9] sm:$0xff] }
  0xe3   : > { %v1401_v19 = vpack.c.bf16 %v1397_v15, %v1397_v15  ;;  %v1046_v15 = vld [vmem:[%s3826_s9 + $0x8] sm:$0xff]  ;;  %v4170_v29 = vperm.slane %v1045_v14, 0 }
  0xe4   : > { %v4101_v22 = vsel %vm1073_vm1, %v1240_v16, 0  ;;  %v4104_v23 = vsel %vm1073_vm1, %v1241_v17, 0  ;;  %v4107_v24 = vsel %vm1073_vm1, %v1400_v18, 0  ;;  %v4166_v18 = vperm.slane %v1045_v14, 1 }
  0xe5   : > { %v4110_v25 = vsel %vm1073_vm1, %v1401_v19, 0  ;;  %1258 = vmatpush.bf16.msrb.mxu2 %v4101_v22  ;;  %1271 = vmatpush.bf16.msrb.mxu3 %v4104_v23  ;;  %v4168_v19 = vperm.slane %v1046_v15, 1  ;;  %v4172_v30 = vperm.slane %v1046_v15, 0 }
  0xe6   : > { %1418 = vmatpush.bf16.msrb.mxu0 %v4107_v24  ;;  %1431 = vmatpush.bf16.msrb.mxu1 %v4110_v25 }
  0xe8   : > { %3481 = vmatmul.msk.bf16.vlgmr.msrb.gmra.mxu2 %vm4628_vm2, %v3480_v26  ;;  %3482 = vmatmul.msk.bf16.vlgmr.msrb.gmra.mxu3 %vm4628_vm2, %v3480_v26 }
  0xe9   : > { %1361 = vmatpush.bf16.msra.mxu2 %v4095_v20  ;;  %1374 = vmatpush.bf16.msra.mxu3 %v4098_v21 }
  0xf0   : > { %3484 = vmatmul.msk.bf16.vlgmr.msra.gmra.mxu0 %vm4628_vm2, %v3483_v27  ;;  %3485 = vmatmul.msk.bf16.vlgmr.msra.gmra.mxu1 %vm4628_vm2, %v3483_v27 }
  0xf8   : > { %3487 = vmatmul.msk.bf16.vlgmr.msra.gmra.mxu2 %vm4628_vm2, %v3486_v31  ;;  %3488 = vmatmul.msk.bf16.vlgmr.msra.gmra.mxu3 %vm4628_vm2, %v3486_v31 }
  0xfe   : > { %v3666_v34 = vpop.permute.xlu0 %3665 }
  0xff   : > { %v3668_v35 = vunpack.i.h.bf16 %v3666_v34  ;;  %v3667_v38 = vunpack.i.l.bf16 %v3666_v34  ;;  %v4178_v34 = vperm.slane %v1046_v15, 2 }
 0x100   : > { %3490 = vmatmul.msk.bf16.vlgmr.msrb.gmra.mxu0 %vm4628_vm2, %v3489_v33  ;;  %3491 = vmatmul.msk.bf16.vlgmr.msrb.gmra.mxu1 %vm4628_vm2, %v3489_v33  ;;  %v4176_v33 = vperm.slane %v1045_v14, 2 }
 0x101   : > { %v1453_v39 = vsel %vm4635_vm8, %v3667_v38, %v3668_v35  ;;  %v1454_v40 = vsel %vm4635_vm8, %v3668_v35, %v3667_v38 }
 0x102   : > { %v1457_v41 = vpack.c.bf16 %v1453_v39, %v1453_v39  ;;  %v1458_v42 = vpack.c.bf16 %v1454_v40, %v1454_v40  ;;  %v4182_v39 = vperm.slane %v1045_v14, 3  ;;  %v4184_v40 = vperm.slane %v1046_v15, 3 }
 0x104   : > { %v4138_v43 = vsel %vm1073_vm1, %v1457_v41, 0  ;;  %v4141_v44 = vsel %vm1073_vm1, %v1458_v42, 0  ;;  %v1568_v41 = vld [vmem:[%s3851_s29] sm:$0xff] }
 0x105   : > { %4660 = vst [vmem:[#allocation23_spill] sm:$0xff] %v4138_v43  ;;  %1475 = vmatpush.bf16.msrb.mxu2 %v4138_v43  ;;  %1488 = vmatpush.bf16.msrb.mxu3 %v4141_v44 }
 0x106   : > { %4661 = vst [vmem:[#allocation24_spill] sm:$0xff] %v4141_v44  ;;  %v3671_v48 = vpop.permute.xlu1 %3670  ;;  %1571 = vperm.xlu0 %3675, %v1568_v41   ;;  %v4208_v41 = vld [vmem:[%s3826_s9 + $0x10] ss:$0 sm:$0xff] }
 0x107   : > { %v3673_v49 = vunpack.i.h.bf16 %v3671_v48  ;;  %v3672_v50 = vunpack.i.l.bf16 %v3671_v48 }
 0x108   : > { %3493 = vmatmul.msk.bf16.vlgmr.msrb.gmra.mxu2 %vm4628_vm2, %v3492_v45  ;;  %3494 = vmatmul.msk.bf16.vlgmr.msrb.gmra.mxu3 %vm4628_vm2, %v3492_v45 }
 0x109   : > { %v1510_v51 = vsel %vm4634_vm9, %v3672_v50, %v3673_v49  ;;  %v1511_v52 = vsel %vm4634_vm9, %v3673_v49, %v3672_v50 }
 0x10a   : > { %v1514_v53 = vpack.c.bf16 %v1510_v51, %v1510_v51  ;;  %v1515_v54 = vpack.c.bf16 %v1511_v52, %v1511_v52 }
 0x10c   : > { %v4154_v55 = vsel %vm1073_vm1, %v1514_v53, 0  ;;  %v4157_v56 = vsel %vm1073_vm1, %v1515_v54, 0 }
 0x10d   : > { %1532 = vmatpush.bf16.msra.mxu0 %v4154_v55  ;;  %1545 = vmatpush.bf16.msra.mxu1 %v4157_v56 }
 0x110   : > { %3496 = vmatmul.msk.bf16.vlgmr.msra.gmra.mxu0 %vm4628_vm2, %v3495_v57  ;;  %3497 = vmatmul.msk.bf16.vlgmr.msra.gmra.mxu1 %vm4628_vm2, %v3495_v57 }
 0x14d   : > { %v1089_v58 = vpop.f32.mrf.mxu0  ;;  %v1102_v59 = vpop.f32.mrf.mxu1 }
 0x14e   : > { %v1108_v35 = vmul.f32 %v4170_v29, %v1089_v58  ;;  %v1109_v38 = vmul.f32 %v4172_v30, %v1102_v59 }
 0x155   : > { %v1091_v60 = vpop.f32.mrf.mxu0  ;;  %v1104_v63 = vpop.f32.mrf.mxu1 }
 0x156   : > { %v4191_v60 = vperm.slane %v1045_v14, 5  ;;  %v4193_v63 = vperm.slane %v1046_v15, 5 }
 0x15b   : > { %v1146_v0 = vpop.f32.mrf.mxu2  ;;  %v1159_v3 = vpop.f32.mrf.mxu3 }
 0x15c   : > { %v1165_v31 = vmul.f32 %v4166_v18, %v1146_v0  ;;  %v1166_v32 = vmul.f32 %v4168_v19, %v1159_v3 }
 0x15d   : > { %v1203_v4 = vpop.f32.mrf.mxu0  ;;  %v1216_v5 = vpop.f32.mrf.mxu1 }
 0x15e   : > { %v1167_v48 = vadd.f32 %v1165_v31, %v1108_v35  ;;  %v1168_v49 = vadd.f32 %v1166_v32, %v1109_v38  ;;  %v1222_v50 = vmul.f32 %v4176_v33, %v1203_v4  ;;  %v1223_v51 = vmul.f32 %v4178_v34, %v1216_v5 }
 0x160   : > { %v1224_v58 = vadd.f32 %v1222_v50, %v1167_v48  ;;  %v1225_v59 = vadd.f32 %v1223_v51, %v1168_v49 }
 0x163   : > { %v1148_v6 = vpop.f32.mrf.mxu2  ;;  %v1161_v7 = vpop.f32.mrf.mxu3 }
 0x165   : > { %v1205_v8 = vpop.f32.mrf.mxu0  ;;  %v1218_v9 = vpop.f32.mrf.mxu1 }
 0x166   : > { %v4197_v8 = vperm.slane %v1045_v14, 6  ;;  %v4199_v9 = vperm.slane %v1046_v15, 6 }
 0x16b   : > { %v1260_v10 = vpop.f32.mrf.mxu2  ;;  %v1273_v11 = vpop.f32.mrf.mxu3 }
 0x16c   : > { %v1279_v54 = vmul.f32 %v4182_v39, %v1260_v10  ;;  %v1280_v57 = vmul.f32 %v4184_v40, %v1273_v11 }
 0x16d   : > { %v1310_v12 = vpop.f32.mrf.mxu0  ;;  %v1323_v13 = vpop.f32.mrf.mxu1 }
 0x16e   : > { %v1281_v0 = vadd.f32 %v1279_v54, %v1224_v58  ;;  %v1282_v3 = vadd.f32 %v1280_v57, %v1225_v59  ;;  %v1561_v59 = vpop.permute.xlu2 %1560 }
 0x173   : > { %v1262_v16 = vpop.f32.mrf.mxu2  ;;  %v1275_v17 = vpop.f32.mrf.mxu3 }
 0x174   : > { %v1327_v16 = vadd.f32 %v1310_v12, %v1281_v0  ;;  %v1328_v17 = vadd.f32 %v1323_v13, %v1282_v3 }
 0x175   : > { %v1312_v26 = vpop.f32.mrf.mxu0  ;;  %v1325_v27 = vpop.f32.mrf.mxu1 }
 0x176   : > { %v4201_v26 = vperm.slane %v1045_v14, 7  ;;  %v4203_v27 = vperm.slane %v1046_v15, 7 }
 0x17b   : > { %v1363_v42 = vpop.f32.mrf.mxu2  ;;  %v1376_v45 = vpop.f32.mrf.mxu3 }
 0x17c   : > { %v1382_v4 = vmul.f32 %v4191_v60, %v1363_v42  ;;  %v1383_v5 = vmul.f32 %v4193_v63, %v1376_v45  ;;  %v4211_v42 = vld [vmem:[%s3826_s9 + $0x18] ss:$0 sm:$0xff] }
 0x17d   : > { %v1420_v52 = vpop.f32.mrf.mxu0  ;;  %v1433_v53 = vpop.f32.mrf.mxu1 }
 0x17e   : > { %v1384_v31 = vadd.f32 %v1382_v4, %v1327_v16  ;;  %v1385_v32 = vadd.f32 %v1383_v5, %v1328_v17  ;;  %v1439_v35 = vmul.f32 %v4197_v8, %v1420_v52  ;;  %v1440_v38 = vmul.f32 %v4199_v9, %v1433_v53 }
 0x180   : > { %v1441_v49 = vadd.f32 %v1439_v35, %v1384_v31  ;;  %v1442_v50 = vadd.f32 %v1440_v38, %v1385_v32  ;;  %v1565_v31 = vld [vmem:[%s3846_s25] sm:$0xf]  ;;  %v1572_v38 = vpop.permute.xlu0 %1571 }
 0x181   : > { %v1616_v32 = vld [vmem:[%s4662_s8] sm:$0xff]  ;;  %s4673_s8 = sld [smem:[#allocation17_spill]] }
 0x182   : > { %1619 = vperm.xlu1 %3676, %v1616_v32   ;;  %v1728_v35 = vld [vmem:[%s3871_s19] sm:$0xff] }
 0x183   : > { %v1365_v6 = vpop.f32.mrf.mxu2  ;;  %v1378_v7 = vpop.f32.mrf.mxu3 }
 0x185   : > { %v1422_v10 = vpop.f32.mrf.mxu0  ;;  %v1435_v11 = vpop.f32.mrf.mxu1 }
 0x18a   : > { %1731 = vperm.xlu1 %3676, %v1728_v35  }
 0x18b   : > { %v1477_v45 = vpop.f32.mrf.mxu2  ;;  %v1490_v48 = vpop.f32.mrf.mxu3 }
 0x18c   : > { %v1496_v12 = vmul.f32 %v4201_v26, %v1477_v45  ;;  %v1497_v13 = vmul.f32 %v4203_v27, %v1490_v48  ;;  %v4233_v45 = vld [vmem:[%s3831_s13] sm:$0xff] }
 0x18d   : > { %v1534_v14 = vpop.f32.mrf.mxu0  ;;  %v1547_v15 = vpop.f32.mrf.mxu1 }
 0x18e   : > { %v1498_v51 = vadd.f32 %v1496_v12, %v1441_v49  ;;  %v1499_v54 = vadd.f32 %v1497_v13, %v1442_v50  ;;  %v1553_v52 = vmul.f32 %v4208_v41, %v1534_v14  ;;  %v1554_v53 = vmul.f32 %v4211_v42, %v1547_v15  ;;  %v4236_v49 = vld [vmem:[%s3831_s13 + $0x8] sm:$0xff] }
 0x190   : > { %v1555_v57 = vadd.f32 %v1553_v52, %v1498_v51  ;;  %v1556_v58 = vadd.f32 %v1554_v53, %v1499_v54 }
 0x192   : > { %v4217_v0 = vadd.f32 %v1561_v59, %v1555_v57  ;;  %v4219_v3 = vadd.f32 %v1561_v59, %v1556_v58  ;;  %v1615_v59 = vld [vmem:[%s4663_s3] sm:$0xf]  ;;  %s4670_s3 = smov 112  }
 0x193   : > { %v1479_v6 = vpop.f32.mrf.mxu2  ;;  %v1492_v7 = vpop.f32.mrf.mxu3 }
 0x194   : > { %v1566_v4 = vpack.c.bf16 %v4217_v0, %v4217_v0  ;;  %v1567_v5 = vpack.c.bf16 %v4219_v3, %v4219_v3  ;;  %v3812_v6 = vmov 8.0  }
 0x195   : > { %v1536_v10 = vpop.f32.mrf.mxu0  ;;  %v1549_v11 = vpop.f32.mrf.mxu1  ;;  %3719 = vrcp.f32 %v3812_v6 }
 0x196   : > { %v1580_v16 = vsel %vm1578_vm10, %v1566_v4, 0  ;;  %v1583_v17 = vsel %vm1578_vm10, %v1567_v5, 0 }
 0x197   : > { %1592 = vmatpush.bf16.msra.mxu2 %v1580_v16  ;;  %1605 = vmatpush.bf16.msra.mxu3 %v1583_v17 }
 0x19a   : > { %3498 = vmatmul.msk.bf16.vlgmr.msra.gmra.mxu2 %vm1574_vm11, %v1565_v31  ;;  %3499 = vmatmul.msk.bf16.vlgmr.msra.gmra.mxu3 %vm1574_vm11, %v1565_v31 }
 0x19b   : > { %v3720_v7 = vpop.eup %3719 }
 0x19c   : > { %v1670_v4 = vmul.f32 8.0, %v3720_v7  ;;  %vm1674_vm12 = vweird.f32 %v3720_v7 }
 0x19e   : > { %v1671_v11 = vsub.f32 1.0, %v1670_v4 }
 0x1f4   : > { %v1620_v5 = vpop.permute.xlu1 %1619 }
 0x21d   : > { %v1594_v48 = vpop.f32.mrf.mxu2  ;;  %v1607_v50 = vpop.f32.mrf.mxu3 }
 0x21e   : > { %v1595_v12 = vadd.f32 %v1594_v48, %v1572_v38  ;;  %v1608_v13 = vadd.f32 %v1607_v50, %v1572_v38  ;;  %v1672_v38 = vmul.f32 %v3720_v7, %v1671_v11 }
 0x220   : > { %v1611_v14 = vmul.f32 %v1595_v12, %v4233_v45  ;;  %v1612_v15 = vmul.f32 %v1608_v13, %v4236_v49 }
 0x222   : > { %v1613_v51 = vpack.c.bf16 %v1611_v14, %v1611_v14  ;;  %v1614_v54 = vpack.c.bf16 %v1612_v15, %v1612_v15  ;;  %v1673_v14 = vadd.f32 %v3720_v7, %v1672_v38 }
 0x224   : > { %v1626_v52 = vsel %vm1578_vm10, %v1613_v51, 0  ;;  %v1629_v53 = vsel %vm1578_vm10, %v1614_v54, 0 }
 0x225   : > { %v1596_v57 = vpop.f32.mrf.mxu2  ;;  %v1609_v58 = vpop.f32.mrf.mxu3  ;;  %1638 = vmatpush.bf16.msrb.mxu0 %v1626_v52  ;;  %1651 = vmatpush.bf16.msrb.mxu1 %v1629_v53 }
 0x226   : > { %v4245_v58 = vsel %vm1674_vm12, %v3720_v7, %v1673_v14 }
 0x227   : > { %4664 = vst [vmem:[#allocation25_spill] sm:$0xff] %v4245_v58 }
 0x228   : > { %3500 = vmatmul.msk.bf16.vlgmr.msrb.gmra.mxu0 %vm1574_vm11, %v1615_v59  ;;  %3501 = vmatmul.msk.bf16.vlgmr.msrb.gmra.mxu1 %vm1574_vm11, %v1615_v59 }
 0x2a5   : > { %v1640_v10 = vpop.f32.mrf.mxu0  ;;  %v1653_v16 = vpop.f32.mrf.mxu1 }
 0x2a6   : > { %v1641_v17 = vadd.f32 %v1640_v10, %v1620_v5  ;;  %v1654_v31 = vadd.f32 %v1653_v16, %v1620_v5 }
 0x2a8   : > { %v1657_v32 = vrot.slane %v1641_v17, 4  ;;  %v1663_v35 = vrot.slane %v1654_v31, 4 }
 0x2aa   : > { %v1658_v48 = vadd.f32 %v1657_v32, %v1641_v17  ;;  %v1664_v50 = vadd.f32 %v1663_v35, %v1654_v31 }
 0x2ac   : > { %v1659_v12 = vrot.slane %v1658_v48, 2  ;;  %v1665_v13 = vrot.slane %v1664_v50, 2 }
 0x2ad   : > { %v1642_v15 = vpop.f32.mrf.mxu0  ;;  %v1655_v51 = vpop.f32.mrf.mxu1 }
 0x2ae   : > { %v1660_v54 = vadd.f32 %v1659_v12, %v1658_v48  ;;  %v1666_v52 = vadd.f32 %v1665_v13, %v1664_v50 }
 0x2b0   : > { %v1661_v53 = vrot.slane %v1660_v54, 1  ;;  %v1667_v57 = vrot.slane %v1666_v52, 1 }
 0x2b2   : > { %v1662_v59 = vadd.f32 %v1661_v53, %v1660_v54  ;;  %v1668_v6 = vadd.f32 %v1667_v57, %v1666_v52 }
 0x2b4   : > { %v1676_v4 = vmul.f32 %v4245_v58, %v1662_v59  ;;  %v1677_v5 = vmul.f32 %v4245_v58, %v1668_v6 }
 0x2b6   : > { %v1678_v10 = vsub.f32 %v1641_v17, %v1676_v4  ;;  %v1679_v11 = vsub.f32 %v1654_v31, %v1677_v5 }
 0x2b8   : > { %v1680_v16 = vmul.f32 %v1678_v10, %v1678_v10  ;;  %v1681_v32 = vmul.f32 %v1679_v11, %v1679_v11 }
 0x2ba   : > { %v1682_v35 = vrot.slane %v1680_v16, 4  ;;  %v1688_v38 = vrot.slane %v1681_v32, 4 }
 0x2bc   : > { %v1683_v15 = vadd.f32 %v1682_v35, %v1680_v16  ;;  %v1689_v48 = vadd.f32 %v1688_v38, %v1681_v32 }
 0x2be   : > { %v1684_v12 = vrot.slane %v1683_v15, 2  ;;  %v1690_v50 = vrot.slane %v1689_v48, 2 }
 0x2c0   : > { %v1685_v13 = vadd.f32 %v1684_v12, %v1683_v15  ;;  %v1691_v51 = vadd.f32 %v1690_v50, %v1689_v48 }
 0x2c2   : > { %v1686_v7 = vrot.slane %v1685_v13, 1  ;;  %v1692_v14 = vrot.slane %v1691_v51, 1 }
 0x2c4   : > { %v1687_v54 = vadd.f32 %v1686_v7, %v1685_v13  ;;  %v1693_v52 = vadd.f32 %v1692_v14, %v1691_v51  ;;  %v1724_v14 = vpop.permute.xlu2 %1723 }
 0x2c6   : > { %v1694_v53 = vmul.f32 %v1687_v54, %v4245_v58  ;;  %v1695_v57 = vmul.f32 %v1693_v52, %v4245_v58 }
 0x2c8   : > { %v1696_v17 = vadd.f32 1e-05, %v1694_v53  ;;  %v1697_v31 = vadd.f32 1e-05, %v1695_v57  ;;  %v1732_v53 = vpop.permute.xlu1 %1731 }
 0x2ca   : > { %3721 = vrsqrt.f32 %v1696_v17  ;;  %vm1704_vm15 = vweird.f32 %v1696_v17  ;;  %vm1714_vm12 = vweird.f32 %v1697_v31 }
 0x2cb   : > { %3723 = vrsqrt.f32 %v1697_v31 }
 0x2d0   : > { %v3722_v59 = vpop.eup %3721 }
 0x2d1   : > { %v3724_v6 = vpop.eup %3723  ;;  %v1699_v4 = vmul.f32 %v3722_v59, %v1696_v17  ;;  %vm1705_vm13 = vweird.f32 %v3722_v59 }
 0x2d2   : > { %v1709_v5 = vmul.f32 %v3724_v6, %v1697_v31  ;;  %vm1715_vm14 = vweird.f32 %v3724_v6  ;;  %vm1706_vm1 = vmor %vm1704_vm15, %vm1705_vm13 }
 0x2d3   : > { %v1700_v16 = vmul.f32 %v3722_v59, %v1699_v4  ;;  %vm1716_vm2 = vmor %vm1714_vm12, %vm1715_vm14 }
 0x2d4   : > { %v1710_v32 = vmul.f32 %v3724_v6, %v1709_v5 }
 0x2d5   : > { %v1701_v35 = vmul.f32 0.5, %v1700_v16 }
 0x2d6   : > { %v1711_v38 = vmul.f32 0.5, %v1710_v32 }
 0x2d7   : > { %v1702_v15 = vsub.f32 1.5, %v1701_v35 }
 0x2d8   : > { %v1712_v48 = vsub.f32 1.5, %v1711_v38 }
 0x2d9   : > { %v1703_v12 = vmul.f32 %v3722_v59, %v1702_v15 }
 0x2da   : > { %v1713_v50 = vmul.f32 %v3724_v6, %v1712_v48 }
 0x2db   : > { %v1707_v13 = vsel %vm1706_vm1, %v3722_v59, %v1703_v12 }
 0x2dc   : > { %v1718_v51 = vmul.f32 %v1707_v13, %v1678_v10  ;;  %v1717_v7 = vsel %vm1716_vm2, %v3724_v6, %v1713_v50 }
 0x2dd   : > { %v1719_v54 = vmul.f32 %v1717_v7, %v1679_v11 }
 0x2de   : > { %v1726_v52 = vmul.f32 %v1724_v14, %v1718_v51 }
 0x2df   : > { %v1727_v57 = vmul.f32 %v1724_v14, %v1719_v54 }
 0x2e0   : > { %v1734_v4 = vadd.f32 %v1732_v53, %v1726_v52 }
 0x2e1   : > { %v1735_v5 = vadd.f32 %v1732_v53, %v1727_v57 }
 0x2e2   : > { %v4252_v16 = vadd.f32 %v1734_v4, %v4217_v0 }
 0x2e3   : > { %v4255_v32 = vadd.f32 %v1735_v5, %v4219_v3 }
 0x2e4   : > { %v4258_v17 = vmul.f32 0.70710677, %v4252_v16 }
 0x2e5   : > { %v4261_v31 = vmul.f32 0.70710677, %v4255_v32 }
 0x2e6   : > { %v1742_v10 = vmul.f32 %v4258_v17, %v4258_v17 }
 0x2e7   : > { %v1782_v11 = vmul.f32 %v4261_v31, %v4261_v31 }
 0x2e8   : > { %v1743_v59 = vmin.f32 %v1742_v10, 16.0 }
 0x2e9   : > { %v1783_v6 = vmin.f32 %v1782_v11, 16.0 }
 0x2ea   : > { %v1744_v35 = vmul.f32 2.1237322e-06, %v1743_v59  ;;  %v1755_v0 = vmul.f32 3.8918573e-05, %v1743_v59 }
 0x2eb   : > { %v1784_v38 = vmul.f32 2.1237322e-06, %v1783_v6  ;;  %v1795_v15 = vmul.f32 3.8918573e-05, %v1783_v6 }
 0x2ec   : > { %v1745_v3 = vadd.f32 0.00028619796, %v1744_v35  ;;  %v1756_v48 = vadd.f32 0.001143296, %v1755_v0 }
 0x2ed   : > { %v1785_v12 = vadd.f32 0.00028619796, %v1784_v38  ;;  %v1796_v50 = vadd.f32 0.001143296, %v1795_v15 }
 0x2ee   : > { %v1746_v13 = vmul.f32 %v1745_v3, %v1743_v59  ;;  %v1757_v51 = vmul.f32 %v1756_v48, %v1743_v59 }
 0x2ef   : > { %v1786_v7 = vmul.f32 %v1785_v12, %v1783_v6  ;;  %v1797_v14 = vmul.f32 %v1796_v50, %v1783_v6 }
 0x2f0   : > { %v1747_v54 = vadd.f32 0.0036580483, %v1746_v13  ;;  %v1758_v52 = vadd.f32 0.014752088, %v1757_v51 }
 0x2f1   : > { %v1798_v53 = vadd.f32 0.014752088, %v1797_v14  ;;  %v1787_v4 = vadd.f32 0.0036580483, %v1786_v7 }
 0x2f2   : > { %v1759_v57 = vmul.f32 %v1758_v52, %v1743_v59  ;;  %v1748_v10 = vmul.f32 %v1747_v54, %v1743_v59 }
 0x2f3   : > { %v1799_v5 = vmul.f32 %v1798_v53, %v1783_v6  ;;  %v1788_v43 = vmul.f32 %v1787_v4, %v1783_v6 }
 0x2f4   : > { %v1760_v11 = vadd.f32 0.112945676, %v1759_v57  ;;  %v1749_v35 = vadd.f32 0.05243302, %v1748_v10 }
 0x2f5   : > { %v1800_v58 = vadd.f32 0.112945676, %v1799_v5  ;;  %v1789_v3 = vadd.f32 0.05243302, %v1788_v43 }
 0x2f6   : > { %v1761_v44 = vmul.f32 %v1760_v11, %v1743_v59  ;;  %v1750_v12 = vmul.f32 %v1749_v35, %v1743_v59 }
 0x2f7   : > { %v1801_v21 = vmul.f32 %v1800_v58, %v1783_v6  ;;  %v1790_v51 = vmul.f32 %v1789_v3, %v1783_v6 }
 0x2f8   : > { %v1762_v0 = vadd.f32 0.4994258, %v1761_v44  ;;  %v1751_v7 = vadd.f32 0.18741608, %v1750_v12 }
 0x2f9   : > { %v1802_v38 = vadd.f32 0.4994258, %v1801_v21  ;;  %v1791_v14 = vadd.f32 0.18741608, %v1790_v51 }
 0x2fa   : > { %v1763_v15 = vmul.f32 %v1762_v0, %v1743_v59  ;;  %v1752_v52 = vmul.f32 %v1751_v7, %v1743_v59 }
 0x2fb   : > { %v1803_v48 = vmul.f32 %v1802_v38, %v1783_v6  ;;  %v1792_v4 = vmul.f32 %v1791_v14, %v1783_v6 }
 0x2fc   : > { %v1764_v50 = vadd.f32 1.0, %v1763_v15  ;;  %v1753_v44 = vadd.f32 1.1283791, %v1752_v52 }
 0x2fd   : > { %v1804_v13 = vadd.f32 1.0, %v1803_v48  ;;  %v1793_v0 = vadd.f32 1.1283791, %v1792_v4 }
 0x2fe   : > { %3725 = vrcp.f32 %v1764_v50  ;;  %v1776_v21 = vand.u32 2147483648, %v1764_v50  ;;  %v1774_v11 = vand.u32 2147483647, %v1764_v50  ;;  %vm1770_vm14 = vweird.f32 %v1764_v50 }
 0x2ff   : > { %3727 = vrcp.f32 %v1804_v13  ;;  %v1816_v35 = vand.u32 2147483648, %v1804_v13  ;;  %v1814_v15 = vand.u32 2147483647, %v1804_v13  ;;  %vm1810_vm1 = vweird.f32 %v1804_v13 }
 0x300   : > { %v1777_v59 = vor.u32 1.1754944e-38, %v1776_v21  ;;  %v1754_v6 = vmul.f32 %v1753_v44, %v4258_v17  ;;  %vm1775_vm12 = vcmp.eq.f32.partialorder %v1774_v11, 8.507059e+37  ;;  %v1794_v14 = vmul.f32 %v1793_v0, %v4261_v31  ;;  %v2984_v11 = vld [vmem:[%s4666_s0] sm:$0xff] }
 0x301   : > { %v1817_v51 = vor.u32 1.1754944e-38, %v1816_v35  ;;  %vm1815_vm8 = vcmp.eq.f32.partialorder %v1814_v15, 8.507059e+37  ;;  %v1738_v21 = vmul.f32 0.5, %v4252_v16  ;;  %v1739_v17 = vmul.f32 0.5, %v4255_v32  ;;  %v2258_v16 = vld [vmem:[%s3881_s30] sm:$0xff] }
 0x302   : > { %v2841_v32 = vld [vmem:[%s3931_s6] sm:$0xff] }
 0x303   : > { %v2315_v35 = vld [vmem:[%s4667_s18] sm:$0xff] }
 0x304   : > { %v3726_v54 = vpop.eup %3725  ;;  %v2887_v0 = vld [vmem:[%s4668_s10] sm:$0xff]  ;;  %s4709_s10 = sld [smem:[#allocation21_spill]] }
 0x305   : > { %v3728_v53 = vpop.eup %3727  ;;  %v1766_v57 = vmul.f32 %v3726_v54, %v1764_v50  ;;  %vm1771_vm2 = vweird.f32 %v3726_v54  ;;  %v3002_v15 = vld [vmem:[%s4671_s5] sm:$0xff]  ;;  %s4681_s5 = sld [smem:[#allocation6_spill]] }
 0x306   : > { %v1806_v58 = vmul.f32 %v3728_v53, %v1804_v13  ;;  %vm1811_vm13 = vweird.f32 %v3728_v53  ;;  %vm1772_vm15 = vmor %vm1770_vm14, %vm1771_vm2 }
 0x307   : > { %v1767_v5 = vsub.f32 1.0, %v1766_v57  ;;  %vm1812_vm9 = vmor %vm1810_vm1, %vm1811_vm13 }
 0x308   : > { %v1807_v10 = vsub.f32 1.0, %v1806_v58 }
 0x309   : > { %v1768_v43 = vmul.f32 %v3726_v54, %v1767_v5 }
 0x30a   : > { %v1808_v38 = vmul.f32 %v3728_v53, %v1807_v10  ;;  %v2830_v10 = vld [vmem:[%s3921_s24] sm:$0xff] }
 0x30b   : > { %v1769_v3 = vadd.f32 %v3726_v54, %v1768_v43  ;;  %v2269_v43 = vld [vmem:[%s4665_s11] sm:$0xff]  ;;  %s3581_s11 = sshll.u32 %s4711_s16, 4 }
 0x30c   : > { %v1809_v48 = vadd.f32 %v3728_v53, %v1808_v38  ;;  %v3010_v38 = vld [vmem:[%s4669_s7] sm:$0xff]  ;;  %s4708_s7 = sld [smem:[#allocation20_spill]]  ;;  %s1042_s0 = scalar_lea.vmem %s3991_s12, %s3581_s11 }
 0x30d   : > { %v1773_v12 = vsel %vm1772_vm15, %v3726_v54, %v1769_v3  ;;  %v2992_v3 = vld [vmem:[%s4673_s8] sm:$0xff]  ;;  %s4682_s8 = sld [smem:[#allocation12_spill]] }
 0x30e   : > { %v1778_v7 = vsel %vm1775_vm12, %v1777_v59, %v1773_v12  ;;  %v1813_v52 = vsel %vm1812_vm9, %v3728_v53, %v1809_v48  ;;  %v3182_v59 = vld [vmem:[%s3976_s20] sm:$0x3] }
 0x30f   : > { %v1779_v57 = vmul.f32 %v1778_v7, %v1754_v6  ;;  %v1818_v4 = vsel %vm1815_vm8, %v1817_v51, %v1813_v52  ;;  %v3281_v12 = vld [vmem:[%s3986_s4] sm:$0x3] }
 0x310   : > { %v1819_v58 = vmul.f32 %v1818_v4, %v1794_v14 }
 0x311   : > { %v3502_v50 = vclamps-f32 %v1779_v57, 1.0 }
 0x312   : > { %v3503_v5 = vclamps-f32 %v1819_v58, 1.0 }
 0x313   : > { %v1822_v13 = vadd.f32 1.0, %v3502_v50 }
 0x314   : > { %v1823_v54 = vadd.f32 1.0, %v3503_v5 }
 0x315   : > { %v4271_v44 = vmul.f32 %v1822_v13, %v1738_v21 }
 0x316   : > { %v4273_v31 = vmul.f32 %v1823_v54, %v1739_v17 }
 0x318   : > { %v3687_v53 = vpack.i.bf16 %v4273_v31, %v4271_v44 }
 0x31a   : > { %3688 = vrot.lane.b32.xlu1 %v3687_v53, %s3804_s23  ;;  %3683 = vrot.lane.b32.xlu0 %v3687_v53, %s3805_s26  ;;  %s4672_s23 = smov 111   ;;  %s4675_s26 = sld [smem:[#allocation10_spill]] }
 0x31b   : > { %3678 = vrot.lane.b32.xlu2 %v3687_v53, %s3803_s22  ;;  %s4674_s22 = sld [smem:[#allocation11_spill]] }
 0x320   : > { %v2412_v6 = vld [vmem:[%s4675_s26] sm:$0xff] }
 0x321   : > { %v2420_v48 = vld [vmem:[%s4674_s22] sm:$0xff] }
 0x322   : > { %3703 = vrot.lane.b32.xlu1 %v3687_v53, %s3807_s1  ;;  %3698 = vrot.lane.b32.xlu0 %v3687_v53, %s3808_s2  ;;  %s4706_s1 = sld [smem:[#allocation13_spill]] }
 0x323   : > { %3693 = vrot.lane.b32.xlu2 %v3687_v53, %s3806_s28  ;;  %s4689_s28 = sld [smem:[#allocation8_spill]] }
 0x324   : > { %s4707_s2 = sld [smem:[#allocation14_spill]] }
 0x32a   : > { %2261 = vperm.xlu1 %3676, %v2258_v16   ;;  %3713 = vrot.lane.b32.xlu0 %v3687_v53, %s4670_s3  ;;  %s4676_s3 = sld [smem:[#allocation5_spill]] }
 0x32b   : > { %3708 = vrot.lane.b32.xlu2 %v3687_v53, %s4672_s23 }
 0x330   : > { %v1832_v21 = vld [vmem:[%s4676_s3] sm:$0xf] }
 0x332   : > { %2844 = vperm.xlu1 %3676, %v2841_v32   ;;  %2833 = vperm.xlu0 %3675, %v2830_v10  }
 0x333   : > { %2272 = vperm.xlu2 %3674, %v2269_v43  }
 0x33a   : > { %2987 = vperm.xlu1 %3676, %v2984_v11   ;;  %2318 = vperm.xlu0 %3675, %v2315_v35  }
 0x33b   : > { %2890 = vperm.xlu2 %3674, %v2887_v0  }
 0x342   : > { %3013 = vperm.xlu1 %3676, %v3010_v38   ;;  %3005 = vperm.xlu0 %3675, %v3002_v15  }
 0x343   : > { %2995 = vperm.xlu2 %3674, %v2992_v3   ;;  %v2023_v3 = vpack.c.bf16 %v4271_v44, %v4271_v44 }
 0x34a   : > { %3185 = vperm.xlu1 %3676, %v3182_v59   ;;  %2423 = vperm.xlu0 %3675, %v2420_v48   ;;  %v2024_v59 = vpack.c.bf16 %v4273_v31, %v4273_v31 }
 0x34b   : > { %2415 = vperm.xlu2 %3674, %v2412_v6  }
 0x353   : > { %3284 = vperm.xlu2 %3674, %v3281_v12  }
 0x375   : > { %v3679_v51 = vpop.permute.xlu2 %3678 }
 0x376   : > { %v3681_v7 = vunpack.i.h.bf16 %v3679_v51  ;;  %v3680_v14 = vunpack.i.l.bf16 %v3679_v51 }
 0x378   : > { %v1831_v52 = vsel %vm1063_vm0, %v3681_v7, %v3680_v14  ;;  %v1830_v57 = vsel %vm1063_vm0, %v3680_v14, %v3681_v7  ;;  %vm4677_vm0 = vcmp.lt.s32.totalorder %v4017_v28, 112 }
 0x379   : > { %v1833_v4 = vpack.c.bf16 %v1831_v52, %v1831_v52  ;;  %v1834_v58 = vpack.c.bf16 %v1830_v57, %v1830_v57 }
 0x37b   : > { %v1839_v50 = vsel %vm1578_vm10, %v1833_v4, 0  ;;  %v1842_v5 = vsel %vm1578_vm10, %v1834_v58, 0 }
 0x37c   : > { %1851 = vmatpush.bf16.msrb.mxu2 %v1839_v50  ;;  %1864 = vmatpush.bf16.msrb.mxu3 %v1842_v5 }
 0x37d   : > { %v3694_v13 = vpop.permute.xlu2 %3693 }
 0x37e   : > { %v3696_v17 = vunpack.i.h.bf16 %v3694_v13  ;;  %v3695_v54 = vunpack.i.l.bf16 %v3694_v13 }
 0x37f   : > { %3504 = vmatmul.msk.bf16.vlgmr.msrb.gmra.mxu2 %vm1574_vm11, %v1832_v21  ;;  %3505 = vmatmul.msk.bf16.vlgmr.msrb.gmra.mxu3 %vm1574_vm11, %v1832_v21 }
 0x380   : > { %v1977_v53 = vsel %vm1235_vm6, %v3696_v17, %v3695_v54  ;;  %v1976_v16 = vsel %vm1235_vm6, %v3695_v54, %v3696_v17  ;;  %v2029_v17 = vsel %vm1578_vm10, %v2023_v3, 0  ;;  %v2032_v54 = vsel %vm1578_vm10, %v2024_v59, 0 }
 0x381   : > { %v1980_v38 = vpack.c.bf16 %v1977_v53, %v1977_v53  ;;  %v1981_v15 = vpack.c.bf16 %v1976_v16, %v1976_v16  ;;  %v3506_v53 = vld [vmem:[%s4676_s3 + $0x4] sm:$0xf]  ;;  %vm4683_vm6 = vcmask 31744  }
 0x382   : > { %vm4685_vm8 = vmmov %vm4683_vm6 }
 0x383   : > { %v1986_v21 = vsel %vm1578_vm10, %v1980_v38, 0  ;;  %v1989_v13 = vsel %vm1578_vm10, %v1981_v15, 0  ;;  %vm4686_vm9 = vmmov %vm4683_vm6 }
 0x384   : > { %vm4687_vm2 = vmmov %vm4683_vm6 }
 0x385   : > { %vm4688_vm13 = vmmov %vm4687_vm2 }
 0x386   : > { %vm4690_vm14 = vmmov %vm4687_vm2 }
 0x387   : > { %vm4691_vm15 = vmmov %vm4687_vm2 }
 0x388   : > { %vm4693_vm1 = vmmov %vm4687_vm2 }
 0x389   : > { %vm4694_vm12 = vmmov %vm4693_vm1 }
 0x38c   : > { %v3689_v32 = vpop.permute.xlu1 %3688  ;;  %v3684_v10 = vpop.permute.xlu0 %3683 }
 0x38d   : > { %v3691_v43 = vunpack.i.h.bf16 %v3689_v32  ;;  %v3690_v11 = vunpack.i.l.bf16 %v3689_v32  ;;  %v3686_v35 = vunpack.i.h.bf16 %v3684_v10  ;;  %v3685_v0 = vunpack.i.l.bf16 %v3684_v10 }
 0x38f   : > { %v1879_v48 = vsel %vm1121_vm3, %v3691_v43, %v3690_v11  ;;  %v1878_v6 = vsel %vm1121_vm3, %v3690_v11, %v3691_v43  ;;  %v1928_v12 = vsel %vm1178_vm4, %v3686_v35, %v3685_v0  ;;  %v1927_v51 = vsel %vm1178_vm4, %v3685_v0, %v3686_v35  ;;  %v3509_v11 = vld [vmem:[%s4676_s3 + $0x8] sm:$0xf]  ;;  %vm4678_vm3 = vmmov %vm4677_vm0 }
 0x390   : > { %v1882_v7 = vpack.c.bf16 %v1879_v48, %v1879_v48  ;;  %v1883_v14 = vpack.c.bf16 %v1878_v6, %v1878_v6  ;;  %v1931_v52 = vpack.c.bf16 %v1928_v12, %v1928_v12  ;;  %v1932_v44 = vpack.c.bf16 %v1927_v51, %v1927_v51 }
 0x391   : > { %vm4679_vm4 = vcmp.lt.s32.totalorder %v4017_v28, 111 }
 0x392   : > { %v1888_v57 = vsel %vm1578_vm10, %v1882_v7, 0  ;;  %v1891_v31 = vsel %vm1578_vm10, %v1883_v14, 0  ;;  %v1937_v4 = vsel %vm1578_vm10, %v1931_v52, 0  ;;  %v1940_v58 = vsel %vm1578_vm10, %v1932_v44, 0  ;;  %v3709_v14 = vpop.permute.xlu2 %3708 }
 0x393   : > { %1900 = vmatpush.bf16.msra.mxu0 %v1888_v57  ;;  %1913 = vmatpush.bf16.msra.mxu1 %v1891_v31 }
 0x394   : > { %1949 = vmatpush.bf16.msra.mxu2 %v1937_v4  ;;  %1962 = vmatpush.bf16.msra.mxu3 %v1940_v58  ;;  %v3704_v50 = vpop.permute.xlu1 %3703  ;;  %v3699_v5 = vpop.permute.xlu0 %3698  ;;  %v3711_v4 = vunpack.i.h.bf16 %v3709_v14  ;;  %v3710_v58 = vunpack.i.l.bf16 %v3709_v14 }
 0x395   : > { %v3706_v16 = vunpack.i.h.bf16 %v3704_v50  ;;  %v3705_v32 = vunpack.i.l.bf16 %v3704_v50  ;;  %v3701_v10 = vunpack.i.h.bf16 %v3699_v5  ;;  %v3700_v43 = vunpack.i.l.bf16 %v3699_v5 }
 0x396   : > { %3507 = vmatmul.msk.bf16.vlgmr.msra.gmra.mxu0 %vm1574_vm11, %v3506_v53  ;;  %3508 = vmatmul.msk.bf16.vlgmr.msra.gmra.mxu1 %vm1574_vm11, %v3506_v53 }
 0x397   : > { %1998 = vmatpush.bf16.msrb.mxu0 %v1986_v21  ;;  %2011 = vmatpush.bf16.msrb.mxu1 %v1989_v13  ;;  %v2066_v35 = vsel %vm1338_vm5, %v3705_v32, %v3706_v16  ;;  %v2067_v0 = vsel %vm1338_vm5, %v3706_v16, %v3705_v32  ;;  %v2115_v38 = vsel %vm1395_vm7, %v3700_v43, %v3701_v10  ;;  %vm4680_vm5 = vmmov %vm4679_vm4  ;;  %v3515_v16 = vld [vmem:[%s4676_s3 + $0x10] sm:$0xf] }
 0x398   : > { %2041 = vmatpush.bf16.msrb.mxu2 %v2029_v17  ;;  %2054 = vmatpush.bf16.msrb.mxu3 %v2032_v54  ;;  %v2070_v15 = vpack.c.bf16 %v2066_v35, %v2066_v35  ;;  %v2071_v3 = vpack.c.bf16 %v2067_v0, %v2067_v0  ;;  %v2119_v59 = vpack.c.bf16 %v2115_v38, %v2115_v38  ;;  %v3512_v17 = vld [vmem:[%s4676_s3 + $0xc] sm:$0xf]  ;;  %v3518_v0 = vld [vmem:[%s4676_s3 + $0x14] sm:$0xf]  ;;  %v3521_v38 = vld [vmem:[%s4676_s3 + $0x18] sm:$0xf] }
 0x399   : > { %3510 = vmatmul.msk.bf16.vlgmr.msra.gmra.mxu2 %vm1574_vm11, %v3509_v11  ;;  %3511 = vmatmul.msk.bf16.vlgmr.msra.gmra.mxu3 %vm1574_vm11, %v3509_v11  ;;  %v2116_v48 = vsel %vm1395_vm7, %v3701_v10, %v3700_v43  ;;  %v2213_v21 = vsel %vm4679_vm4, %v3710_v58, %v3711_v4  ;;  %v2214_v13 = vsel %vm4680_vm5, %v3711_v4, %v3710_v58  ;;  %vm4684_vm7 = vmmov %vm4683_vm6 }
 0x39a   : > { %v2076_v6 = vsel %vm1578_vm10, %v2070_v15, 0  ;;  %v2079_v12 = vsel %vm1578_vm10, %v2071_v3, 0  ;;  %v2125_v51 = vsel %vm1578_vm10, %v2119_v59, 0  ;;  %v2120_v7 = vpack.c.bf16 %v2116_v48, %v2116_v48  ;;  %v3524_v15 = vld [vmem:[%s4676_s3 + $0x1c] sm:$0xf] }
 0x39b   : > { %2088 = vmatpush.bf16.msra.mxu0 %v2076_v6  ;;  %2101 = vmatpush.bf16.msra.mxu1 %v2079_v12  ;;  %v2217_v32 = vpack.c.bf16 %v2213_v21, %v2213_v21  ;;  %v2218_v10 = vpack.c.bf16 %v2214_v13, %v2214_v13  ;;  %v3527_v3 = vld [vmem:[%s4676_s3 + $0x20] sm:$0xf] }
 0x39c   : > { %2137 = vmatpush.bf16.msra.mxu2 %v2125_v51  ;;  %v2128_v52 = vsel %vm1578_vm10, %v2120_v7, 0  ;;  %v3714_v44 = vpop.permute.xlu0 %3713 }
 0x39d   : > { %2150 = vmatpush.bf16.msra.mxu3 %v2128_v52  ;;  %v3716_v57 = vunpack.i.h.bf16 %v3714_v44  ;;  %v3715_v31 = vunpack.i.l.bf16 %v3714_v44  ;;  %v2223_v11 = vsel %vm1578_vm10, %v2217_v32, 0  ;;  %v2226_v35 = vsel %vm1578_vm10, %v2218_v10, 0 }
 0x39f   : > { %v2164_v50 = vsel %vm4677_vm0, %v3715_v31, %v3716_v57  ;;  %v2165_v5 = vsel %vm4678_vm3, %v3716_v57, %v3715_v31  ;;  %vm4695_vm0 = vmmov %vm4693_vm1 }
 0x3a0   : > { %v2168_v54 = vpack.c.bf16 %v2164_v50, %v2164_v50  ;;  %v2169_v53 = vpack.c.bf16 %v2165_v5, %v2165_v5  ;;  %vm4696_vm3 = vmmov %vm4695_vm0 }
 0x3a1   : > { %vm4699_vm4 = vmmov %vm4695_vm0 }
 0x3a2   : > { %v2174_v28 = vsel %vm1578_vm10, %v2168_v54, 0  ;;  %v2177_v43 = vsel %vm1578_vm10, %v2169_v53, 0  ;;  %vm4700_vm5 = vmmov %vm4695_vm0 }
 0x3a6   : > { %3513 = vmatmul.msk.bf16.vlgmr.msrb.gmra.mxu0 %vm1574_vm11, %v3512_v17  ;;  %3514 = vmatmul.msk.bf16.vlgmr.msrb.gmra.mxu1 %vm1574_vm11, %v3512_v17 }
 0x3a7   : > { %2186 = vmatpush.bf16.msrb.mxu0 %v2174_v28  ;;  %2199 = vmatpush.bf16.msrb.mxu1 %v2177_v43 }
 0x3a9   : > { %3516 = vmatmul.msk.bf16.vlgmr.msrb.gmra.mxu2 %vm1574_vm11, %v3515_v16  ;;  %3517 = vmatmul.msk.bf16.vlgmr.msrb.gmra.mxu3 %vm1574_vm11, %v3515_v16 }
 0x3aa   : > { %2235 = vmatpush.bf16.msrb.mxu2 %v2223_v11  ;;  %2248 = vmatpush.bf16.msrb.mxu3 %v2226_v35 }
 0x3b6   : > { %3519 = vmatmul.msk.bf16.vlgmr.msra.gmra.mxu0 %vm1574_vm11, %v3518_v0  ;;  %3520 = vmatmul.msk.bf16.vlgmr.msra.gmra.mxu1 %vm1574_vm11, %v3518_v0 }
 0x3b9   : > { %3522 = vmatmul.msk.bf16.vlgmr.msra.gmra.mxu2 %vm1574_vm11, %v3521_v38  ;;  %3523 = vmatmul.msk.bf16.vlgmr.msra.gmra.mxu3 %vm1574_vm11, %v3521_v38 }
 0x3c6   : > { %3525 = vmatmul.msk.bf16.vlgmr.msrb.gmra.mxu0 %vm1574_vm11, %v3524_v15  ;;  %3526 = vmatmul.msk.bf16.vlgmr.msrb.gmra.mxu1 %vm1574_vm11, %v3524_v15 }
 0x3c9   : > { %3528 = vmatmul.msk.bf16.vlgmr.msrb.gmra.mxu2 %vm1574_vm11, %v3527_v3  ;;  %3529 = vmatmul.msk.bf16.vlgmr.msrb.gmra.mxu3 %vm1574_vm11, %v3527_v3 }
 0x402   : > { %v1853_v59 = vpop.f32.mrf.mxu2  ;;  %v1866_v48 = vpop.f32.mrf.mxu3 }
 0x403   : > { %v1870_v38 = vmul.f32 %v1853_v59, %v4170_v29  ;;  %v1871_v15 = vmul.f32 %v1866_v48, %v4172_v30 }
 0x40a   : > { %v1855_v6 = vpop.f32.mrf.mxu2  ;;  %v1868_v12 = vpop.f32.mrf.mxu3 }
 0x413   : > { %v1902_v51 = vpop.f32.mrf.mxu0  ;;  %v1915_v7 = vpop.f32.mrf.mxu1 }
 0x414   : > { %v1919_v43 = vmul.f32 %v1902_v51, %v4166_v18  ;;  %v1920_v11 = vmul.f32 %v1915_v7, %v4168_v19 }
 0x416   : > { %v1921_v12 = vadd.f32 %v1919_v43, %v1870_v38 }
 0x41b   : > { %v1904_v44 = vpop.f32.mrf.mxu0  ;;  %v1917_v57 = vpop.f32.mrf.mxu1 }
 0x41c   : > { %v1951_v14 = vpop.f32.mrf.mxu2  ;;  %v1964_v52 = vpop.f32.mrf.mxu3  ;;  %v1922_v44 = vadd.f32 %v1920_v11, %v1871_v15 }
 0x41d   : > { %v1968_v3 = vmul.f32 %v1951_v14, %v4176_v33  ;;  %v1969_v6 = vmul.f32 %v1964_v52, %v4178_v34 }
 0x41f   : > { %v1971_v51 = vadd.f32 %v1969_v6, %v1922_v44 }
 0x423   : > { %v2000_v58 = vpop.f32.mrf.mxu0  ;;  %v2013_v50 = vpop.f32.mrf.mxu1 }
 0x424   : > { %v1953_v31 = vpop.f32.mrf.mxu2  ;;  %v1966_v4 = vpop.f32.mrf.mxu3  ;;  %v2017_v57 = vmul.f32 %v2000_v58, %v4182_v39 }
 0x425   : > { %v2018_v31 = vmul.f32 %v2013_v50, %v4184_v40  ;;  %v1970_v4 = vadd.f32 %v1968_v3, %v1921_v12 }
 0x42b   : > { %v2002_v13 = vpop.f32.mrf.mxu0  ;;  %v2015_v17 = vpop.f32.mrf.mxu1 }
 0x42c   : > { %v2043_v5 = vpop.f32.mrf.mxu2  ;;  %v2056_v21 = vpop.f32.mrf.mxu3  ;;  %v2019_v17 = vadd.f32 %v2017_v57, %v1970_v4 }
 0x433   : > { %v2090_v16 = vpop.f32.mrf.mxu0  ;;  %v2103_v32 = vpop.f32.mrf.mxu1 }
 0x434   : > { %v2045_v54 = vpop.f32.mrf.mxu2  ;;  %v2058_v53 = vpop.f32.mrf.mxu3  ;;  %v2107_v59 = vmul.f32 %v2090_v16, %v4191_v60  ;;  %v2108_v48 = vmul.f32 %v2103_v32, %v4193_v63 }
 0x435   : > { %v2020_v54 = vadd.f32 %v2018_v31, %v1971_v51  ;;  %v2262_v31 = vpop.permute.xlu1 %2261 }
 0x437   : > { %v2061_v52 = vadd.f32 %v2056_v21, %v2020_v54 }
 0x439   : > { %v2110_v50 = vadd.f32 %v2108_v48, %v2061_v52  ;;  %v2518_v48 = vld [vmem:[%s4682_s8] sm:$0xf] }
 0x43b   : > { %v2092_v35 = vpop.f32.mrf.mxu0  ;;  %v2105_v0 = vpop.f32.mrf.mxu1 }
 0x43c   : > { %v2139_v10 = vpop.f32.mrf.mxu2  ;;  %v2152_v28 = vpop.f32.mrf.mxu3  ;;  %v2060_v35 = vadd.f32 %v2043_v5, %v2019_v17 }
 0x43d   : > { %v2156_v43 = vmul.f32 %v2139_v10, %v4197_v8  ;;  %v2157_v58 = vmul.f32 %v2152_v28, %v4199_v9 }
 0x43e   : > { %v2109_v11 = vadd.f32 %v2107_v59, %v2060_v35  ;;  %v2266_v59 = vld [vmem:[%s4681_s5] sm:$0xf] }
 0x43f   : > { %v2159_v3 = vadd.f32 %v2157_v58, %v2110_v50  ;;  %v2314_v58 = vld [vmem:[%s4689_s28] sm:$0xf]  ;;  %v4697_v50 = vld [vmem:[#allocation23_spill] sm:$0xff] }
 0x440   : > { %v2158_v15 = vadd.f32 %v2156_v43, %v2109_v11 }
 0x443   : > { %v2188_v53 = vpop.f32.mrf.mxu0  ;;  %v2201_v14 = vpop.f32.mrf.mxu1 }
 0x444   : > { %v2141_v13 = vpop.f32.mrf.mxu2  ;;  %v2154_v7 = vpop.f32.mrf.mxu3  ;;  %v2205_v0 = vmul.f32 %v2188_v53, %v4201_v26  ;;  %v2206_v38 = vmul.f32 %v2201_v14, %v4203_v27 }
 0x446   : > { %v2207_v12 = vadd.f32 %v2205_v0, %v2158_v15  ;;  %v2208_v32 = vadd.f32 %v2206_v38, %v2159_v3  ;;  %v4698_v0 = vld [vmem:[#allocation24_spill] sm:$0xff]  ;;  %v3550_v15 = vld [vmem:[%s4682_s8 + $0x14] sm:$0xf] }
 0x447   : > { %v3556_v3 = vld [vmem:[%s4682_s8 + $0x1c] sm:$0xf] }
 0x44b   : > { %v2190_v21 = vpop.f32.mrf.mxu0  ;;  %v2203_v10 = vpop.f32.mrf.mxu1 }
 0x44c   : > { %v2237_v6 = vpop.f32.mrf.mxu2  ;;  %v2250_v16 = vpop.f32.mrf.mxu3 }
 0x44d   : > { %v2254_v44 = vmul.f32 %v4208_v41, %v2237_v6  ;;  %v2255_v5 = vmul.f32 %v4211_v42, %v2250_v16 }
 0x44f   : > { %v2256_v28 = vadd.f32 %v2254_v44, %v2207_v12  ;;  %v2257_v57 = vadd.f32 %v2255_v5, %v2208_v32  ;;  %v4461_v44 = vpop.permute.xlu0 %2833 }
 0x451   : > { %v4396_v4 = vadd.f32 %v2262_v31, %v2256_v28  ;;  %v4398_v51 = vadd.f32 %v2262_v31, %v2257_v57 }
 0x453   : > { %v2267_v13 = vpack.c.bf16 %v4396_v4, %v4396_v4  ;;  %v2268_v7 = vpack.c.bf16 %v4398_v51, %v4398_v51 }
 0x454   : > { %v2239_v41 = vpop.f32.mrf.mxu2  ;;  %v2252_v17 = vpop.f32.mrf.mxu3 }
 0x455   : > { %v2279_v42 = vsel %vm1578_vm10, %v2267_v13, 0  ;;  %v2282_v54 = vsel %vm1578_vm10, %v2268_v7, 0 }
 0x456   : > { %2291 = vmatpush.bf16.msra.mxu0 %v2279_v42  ;;  %2304 = vmatpush.bf16.msra.mxu1 %v2282_v54 }
 0x457   : > { %v2319_v10 = vpop.permute.xlu0 %2318 }
 0x459   : > { %3530 = vmatmul.msk.bf16.vlgmr.msra.gmra.mxu0 %vm1574_vm11, %v2266_v59  ;;  %3531 = vmatmul.msk.bf16.vlgmr.msra.gmra.mxu1 %vm1574_vm11, %v2266_v59 }
 0x45a   : > { %2529 = vmatpush.bf16.msrb.mxu0 %v4025_v36  ;;  %2542 = vmatpush.bf16.msrb.mxu1 %v4028_v37  ;;  %v3541_v36 = vld [vmem:[%s4682_s8 + $0x8] sm:$0xf]  ;;  %v3547_v37 = vld [vmem:[%s4682_s8 + $0x10] sm:$0xf] }
 0x45e   : > { %2599 = vmatpush.bf16.msra.mxu0 %v4072_v1  ;;  %2612 = vmatpush.bf16.msra.mxu1 %v4075_v2 }
 0x469   : > { %3536 = vmatmul.msk.bf16.vlgmr.msrb.gmra.mxu0 %vm4683_vm6, %v2518_v48  ;;  %3537 = vmatmul.msk.bf16.vlgmr.msrb.gmra.mxu1 %vm4684_vm7, %v2518_v48  ;;  %vm4701_vm6 = vmmov %vm4695_vm0 }
 0x46a   : > { %2669 = vmatpush.bf16.msrb.mxu0 %v4062_v61  ;;  %2682 = vmatpush.bf16.msrb.mxu1 %v4065_v62  ;;  %v2273_v61 = vpop.permute.xlu2 %2272  ;;  %vm4702_vm7 = vmmov %vm4695_vm0 }
 0x479   : > { %3542 = vmatmul.msk.bf16.vlgmr.msra.gmra.mxu0 %vm4685_vm8, %v3541_v36  ;;  %3543 = vmatmul.msk.bf16.vlgmr.msra.gmra.mxu1 %vm4686_vm9, %v3541_v36  ;;  %vm4703_vm8 = vmmov %vm4695_vm0 }
 0x47a   : > { %2737 = vmatpush.bf16.msra.mxu0 %v4107_v24  ;;  %2750 = vmatpush.bf16.msra.mxu1 %v4110_v25  ;;  %vm4704_vm9 = vmmov %vm4695_vm0 }
 0x489   : > { %3548 = vmatmul.msk.bf16.vlgmr.msrb.gmra.mxu0 %vm4687_vm2, %v3547_v37  ;;  %3549 = vmatmul.msk.bf16.vlgmr.msrb.gmra.mxu1 %vm4688_vm13, %v3547_v37 }
 0x48a   : > { %2807 = vmatpush.bf16.msrb.mxu0 %v4154_v55  ;;  %2820 = vmatpush.bf16.msrb.mxu1 %v4157_v56 }
 0x4d6   : > { %v2293_v62 = vpop.f32.mrf.mxu0  ;;  %v2306_v1 = vpop.f32.mrf.mxu1 }
 0x4d7   : > { %v2294_v2 = vadd.f32 %v2293_v62, %v2273_v61  ;;  %v2307_v53 = vadd.f32 %v2306_v1, %v2273_v61 }
 0x4d9   : > { %v2310_v14 = vmul.f32 %v2294_v2, %v4233_v45  ;;  %v2311_v24 = vmul.f32 %v2307_v53, %v4236_v49  ;;  %v3538_v45 = vld [vmem:[%s4682_s8 + $0x4] sm:$0xf]  ;;  %v3553_v49 = vld [vmem:[%s4682_s8 + $0x18] sm:$0xf] }
 0x4da   : > { %3554 = vmatmul.msk.bf16.vlgmr.msra.gmra.mxu0 %vm4693_vm1, %v3553_v49  ;;  %3555 = vmatmul.msk.bf16.vlgmr.msra.gmra.mxu1 %vm4694_vm12, %v3553_v49 }
 0x4db   : > { %v2312_v25 = vpack.c.bf16 %v2310_v14, %v2310_v14  ;;  %v2313_v35 = vpack.c.bf16 %v2311_v24, %v2311_v24 }
 0x4dd   : > { %v2325_v52 = vsel %vm1578_vm10, %v2312_v25, 0  ;;  %v2328_v55 = vsel %vm1578_vm10, %v2313_v35, 0 }
 0x4de   : > { %v2295_v43 = vpop.f32.mrf.mxu0  ;;  %v2308_v56 = vpop.f32.mrf.mxu1  ;;  %2337 = vmatpush.bf16.msra.mxu2 %v2325_v52  ;;  %2350 = vmatpush.bf16.msra.mxu3 %v2328_v55 }
 0x4e1   : > { %3532 = vmatmul.msk.bf16.vlgmr.msra.gmra.mxu2 %vm1574_vm11, %v2314_v58  ;;  %3533 = vmatmul.msk.bf16.vlgmr.msra.gmra.mxu3 %vm1574_vm11, %v2314_v58 }
 0x4e2   : > { %2564 = vmatpush.bf16.msrb.mxu2 %v4041_v46  ;;  %2577 = vmatpush.bf16.msrb.mxu3 %v4044_v47  ;;  %v4692_v46 = vld [vmem:[#allocation22_spill] sm:$0xff] }
 0x4e3   : > { %v3544_v47 = vld [vmem:[%s4682_s8 + $0xc] sm:$0xf] }
 0x4e6   : > { %2634 = vmatpush.bf16.msra.mxu2 %v4101_v22  ;;  %2647 = vmatpush.bf16.msra.mxu3 %v4104_v23  ;;  %v3559_v22 = vld [vmem:[%s4682_s8 + $0x20] sm:$0xf]  ;;  %v2531_v23 = vpop.f32.mrf.mxu0  ;;  %v2544_v11 = vpop.f32.mrf.mxu1 }
 0x4e7   : > { %v2548_v25 = vmul.f32 %v2531_v23, %v4170_v29  ;;  %v2549_v35 = vmul.f32 %v2544_v11, %v4172_v30  ;;  %v4705_v23 = vld [vmem:[#allocation25_spill] sm:$0xff] }
 0x4ea   : > { %3560 = vmatmul.msk.bf16.vlgmr.msrb.gmra.mxu0 %vm4699_vm4, %v3559_v22  ;;  %3561 = vmatmul.msk.bf16.vlgmr.msrb.gmra.mxu1 %vm4700_vm5, %v3559_v22 }
 0x4ee   : > { %v2546_v38 = vpop.f32.mrf.mxu1 }
 0x4f1   : > { %3539 = vmatmul.msk.bf16.vlgmr.msrb.gmra.mxu2 %vm4690_vm14, %v3538_v45  ;;  %3540 = vmatmul.msk.bf16.vlgmr.msrb.gmra.mxu3 %vm4691_vm15, %v3538_v45 }
 0x4f2   : > { %2702 = vmatpush.bf16.msrb.mxu2 %v4095_v20  ;;  %2715 = vmatpush.bf16.msrb.mxu3 %v4692_v46  ;;  %v2533_v20 = vpop.f32.mrf.mxu0 }
 0x4f6   : > { %v2614_v16 = vpop.f32.mrf.mxu1 }
 0x4f7   : > { %v2619_v56 = vmul.f32 %v2614_v16, %v4178_v34 }
 0x4fa   : > { %v2601_v6 = vpop.f32.mrf.mxu0 }
 0x4fb   : > { %v2618_v43 = vmul.f32 %v2601_v6, %v4176_v33 }
 0x4fe   : > { %v2616_v32 = vpop.f32.mrf.mxu1 }
 0x501   : > { %3545 = vmatmul.msk.bf16.vlgmr.msra.gmra.mxu2 %vm4695_vm0, %v3544_v47  ;;  %3546 = vmatmul.msk.bf16.vlgmr.msra.gmra.mxu3 %vm4696_vm3, %v3544_v47 }
 0x502   : > { %2772 = vmatpush.bf16.msra.mxu2 %v4697_v50  ;;  %2785 = vmatpush.bf16.msra.mxu3 %v4698_v0  ;;  %v2603_v12 = vpop.f32.mrf.mxu0 }
 0x506   : > { %v2684_v21 = vpop.f32.mrf.mxu1 }
 0x50a   : > { %v2671_v5 = vpop.f32.mrf.mxu0 }
 0x50e   : > { %v2686_v42 = vpop.f32.mrf.mxu1 }
 0x511   : > { %3551 = vmatmul.msk.bf16.vlgmr.msrb.gmra.mxu2 %vm4701_vm6, %v3550_v15  ;;  %3552 = vmatmul.msk.bf16.vlgmr.msrb.gmra.mxu3 %vm4702_vm7, %v3550_v15 }
 0x512   : > { %v2673_v17 = vpop.f32.mrf.mxu0 }
 0x521   : > { %3557 = vmatmul.msk.bf16.vlgmr.msra.gmra.mxu2 %vm4703_vm8, %v3556_v3  ;;  %3558 = vmatmul.msk.bf16.vlgmr.msra.gmra.mxu3 %vm4704_vm9, %v3556_v3 }
 0x557   : > { %v2739_v2 = vpop.f32.mrf.mxu0  ;;  %v2752_v53 = vpop.f32.mrf.mxu1 }
 0x55f   : > { %v2741_v50 = vpop.f32.mrf.mxu0  ;;  %v2754_v0 = vpop.f32.mrf.mxu1 }
 0x560   : > { %v3757_v50 = vld [vmem:[%s3826_s9 + $0x10] ss:$0 sm:$0xff] }
 0x564   : > { %v2339_v28 = vpop.f32.mrf.mxu2  ;;  %v2352_v57 = vpop.f32.mrf.mxu3 }
 0x565   : > { %v2340_v31 = vadd.f32 %v2339_v28, %v2319_v10  ;;  %v2353_v13 = vadd.f32 %v2352_v57, %v2319_v10 }
 0x567   : > { %v2356_v7 = vrot.slane %v2340_v31, 4  ;;  %v2362_v41 = vrot.slane %v2353_v13, 4 }
 0x569   : > { %v2357_v54 = vadd.f32 %v2356_v7, %v2340_v31  ;;  %v2363_v59 = vadd.f32 %v2362_v41, %v2353_v13 }
 0x56b   : > { %v2358_v48 = vrot.slane %v2357_v54, 2  ;;  %v2364_v36 = vrot.slane %v2363_v59, 2 }
 0x56c   : > { %v2341_v37 = vpop.f32.mrf.mxu2  ;;  %v2354_v61 = vpop.f32.mrf.mxu3 }
 0x56d   : > { %v2359_v62 = vadd.f32 %v2358_v48, %v2357_v54  ;;  %v2365_v1 = vadd.f32 %v2364_v36, %v2363_v59 }
 0x56f   : > { %v2360_v14 = vrot.slane %v2359_v62, 1  ;;  %v2366_v24 = vrot.slane %v2365_v1, 1 }
 0x571   : > { %v2361_v49 = vadd.f32 %v2360_v14, %v2359_v62  ;;  %v2367_v46 = vadd.f32 %v2366_v24, %v2365_v1 }
 0x573   : > { %v2368_v30 = vmul.f32 %v2361_v49, %v4705_v23  ;;  %v2369_v11 = vmul.f32 %v2367_v46, %v4705_v23 }
 0x574   : > { %v2566_v52 = vpop.f32.mrf.mxu2  ;;  %v2579_v55 = vpop.f32.mrf.mxu3 }
 0x575   : > { %v2583_v58 = vmul.f32 %v2566_v52, %v4166_v18  ;;  %v2584_v45 = vmul.f32 %v2579_v55, %v4168_v19  ;;  %v4471_v15 = vsub.f32 %v2340_v31, %v2368_v30  ;;  %v4473_v34 = vsub.f32 %v2353_v13, %v2369_v11  ;;  %v2809_v18 = vpop.f32.mrf.mxu0  ;;  %v2822_v19 = vpop.f32.mrf.mxu1 }
 0x576   : > { %v2826_v0 = vmul.f32 %v3757_v50, %v2809_v18 }
 0x577   : > { %v2585_v47 = vadd.f32 %v2583_v58, %v2548_v25  ;;  %v2586_v22 = vadd.f32 %v2584_v45, %v2549_v35  ;;  %v2372_v3 = vmul.f32 %v4471_v15, %v4471_v15  ;;  %v2373_v6 = vmul.f32 %v4473_v34, %v4473_v34 }
 0x578   : > { %v2756_v58 = vmul.f32 %v2739_v2, %v4197_v8  ;;  %v2757_v45 = vmul.f32 %v2752_v53, %v4199_v9 }
 0x579   : > { %v2620_v20 = vadd.f32 %v2618_v43, %v2585_v47  ;;  %v2621_v29 = vadd.f32 %v2619_v56, %v2586_v22  ;;  %v2374_v28 = vrot.slane %v2372_v3, 4  ;;  %v2380_v57 = vrot.slane %v2373_v6, 4 }
 0x57b   : > { %v2375_v42 = vadd.f32 %v2374_v28, %v2372_v3  ;;  %v2381_v59 = vadd.f32 %v2380_v57, %v2373_v6 }
 0x57c   : > { %v2568_v38 = vpop.f32.mrf.mxu2  ;;  %v2581_v33 = vpop.f32.mrf.mxu3 }
 0x57d   : > { %v2811_v13 = vpop.f32.mrf.mxu0  ;;  %v2824_v41 = vpop.f32.mrf.mxu1  ;;  %v2376_v37 = vrot.slane %v2375_v42, 2  ;;  %v2382_v61 = vrot.slane %v2381_v59, 2 }
 0x57e   : > { %v4506_v13 = vpop.permute.xlu2 %2890 }
 0x57f   : > { %v2377_v62 = vadd.f32 %v2376_v37, %v2375_v42  ;;  %v2383_v1 = vadd.f32 %v2382_v61, %v2381_v59  ;;  %v4510_v37 = vpop.permute.xlu0 %3005 }
 0x581   : > { %v2378_v24 = vrot.slane %v2377_v62, 1 }
 0x583   : > { %v2379_v25 = vadd.f32 %v2378_v24, %v2377_v62 }
 0x584   : > { %v2636_v16 = vpop.f32.mrf.mxu2  ;;  %v2649_v12 = vpop.f32.mrf.mxu3 }
 0x585   : > { %v2653_v32 = vmul.f32 %v2636_v16, %v4182_v39  ;;  %v2654_v10 = vmul.f32 %v2649_v12, %v4184_v40  ;;  %v2384_v40 = vrot.slane %v2383_v1, 1  ;;  %v2386_v43 = vmul.f32 %v2379_v25, %v4705_v23 }
 0x586   : > { %v4508_v59 = vpop.permute.xlu2 %2995 }
 0x587   : > { %v2655_v31 = vadd.f32 %v2653_v32, %v2620_v20  ;;  %v2656_v7 = vadd.f32 %v2654_v10, %v2621_v29  ;;  %v2385_v35 = vadd.f32 %v2384_v40, %v2383_v1  ;;  %v2388_v47 = vadd.f32 1e-05, %v2386_v43  ;;  %v3758_v20 = vld [vmem:[%s3826_s9 + $0x18] ss:$0 sm:$0xff]  ;;  %v2424_v25 = vpop.permute.xlu0 %2423 }
 0x588   : > { %v2827_v29 = vmul.f32 %v3758_v20, %v2822_v19 }
 0x589   : > { %v2688_v17 = vadd.f32 %v2671_v5, %v2655_v31  ;;  %v2689_v54 = vadd.f32 %v2684_v21, %v2656_v7  ;;  %v2387_v56 = vmul.f32 %v2385_v35, %v4705_v23  ;;  %3729 = vrsqrt.f32 %v2388_v47 }
 0x58a   : > { %vm2396_vm14 = vweird.f32 %v2388_v47 }
 0x58b   : > { %v2389_v22 = vadd.f32 1e-05, %v2387_v56 }
 0x58c   : > { %v2638_v48 = vpop.f32.mrf.mxu2  ;;  %v2651_v36 = vpop.f32.mrf.mxu3 }
 0x58d   : > { %3731 = vrsqrt.f32 %v2389_v22  ;;  %vm2406_vm1 = vweird.f32 %v2389_v22 }
 0x58f   : > { %v3730_v19 = vpop.eup %3729 }
 0x590   : > { %v2391_v32 = vmul.f32 %v3730_v19, %v2388_v47  ;;  %vm2397_vm2 = vweird.f32 %v3730_v19 }
 0x591   : > { %vm2398_vm15 = vmor %vm2396_vm14, %vm2397_vm2 }
 0x592   : > { %v2392_v31 = vmul.f32 %v3730_v19, %v2391_v32 }
 0x594   : > { %v2704_v14 = vpop.f32.mrf.mxu2  ;;  %v2717_v39 = vpop.f32.mrf.mxu3  ;;  %v2393_v41 = vmul.f32 0.5, %v2392_v31 }
 0x595   : > { %v2721_v5 = vmul.f32 %v2704_v14, %v4191_v60  ;;  %v2722_v21 = vmul.f32 %v2717_v39, %v4193_v63  ;;  %v2416_v39 = vpop.permute.xlu2 %2415 }
 0x596   : > { %v2394_v42 = vsub.f32 1.5, %v2393_v41 }
 0x597   : > { %v2723_v49 = vadd.f32 %v2721_v5, %v2688_v17  ;;  %v2724_v46 = vadd.f32 %v2722_v21, %v2689_v54 }
 0x598   : > { %v2395_v48 = vmul.f32 %v3730_v19, %v2394_v42 }
 0x599   : > { %v2758_v11 = vadd.f32 %v2756_v58, %v2723_v49  ;;  %v2759_v38 = vadd.f32 %v2757_v45, %v2724_v46 }
 0x59a   : > { %v2399_v61 = vsel %vm2398_vm15, %v3730_v19, %v2395_v48 }
 0x59b   : > { %v2410_v1 = vmul.f32 %v2399_v61, %v4471_v15 }
 0x59c   : > { %v2706_v52 = vpop.f32.mrf.mxu2  ;;  %v2719_v55 = vpop.f32.mrf.mxu3 }
 0x59d   : > { %v2418_v24 = vmul.f32 %v2416_v39, %v2410_v1 }
 0x59f   : > { %v2426_v35 = vadd.f32 %v2424_v25, %v2418_v24 }
 0x5a1   : > { %v4515_v55 = vadd.f32 %v2426_v35, %v4396_v4 }
 0x5a3   : > { %v4521_v21 = vmul.f32 0.70710677, %v4515_v55 }
 0x5a4   : > { %v2774_v30 = vpop.f32.mrf.mxu2  ;;  %v2787_v60 = vpop.f32.mrf.mxu3 }
 0x5a5   : > { %v2791_v63 = vmul.f32 %v2774_v30, %v4201_v26  ;;  %v2792_v33 = vmul.f32 %v2787_v60, %v4203_v27  ;;  %v3732_v26 = vpop.eup %3731  ;;  %v2434_v15 = vmul.f32 %v4521_v21, %v4521_v21 }
 0x5a6   : > { %v2401_v57 = vmul.f32 %v3732_v26, %v2389_v22  ;;  %vm2407_vm13 = vweird.f32 %v3732_v26 }
 0x5a7   : > { %v2793_v8 = vadd.f32 %v2791_v63, %v2758_v11  ;;  %v2794_v9 = vadd.f32 %v2792_v33, %v2759_v38  ;;  %vm2408_vm12 = vmor %vm2406_vm1, %vm2407_vm13  ;;  %v2435_v56 = vmin.f32 %v2434_v15, 16.0 }
 0x5a8   : > { %v2402_v7 = vmul.f32 %v3732_v26, %v2401_v57 }
 0x5a9   : > { %v2828_v2 = vadd.f32 %v2826_v0, %v2793_v8  ;;  %v2829_v53 = vadd.f32 %v2827_v29, %v2794_v9  ;;  %v2447_v45 = vmul.f32 3.8918573e-05, %v2435_v56  ;;  %v2436_v38 = vmul.f32 2.1237322e-06, %v2435_v56 }
 0x5aa   : > { %v2403_v17 = vmul.f32 0.5, %v2402_v7 }
 0x5ab   : > { %v4492_v3 = vadd.f32 %v4461_v44, %v2828_v2  ;;  %v4495_v18 = vadd.f32 %v4461_v44, %v2829_v53  ;;  %v2838_v44 = vld [vmem:[%s4706_s1] sm:$0xf]  ;;  %v2448_v49 = vadd.f32 0.001143296, %v2447_v45  ;;  %v2437_v2 = vadd.f32 0.00028619796, %v2436_v38 }
 0x5ac   : > { %v2776_v6 = vpop.f32.mrf.mxu2  ;;  %v2789_v16 = vpop.f32.mrf.mxu3  ;;  %v2404_v54 = vsub.f32 1.5, %v2403_v17 }
 0x5ad   : > { %v2839_v27 = vpack.c.bf16 %v4492_v3, %v4492_v3  ;;  %v2840_v12 = vpack.c.bf16 %v4495_v18, %v4495_v18  ;;  %v2438_v16 = vmul.f32 %v2437_v2, %v2435_v56 }
 0x5ae   : > { %v2405_v36 = vmul.f32 %v3732_v26, %v2404_v54 }
 0x5af   : > { %v2851_v10 = vsel %vm1578_vm10, %v2839_v27, 0  ;;  %v2854_v28 = vsel %vm1578_vm10, %v2840_v12, 0  ;;  %v2439_v12 = vadd.f32 0.0036580483, %v2438_v16  ;;  %v3760_v16 = vld [vmem:[%s3831_s13 + $0x8] sm:$0xff] }
 0x5b0   : > { %2863 = vmatpush.bf16.msrb.mxu2 %v2851_v10  ;;  %2876 = vmatpush.bf16.msrb.mxu3 %v2854_v28  ;;  %v2409_v62 = vsel %vm2408_vm12, %v3732_v26, %v2405_v36 }
 0x5b1   : > { %v2411_v14 = vmul.f32 %v2409_v62, %v4473_v34  ;;  %v2440_v10 = vmul.f32 %v2439_v12, %v2435_v56 }
 0x5b3   : > { %3562 = vmatmul.msk.bf16.vlgmr.msrb.gmra.mxu2 %vm1574_vm11, %v2838_v44  ;;  %3563 = vmatmul.msk.bf16.vlgmr.msrb.gmra.mxu3 %vm1574_vm11, %v2838_v44  ;;  %v2419_v40 = vmul.f32 %v2416_v39, %v2411_v14  ;;  %v2441_v31 = vadd.f32 0.05243302, %v2440_v10 }
 0x5b5   : > { %v2427_v52 = vadd.f32 %v2424_v25, %v2419_v40  ;;  %v2442_v42 = vmul.f32 %v2441_v31, %v2435_v56 }
 0x5b7   : > { %v4518_v5 = vadd.f32 %v2427_v52, %v4398_v51  ;;  %v2449_v51 = vmul.f32 %v2448_v49, %v2435_v56  ;;  %v2443_v61 = vadd.f32 0.18741608, %v2442_v42 }
 0x5b9   : > { %v4524_v43 = vmul.f32 0.70710677, %v4518_v5  ;;  %v2450_v22 = vadd.f32 0.014752088, %v2449_v51  ;;  %v2444_v39 = vmul.f32 %v2443_v61, %v2435_v56  ;;  %v2431_v38 = vmul.f32 0.5, %v4518_v5 }
 0x5bb   : > { %v2474_v34 = vmul.f32 %v4524_v43, %v4524_v43  ;;  %v2451_v0 = vmul.f32 %v2450_v22, %v2435_v56  ;;  %v2445_v45 = vadd.f32 1.1283791, %v2444_v39 }
 0x5bd   : > { %v2475_v58 = vmin.f32 %v2474_v34, 16.0  ;;  %v2452_v29 = vadd.f32 0.112945676, %v2451_v0  ;;  %v2446_v22 = vmul.f32 %v2445_v45, %v4521_v21 }
 0x5bf   : > { %v2487_v4 = vmul.f32 3.8918573e-05, %v2475_v58  ;;  %v2453_v60 = vmul.f32 %v2452_v29, %v2435_v56  ;;  %v2476_v8 = vmul.f32 2.1237322e-06, %v2475_v58 }
 0x5c1   : > { %v2488_v46 = vadd.f32 0.001143296, %v2487_v4  ;;  %v2454_v63 = vadd.f32 0.4994258, %v2453_v60  ;;  %v2477_v19 = vadd.f32 0.00028619796, %v2476_v8 }
 0x5c3   : > { %v2489_v47 = vmul.f32 %v2488_v46, %v2475_v58  ;;  %v2455_v9 = vmul.f32 %v2454_v63, %v2435_v56  ;;  %v2478_v27 = vmul.f32 %v2477_v19, %v2475_v58  ;;  %v2430_v63 = vmul.f32 0.5, %v4515_v55  ;;  %v3759_v19 = vld [vmem:[%s3831_s13] sm:$0xff] }
 0x5c5   : > { %v2490_v50 = vadd.f32 0.014752088, %v2489_v47  ;;  %v2456_v6 = vadd.f32 1.0, %v2455_v9  ;;  %v2479_v32 = vadd.f32 0.0036580483, %v2478_v27 }
 0x5c7   : > { %v2491_v20 = vmul.f32 %v2490_v50, %v2475_v58  ;;  %3733 = vrcp.f32 %v2456_v6  ;;  %v2480_v57 = vmul.f32 %v2479_v32, %v2475_v58  ;;  %vm2462_vm4 = vweird.f32 %v2456_v6 }
 0x5c8   : > { %v2468_v35 = vand.u32 2147483648, %v2456_v6  ;;  %v2466_v15 = vand.u32 2147483647, %v2456_v6 }
 0x5c9   : > { %v2492_v30 = vadd.f32 0.112945676, %v2491_v20  ;;  %v2481_v41 = vadd.f32 0.05243302, %v2480_v57 }
 0x5ca   : > { %v2469_v51 = vor.u32 1.1754944e-38, %v2468_v35  ;;  %vm2467_vm8 = vcmp.eq.f32.partialorder %v2466_v15, 8.507059e+37 }
 0x5cb   : > { %v2493_v11 = vmul.f32 %v2492_v30, %v2475_v58  ;;  %v2482_v48 = vmul.f32 %v2481_v41, %v2475_v58 }
 0x5cd   : > { %v2494_v33 = vadd.f32 0.4994258, %v2493_v11  ;;  %v3734_v28 = vpop.eup %3733  ;;  %v2483_v1 = vadd.f32 0.18741608, %v2482_v48 }
 0x5ce   : > { %v2458_v7 = vmul.f32 %v3734_v28, %v2456_v6  ;;  %vm2463_vm0 = vweird.f32 %v3734_v28 }
 0x5cf   : > { %v2495_v53 = vmul.f32 %v2494_v33, %v2475_v58  ;;  %v2484_v40 = vmul.f32 %v2483_v1, %v2475_v58  ;;  %vm2464_vm5 = vmor %vm2462_vm4, %vm2463_vm0  ;;  %v2845_v33 = vpop.permute.xlu1 %2844 }
 0x5d0   : > { %v2459_v54 = vsub.f32 1.0, %v2458_v7  ;;  %v2886_v7 = vld [vmem:[%s4707_s2] sm:$0xf] }
 0x5d1   : > { %v2496_v26 = vadd.f32 1.0, %v2495_v53  ;;  %v2485_v49 = vadd.f32 1.1283791, %v2484_v40 }
 0x5d2   : > { %v2460_v62 = vmul.f32 %v3734_v28, %v2459_v54 }
 0x5d3   : > { %3735 = vrcp.f32 %v2496_v26  ;;  %v2508_v52 = vand.u32 2147483648, %v2496_v26  ;;  %vm2502_vm6 = vweird.f32 %v2496_v26  ;;  %v2506_v34 = vand.u32 2147483647, %v2496_v26 }
 0x5d4   : > { %v2461_v24 = vadd.f32 %v3734_v28, %v2460_v62  ;;  %v2486_v50 = vmul.f32 %v2485_v49, %v4524_v43 }
 0x5d5   : > { %v2509_v47 = vor.u32 1.1754944e-38, %v2508_v52  ;;  %vm2507_vm9 = vcmp.eq.f32.partialorder %v2506_v34, 8.507059e+37 }
 0x5d6   : > { %v2465_v4 = vsel %vm2464_vm5, %v3734_v28, %v2461_v24 }
 0x5d7   : > { %v2470_v56 = vsel %vm2467_vm8, %v2469_v51, %v2465_v4 }
 0x5d8   : > { %v2471_v0 = vmul.f32 %v2470_v56, %v2446_v22 }
 0x5d9   : > { %v3736_v44 = vpop.eup %3735 }
 0x5da   : > { %v2498_v17 = vmul.f32 %v3736_v44, %v2496_v26  ;;  %vm2503_vm3 = vweird.f32 %v3736_v44  ;;  %v3534_v29 = vclamps-f32 %v2471_v0, 1.0 }
 0x5db   : > { %vm2504_vm7 = vmor %vm2502_vm6, %vm2503_vm3 }
 0x5dc   : > { %v2499_v36 = vsub.f32 1.0, %v2498_v17  ;;  %v2514_v60 = vadd.f32 1.0, %v3534_v29 }
 0x5de   : > { %v2500_v14 = vmul.f32 %v3736_v44, %v2499_v36  ;;  %v4534_v2 = vmul.f32 %v2514_v60, %v2430_v63 }
 0x5e0   : > { %v2501_v25 = vadd.f32 %v3736_v44, %v2500_v14  ;;  %v3107_v27 = vpack.c.bf16 %v4534_v2, %v4534_v2 }
 0x5e2   : > { %v2505_v46 = vsel %vm2504_vm7, %v3736_v44, %v2501_v25  ;;  %v3151_v44 = vsel %vm1578_vm10, %v3107_v27, 0 }
 0x5e3   : > { %v2510_v58 = vsel %vm2507_vm9, %v2509_v47, %v2505_v46 }
 0x5e4   : > { %v2511_v20 = vmul.f32 %v2510_v58, %v2486_v50 }
 0x5e6   : > { %v3535_v30 = vclamps-f32 %v2511_v20, 1.0 }
 0x5e8   : > { %v2515_v11 = vadd.f32 1.0, %v3535_v30 }
 0x5ea   : > { %v4536_v21 = vmul.f32 %v2515_v11, %v2431_v38 }
 0x5ec   : > { %v3108_v55 = vpack.c.bf16 %v4536_v21, %v4536_v21 }
 0x5ee   : > { %v3154_v31 = vsel %vm1578_vm10, %v3108_v55, 0 }
 0x636   : > { %v2865_v8 = vpop.f32.mrf.mxu2  ;;  %v2878_v9 = vpop.f32.mrf.mxu3 }
 0x637   : > { %v2866_v43 = vadd.f32 %v2865_v8, %v2845_v33  ;;  %v2879_v53 = vadd.f32 %v2878_v9, %v2845_v33 }
 0x639   : > { %v2882_v6 = vmul.f32 %v3759_v19, %v2866_v43  ;;  %v2883_v26 = vmul.f32 %v3760_v16, %v2879_v53 }
 0x63b   : > { %v2884_v5 = vpack.c.bf16 %v2882_v6, %v2882_v6  ;;  %v2885_v12 = vpack.c.bf16 %v2883_v26, %v2883_v26 }
 0x63d   : > { %v2897_v32 = vsel %vm1578_vm10, %v2884_v5, 0  ;;  %v2900_v10 = vsel %vm1578_vm10, %v2885_v12, 0 }
 0x63e   : > { %v2867_v28 = vpop.f32.mrf.mxu2  ;;  %v2880_v57 = vpop.f32.mrf.mxu3  ;;  %2909 = vmatpush.bf16.msra.mxu0 %v2897_v32  ;;  %2922 = vmatpush.bf16.msra.mxu1 %v2900_v10 }
 0x63f   : > { %v2988_v10 = vpop.permute.xlu1 %2987 }
 0x641   : > { %3564 = vmatmul.msk.bf16.vlgmr.msra.gmra.mxu0 %vm1574_vm11, %v2886_v7  ;;  %3565 = vmatmul.msk.bf16.vlgmr.msra.gmra.mxu1 %vm1574_vm11, %v2886_v7 }
 0x642   : > { %3163 = vmatpush.bf16.msrb.mxu0 %v3151_v44  ;;  %3176 = vmatpush.bf16.msrb.mxu1 %v3154_v31 }
 0x6be   : > { %v2911_v41 = vpop.f32.mrf.mxu0  ;;  %v2924_v17 = vpop.f32.mrf.mxu1 }
 0x6bf   : > { %v2912_v42 = vadd.f32 %v2911_v41, %v4506_v13  ;;  %v2925_v54 = vadd.f32 %v2924_v17, %v4506_v13 }
 0x6c1   : > { %v2928_v48 = vrot.slane %v2912_v42, 4  ;;  %v2934_v36 = vrot.slane %v2925_v54, 4 }
 0x6c3   : > { %v2929_v61 = vadd.f32 %v2928_v48, %v2912_v42  ;;  %v2935_v62 = vadd.f32 %v2934_v36, %v2925_v54 }
 0x6c5   : > { %v2930_v1 = vrot.slane %v2929_v61, 2  ;;  %v2936_v14 = vrot.slane %v2935_v62, 2 }
 0x6c6   : > { %v2913_v39 = vpop.f32.mrf.mxu0  ;;  %v2926_v24 = vpop.f32.mrf.mxu1 }
 0x6c7   : > { %v2931_v40 = vadd.f32 %v2930_v1, %v2929_v61  ;;  %v2937_v25 = vadd.f32 %v2936_v14, %v2935_v62  ;;  %v3014_v61 = vpop.permute.xlu1 %3013 }
 0x6c9   : > { %v2932_v35 = vrot.slane %v2931_v40, 1  ;;  %v2938_v52 = vrot.slane %v2937_v25, 1 }
 0x6cb   : > { %v2933_v15 = vadd.f32 %v2932_v35, %v2931_v40  ;;  %v2939_v34 = vadd.f32 %v2938_v52, %v2937_v25 }
 0x6cd   : > { %v2940_v45 = vmul.f32 %v2933_v15, %v4705_v23  ;;  %v2941_v4 = vmul.f32 %v2939_v34, %v4705_v23 }
 0x6cf   : > { %v2942_v49 = vsub.f32 %v2912_v42, %v2940_v45  ;;  %v2943_v13 = vsub.f32 %v2925_v54, %v2941_v4 }
 0x6d1   : > { %v2944_v46 = vmul.f32 %v2942_v49, %v2942_v49  ;;  %v2945_v51 = vmul.f32 %v2943_v13, %v2943_v13 }
 0x6d3   : > { %v2946_v47 = vrot.slane %v2944_v46, 4  ;;  %v2952_v56 = vrot.slane %v2945_v51, 4 }
 0x6d5   : > { %v2947_v58 = vadd.f32 %v2946_v47, %v2944_v46  ;;  %v2953_v22 = vadd.f32 %v2952_v56, %v2945_v51 }
 0x6d7   : > { %v2948_v50 = vrot.slane %v2947_v58, 2  ;;  %v2954_v0 = vrot.slane %v2953_v22, 2 }
 0x6d9   : > { %v2949_v20 = vadd.f32 %v2948_v50, %v2947_v58  ;;  %v2955_v29 = vadd.f32 %v2954_v0, %v2953_v22 }
 0x6db   : > { %v2950_v30 = vrot.slane %v2949_v20, 1  ;;  %v2956_v60 = vrot.slane %v2955_v29, 1 }
 0x6dd   : > { %v2951_v11 = vadd.f32 %v2950_v30, %v2949_v20  ;;  %v2957_v63 = vadd.f32 %v2956_v60, %v2955_v29 }
 0x6df   : > { %v2958_v38 = vmul.f32 %v2951_v11, %v4705_v23  ;;  %v2959_v33 = vmul.f32 %v2957_v63, %v4705_v23 }
 0x6e1   : > { %v2960_v8 = vadd.f32 1e-05, %v2958_v38  ;;  %v2961_v9 = vadd.f32 1e-05, %v2959_v33 }
 0x6e3   : > { %3737 = vrsqrt.f32 %v2960_v8  ;;  %vm2968_vm14 = vweird.f32 %v2960_v8  ;;  %vm2978_vm1 = vweird.f32 %v2961_v9 }
 0x6e4   : > { %3739 = vrsqrt.f32 %v2961_v9 }
 0x6e9   : > { %v3738_v43 = vpop.eup %3737 }
 0x6ea   : > { %v3740_v53 = vpop.eup %3739  ;;  %v2963_v19 = vmul.f32 %v3738_v43, %v2960_v8  ;;  %vm2969_vm2 = vweird.f32 %v3738_v43 }
 0x6eb   : > { %v2973_v6 = vmul.f32 %v3740_v53, %v2961_v9  ;;  %vm2979_vm13 = vweird.f32 %v3740_v53  ;;  %vm2970_vm15 = vmor %vm2968_vm14, %vm2969_vm2 }
 0x6ec   : > { %v2964_v16 = vmul.f32 %v3738_v43, %v2963_v19  ;;  %vm2980_vm12 = vmor %vm2978_vm1, %vm2979_vm13  ;;  %v3106_v19 = vld [vmem:[%s4708_s7] sm:$0x1] }
 0x6ed   : > { %v2974_v26 = vmul.f32 %v3740_v53, %v2973_v6  ;;  %3570 = vmatmul.msk.bf16.vlgmr.msrb.gmra.mxu0 %vm1574_vm11, %v3106_v19  ;;  %3571 = vmatmul.msk.bf16.vlgmr.msrb.gmra.mxu1 %vm1574_vm11, %v3106_v19 }
 0x6ee   : > { %v2965_v27 = vmul.f32 0.5, %v2964_v16 }
 0x6ef   : > { %v2975_v55 = vmul.f32 0.5, %v2974_v26 }
 0x6f0   : > { %v2966_v5 = vsub.f32 1.5, %v2965_v27 }
 0x6f1   : > { %v2976_v12 = vsub.f32 1.5, %v2975_v55 }
 0x6f2   : > { %v2967_v32 = vmul.f32 %v3738_v43, %v2966_v5 }
 0x6f3   : > { %v2977_v23 = vmul.f32 %v3740_v53, %v2976_v12 }
 0x6f4   : > { %v2971_v28 = vsel %vm2970_vm15, %v3738_v43, %v2967_v32 }
 0x6f5   : > { %v2982_v57 = vmul.f32 %v2971_v28, %v2942_v49  ;;  %v2981_v44 = vsel %vm2980_vm12, %v3740_v53, %v2977_v23 }
 0x6f6   : > { %v2983_v31 = vmul.f32 %v2981_v44, %v2943_v13 }
 0x6f7   : > { %v2990_v7 = vmul.f32 %v2988_v10, %v2982_v57 }
 0x6f8   : > { %v2991_v41 = vmul.f32 %v2988_v10, %v2983_v31 }
 0x6f9   : > { %v2998_v17 = vadd.f32 %v4508_v59, %v2990_v7 }
 0x6fa   : > { %v2999_v42 = vadd.f32 %v4508_v59, %v2991_v41 }
 0x6fb   : > { %v3000_v54 = vadd.f32 %v2998_v17, %v4492_v3 }
 0x6fc   : > { %v3001_v48 = vadd.f32 %v2999_v42, %v4495_v18 }
 0x6fd   : > { %v3008_v36 = vmul.f32 %v4510_v37, %v3000_v54 }
 0x6fe   : > { %v3009_v62 = vmul.f32 %v4510_v37, %v3001_v48 }
 0x6ff   : > { %v4563_v1 = vadd.f32 %v3014_v61, %v3008_v36 }
 0x700   : > { %v4565_v14 = vadd.f32 %v3014_v61, %v3009_v62 }
 0x701   : > { %v4568_v39 = vmul.f32 0.70710677, %v4563_v1 }
 0x702   : > { %v4571_v24 = vmul.f32 0.70710677, %v4565_v14 }
 0x703   : > { %v3022_v3 = vmul.f32 %v4568_v39, %v4568_v39 }
 0x704   : > { %v3062_v18 = vmul.f32 %v4571_v24, %v4571_v24 }
 0x705   : > { %v3023_v59 = vmin.f32 %v3022_v3, 16.0 }
 0x706   : > { %v3063_v40 = vmin.f32 %v3062_v18, 16.0 }
 0x707   : > { %v3024_v25 = vmul.f32 2.1237322e-06, %v3023_v59  ;;  %v3035_v37 = vmul.f32 3.8918573e-05, %v3023_v59 }
 0x708   : > { %v3064_v35 = vmul.f32 2.1237322e-06, %v3063_v40  ;;  %v3075_v52 = vmul.f32 3.8918573e-05, %v3063_v40 }
 0x709   : > { %v3025_v15 = vadd.f32 0.00028619796, %v3024_v25  ;;  %v3036_v34 = vadd.f32 0.001143296, %v3035_v37 }
 0x70a   : > { %v3065_v45 = vadd.f32 0.00028619796, %v3064_v35  ;;  %v3076_v4 = vadd.f32 0.001143296, %v3075_v52 }
 0x70b   : > { %v3026_v49 = vmul.f32 %v3025_v15, %v3023_v59  ;;  %v3037_v13 = vmul.f32 %v3036_v34, %v3023_v59 }
 0x70c   : > { %v3066_v46 = vmul.f32 %v3065_v45, %v3063_v40  ;;  %v3077_v51 = vmul.f32 %v3076_v4, %v3063_v40 }
 0x70d   : > { %v3027_v47 = vadd.f32 0.0036580483, %v3026_v49  ;;  %v3038_v56 = vadd.f32 0.014752088, %v3037_v13  ;;  %v3018_v13 = vmul.f32 0.5, %v4563_v1 }
 0x70e   : > { %v3078_v58 = vadd.f32 0.014752088, %v3077_v51  ;;  %v3067_v50 = vadd.f32 0.0036580483, %v3066_v46  ;;  %v3109_v1 = vld [vmem:[%s4709_s10] sm:$0x1] }
 0x70f   : > { %v3039_v22 = vmul.f32 %v3038_v56, %v3023_v59  ;;  %v3028_v20 = vmul.f32 %v3027_v47, %v3023_v59 }
 0x710   : > { %v3079_v0 = vmul.f32 %v3078_v58, %v3063_v40  ;;  %v3068_v11 = vmul.f32 %v3067_v50, %v3063_v40 }
 0x711   : > { %v3040_v29 = vadd.f32 0.112945676, %v3039_v22  ;;  %v3029_v38 = vadd.f32 0.05243302, %v3028_v20 }
 0x712   : > { %v3080_v30 = vadd.f32 0.112945676, %v3079_v0  ;;  %v3069_v43 = vadd.f32 0.05243302, %v3068_v11 }
 0x713   : > { %v3041_v60 = vmul.f32 %v3040_v29, %v3023_v59  ;;  %v3030_v6 = vmul.f32 %v3029_v38, %v3023_v59 }
 0x714   : > { %v3081_v63 = vmul.f32 %v3080_v30, %v3063_v40  ;;  %v3070_v27 = vmul.f32 %v3069_v43, %v3063_v40 }
 0x715   : > { %v3042_v33 = vadd.f32 0.4994258, %v3041_v60  ;;  %v3031_v55 = vadd.f32 0.18741608, %v3030_v6 }
 0x716   : > { %v3082_v8 = vadd.f32 0.4994258, %v3081_v63  ;;  %v3071_v5 = vadd.f32 0.18741608, %v3070_v27  ;;  %v3186_v63 = vpop.permute.xlu1 %3185 }
 0x717   : > { %v3043_v9 = vmul.f32 %v3042_v33, %v3023_v59  ;;  %v3032_v32 = vmul.f32 %v3031_v55, %v3023_v59 }
 0x718   : > { %v3083_v53 = vmul.f32 %v3082_v8, %v3063_v40  ;;  %v3072_v28 = vmul.f32 %v3071_v5, %v3063_v40 }
 0x719   : > { %v3044_v16 = vadd.f32 1.0, %v3043_v9  ;;  %v3033_v31 = vadd.f32 1.1283791, %v3032_v32 }
 0x71a   : > { %v3084_v26 = vadd.f32 1.0, %v3083_v53  ;;  %v3073_v48 = vadd.f32 1.1283791, %v3072_v28 }
 0x71b   : > { %3741 = vrcp.f32 %v3044_v16  ;;  %v3056_v7 = vand.u32 2147483648, %v3044_v16  ;;  %v3054_v42 = vand.u32 2147483647, %v3044_v16  ;;  %vm3050_vm4 = vweird.f32 %v3044_v16 }
 0x71c   : > { %3743 = vrcp.f32 %v3084_v26  ;;  %v3096_v54 = vand.u32 2147483648, %v3084_v26  ;;  %v3094_v61 = vand.u32 2147483647, %v3084_v26  ;;  %vm3090_vm6 = vweird.f32 %v3084_v26 }
 0x71d   : > { %v3057_v3 = vor.u32 1.1754944e-38, %v3056_v7  ;;  %v3034_v59 = vmul.f32 %v3033_v31, %v4568_v39  ;;  %vm3055_vm7 = vcmp.eq.f32.partialorder %v3054_v42, 8.507059e+37  ;;  %v3074_v35 = vmul.f32 %v3073_v48, %v4571_v24 }
 0x71e   : > { %v3097_v25 = vor.u32 1.1754944e-38, %v3096_v54  ;;  %vm3095_vm9 = vcmp.eq.f32.partialorder %v3094_v61, 8.507059e+37  ;;  %v3019_v39 = vmul.f32 0.5, %v4565_v14 }
 0x721   : > { %v3742_v12 = vpop.eup %3741 }
 0x722   : > { %v3744_v23 = vpop.eup %3743  ;;  %v3046_v10 = vmul.f32 %v3742_v12, %v3044_v16  ;;  %vm3051_vm0 = vweird.f32 %v3742_v12 }
 0x723   : > { %v3086_v57 = vmul.f32 %v3744_v23, %v3084_v26  ;;  %vm3091_vm3 = vweird.f32 %v3744_v23  ;;  %vm3052_vm5 = vmor %vm3050_vm4, %vm3051_vm0  ;;  %vm3291_vm0 = vcmask 1040384  }
 0x724   : > { %v3047_v44 = vsub.f32 1.0, %v3046_v10  ;;  %vm3092_vm8 = vmor %vm3090_vm6, %vm3091_vm3  ;;  %vm3287_vm3 = vcmask 15360  }
 0x725   : > { %v3087_v41 = vsub.f32 1.0, %v3086_v57 }
 0x726   : > { %v3048_v17 = vmul.f32 %v3742_v12, %v3047_v44 }
 0x727   : > { %v3088_v36 = vmul.f32 %v3744_v23, %v3087_v41 }
 0x728   : > { %v3049_v62 = vadd.f32 %v3742_v12, %v3048_v17 }
 0x729   : > { %v3089_v18 = vadd.f32 %v3744_v23, %v3088_v36 }
 0x72a   : > { %v3053_v40 = vsel %vm3052_vm5, %v3742_v12, %v3049_v62 }
 0x72b   : > { %v3058_v37 = vsel %vm3055_vm7, %v3057_v3, %v3053_v40  ;;  %v3093_v52 = vsel %vm3092_vm8, %v3744_v23, %v3089_v18 }
 0x72c   : > { %v3059_v15 = vmul.f32 %v3058_v37, %v3034_v59  ;;  %v3098_v34 = vsel %vm3095_vm9, %v3097_v25, %v3093_v52 }
 0x72d   : > { %v3099_v45 = vmul.f32 %v3098_v34, %v3074_v35 }
 0x72e   : > { %v3566_v4 = vclamps-f32 %v3059_v15, 1.0 }
 0x72f   : > { %v3567_v49 = vclamps-f32 %v3099_v45, 1.0 }
 0x730   : > { %v3102_v46 = vadd.f32 1.0, %v3566_v4 }
 0x731   : > { %v3103_v51 = vadd.f32 1.0, %v3567_v49 }
 0x732   : > { %v4584_v47 = vmul.f32 %v3102_v46, %v3018_v13 }
 0x733   : > { %v4586_v56 = vmul.f32 %v3103_v51, %v3019_v39 }
 0x734   : > { %v3110_v24 = vpack.c.bf16 %v4584_v47, %v4584_v47 }
 0x735   : > { %v3111_v58 = vpack.c.bf16 %v4586_v56, %v4586_v56 }
 0x736   : > { %v3116_v22 = vsel %vm1578_vm10, %v3110_v24, 0 }
 0x737   : > { %3128 = vmatpush.bf16.msra.mxu2 %v3116_v22  ;;  %v3119_v50 = vsel %vm1578_vm10, %v3111_v58, 0 }
 0x738   : > { %3141 = vmatpush.bf16.msra.mxu3 %v3119_v50 }
 0x73a   : > { %3568 = vmatmul.msk.bf16.vlgmr.msra.gmra.mxu2 %vm1574_vm11, %v3109_v1 }
 0x73b   : > { %3569 = vmatmul.msk.bf16.vlgmr.msra.gmra.mxu3 %vm1574_vm11, %v3109_v1 }
 0x76a   : > { %v3165_v14 = vpop.f32.mrf.mxu0  ;;  %v3178_v0 = vpop.f32.mrf.mxu1 }
 0x772   : > { %v3167_v20 = vpop.f32.mrf.mxu0  ;;  %v3180_v29 = vpop.f32.mrf.mxu1 }
 0x7bd   : > { %v3130_v30 = vpop.f32.mrf.mxu2 }
 0x7be   : > { %v3166_v60 = vadd.f32 %v3165_v14, %v3130_v30  ;;  %v3143_v11 = vpop.f32.mrf.mxu3 }
 0x7bf   : > { %v3179_v38 = vadd.f32 %v3178_v0, %v3143_v11 }
 0x7c0   : > { %v4597_v33 = vadd.f32 %v3186_v63, %v3166_v60 }
 0x7c1   : > { %v4599_v8 = vadd.f32 %v3186_v63, %v3179_v38 }
 0x7c2   : > { %v4602_v9 = vmul.f32 0.70710677, %v4597_v33 }
 0x7c3   : > { %v4605_v43 = vmul.f32 0.70710677, %v4599_v8 }
 0x7c4   : > { %v3194_v53 = vmul.f32 %v4602_v9, %v4602_v9 }
 0x7c5   : > { %v3234_v19 = vmul.f32 %v4605_v43, %v4605_v43  ;;  %v3132_v6 = vpop.f32.mrf.mxu2 }
 0x7c6   : > { %v3195_v16 = vmin.f32 %v3194_v53, 16.0  ;;  %v3145_v26 = vpop.f32.mrf.mxu3 }
 0x7c7   : > { %v3235_v27 = vmin.f32 %v3234_v19, 16.0 }
 0x7c8   : > { %v3196_v55 = vmul.f32 2.1237322e-06, %v3195_v16  ;;  %v3207_v5 = vmul.f32 3.8918573e-05, %v3195_v16 }
 0x7c9   : > { %v3236_v12 = vmul.f32 2.1237322e-06, %v3235_v27  ;;  %v3247_v32 = vmul.f32 3.8918573e-05, %v3235_v27 }
 0x7ca   : > { %v3197_v23 = vadd.f32 0.00028619796, %v3196_v55  ;;  %v3208_v10 = vadd.f32 0.001143296, %v3207_v5 }
 0x7cb   : > { %v3237_v28 = vadd.f32 0.00028619796, %v3236_v12  ;;  %v3248_v57 = vadd.f32 0.001143296, %v3247_v32 }
 0x7cc   : > { %v3198_v44 = vmul.f32 %v3197_v23, %v3195_v16  ;;  %v3209_v31 = vmul.f32 %v3208_v10, %v3195_v16 }
 0x7cd   : > { %v3238_v7 = vmul.f32 %v3237_v28, %v3235_v27  ;;  %v3249_v41 = vmul.f32 %v3248_v57, %v3235_v27 }
 0x7ce   : > { %v3199_v17 = vadd.f32 0.0036580483, %v3198_v44  ;;  %v3210_v42 = vadd.f32 0.014752088, %v3209_v31 }
 0x7cf   : > { %v3250_v54 = vadd.f32 0.014752088, %v3249_v41  ;;  %v3239_v36 = vadd.f32 0.0036580483, %v3238_v7  ;;  %v3190_v7 = vmul.f32 0.5, %v4597_v33 }
 0x7d0   : > { %v3211_v48 = vmul.f32 %v3210_v42, %v3195_v16  ;;  %v3200_v62 = vmul.f32 %v3199_v17, %v3195_v16 }
 0x7d1   : > { %v3251_v61 = vmul.f32 %v3250_v54, %v3235_v27  ;;  %v3240_v40 = vmul.f32 %v3239_v36, %v3235_v27 }
 0x7d2   : > { %v3212_v3 = vadd.f32 0.112945676, %v3211_v48  ;;  %v3201_v37 = vadd.f32 0.05243302, %v3200_v62  ;;  %v3278_v62 = vld [vmem:[%s3981_s27] sm:$0x1] }
 0x7d3   : > { %v3252_v18 = vadd.f32 0.112945676, %v3251_v61  ;;  %v3241_v34 = vadd.f32 0.05243302, %v3240_v40 }
 0x7d4   : > { %v3213_v59 = vmul.f32 %v3212_v3, %v3195_v16  ;;  %v3202_v4 = vmul.f32 %v3201_v37, %v3195_v16  ;;  %v3285_v3 = vpop.permute.xlu2 %3284 }
 0x7d5   : > { %v3253_v25 = vmul.f32 %v3252_v18, %v3235_v27  ;;  %v3242_v46 = vmul.f32 %v3241_v34, %v3235_v27 }
 0x7d6   : > { %v3214_v35 = vadd.f32 0.4994258, %v3213_v59  ;;  %v3203_v39 = vadd.f32 0.18741608, %v3202_v4 }
 0x7d7   : > { %v3254_v52 = vadd.f32 0.4994258, %v3253_v25  ;;  %v3243_v51 = vadd.f32 0.18741608, %v3242_v46 }
 0x7d8   : > { %v3215_v15 = vmul.f32 %v3214_v35, %v3195_v16  ;;  %v3204_v58 = vmul.f32 %v3203_v39, %v3195_v16 }
 0x7d9   : > { %v3255_v45 = vmul.f32 %v3254_v52, %v3235_v27  ;;  %v3244_v1 = vmul.f32 %v3243_v51, %v3235_v27 }
 0x7da   : > { %v3216_v49 = vadd.f32 1.0, %v3215_v15  ;;  %v3205_v20 = vadd.f32 1.1283791, %v3204_v58 }
 0x7db   : > { %v3256_v13 = vadd.f32 1.0, %v3255_v45  ;;  %v3245_v38 = vadd.f32 1.1283791, %v3244_v1 }
 0x7dc   : > { %3745 = vrcp.f32 %v3216_v49  ;;  %v3228_v29 = vand.u32 2147483648, %v3216_v49  ;;  %v3226_v11 = vand.u32 2147483647, %v3216_v49  ;;  %vm3222_vm2 = vweird.f32 %v3216_v49 }
 0x7dd   : > { %3747 = vrcp.f32 %v3256_v13  ;;  %v3268_v63 = vand.u32 2147483648, %v3256_v13  ;;  %v3266_v19 = vand.u32 2147483647, %v3256_v13  ;;  %vm3262_vm14 = vweird.f32 %v3256_v13 }
 0x7de   : > { %v3229_v16 = vor.u32 1.1754944e-38, %v3228_v29  ;;  %v3206_v27 = vmul.f32 %v3205_v20, %v4602_v9  ;;  %vm3227_vm15 = vcmp.eq.f32.partialorder %v3226_v11, 8.507059e+37  ;;  %v3246_v32 = vmul.f32 %v3245_v38, %v4605_v43 }
 0x7df   : > { %v3269_v5 = vor.u32 1.1754944e-38, %v3268_v63  ;;  %vm3267_vm12 = vcmp.eq.f32.partialorder %v3266_v19, 8.507059e+37  ;;  %v3191_v9 = vmul.f32 0.5, %v4599_v8 }
 0x7e2   : > { %v3746_v24 = vpop.eup %3745 }
 0x7e3   : > { %v3748_v22 = vpop.eup %3747  ;;  %v3218_v50 = vmul.f32 %v3746_v24, %v3216_v49  ;;  %vm3223_vm10 = vweird.f32 %v3746_v24 }
 0x7e4   : > { %v3258_v14 = vmul.f32 %v3748_v22, %v3256_v13  ;;  %vm3263_vm11 = vweird.f32 %v3748_v22  ;;  %vm3224_vm13 = vmor %vm3222_vm2, %vm3223_vm10 }
 0x7e5   : > { %v3219_v0 = vsub.f32 1.0, %v3218_v50  ;;  %vm3264_vm1 = vmor %vm3262_vm14, %vm3263_vm11 }
 0x7e6   : > { %v3259_v30 = vsub.f32 1.0, %v3258_v14 }
 0x7e7   : > { %v3220_v60 = vmul.f32 %v3746_v24, %v3219_v0 }
 0x7e8   : > { %v3260_v53 = vmul.f32 %v3748_v22, %v3259_v30 }
 0x7e9   : > { %v3221_v6 = vadd.f32 %v3746_v24, %v3220_v60 }
 0x7ea   : > { %v3261_v26 = vadd.f32 %v3748_v22, %v3260_v53 }
 0x7eb   : > { %v3225_v55 = vsel %vm3224_vm13, %v3746_v24, %v3221_v6 }
 0x7ec   : > { %v3230_v12 = vsel %vm3227_vm15, %v3229_v16, %v3225_v55  ;;  %v3265_v23 = vsel %vm3264_vm1, %v3748_v22, %v3261_v26 }
 0x7ed   : > { %v3231_v10 = vmul.f32 %v3230_v12, %v3206_v27  ;;  %v3270_v28 = vsel %vm3267_vm12, %v3269_v5, %v3265_v23 }
 0x7ee   : > { %v3271_v57 = vmul.f32 %v3270_v28, %v3246_v32 }
 0x7ef   : > { %v3572_v44 = vclamps-f32 %v3231_v10, 1.0 }
 0x7f0   : > { %v3573_v31 = vclamps-f32 %v3271_v57, 1.0 }
 0x7f1   : > { %v3274_v41 = vadd.f32 1.0, %v3572_v44 }
 0x7f2   : > { %v3275_v17 = vadd.f32 1.0, %v3573_v31 }
 0x7f3   : > { %v3276_v42 = vmul.f32 %v3274_v41, %v3190_v7 }
 0x7f4   : > { %v3277_v54 = vmul.f32 %v3275_v17, %v3191_v9 }
 0x7f5   : > { %v3279_v48 = vpack.c.bf16 %v3276_v42, %v3276_v42 }
 0x7f6   : > { %v3280_v36 = vpack.c.bf16 %v3277_v54, %v3277_v54 }
 0x7f7   : > { %v3293_v43 = vsel %vm3291_vm0, %v3279_v48, 0 }
 0x7f8   : > { %3305 = vmatpush.bf16.msrb.mxu2 %v3293_v43  ;;  %v3296_v61 = vsel %vm3291_vm0, %v3280_v36, 0 }
 0x7f9   : > { %3318 = vmatpush.bf16.msrb.mxu3 %v3296_v61 }
 0x7fb   : > { %3574 = vmatmul.msk.bf16.vlgmr.msrb.gmra.mxu2 %vm3287_vm3, %v3278_v62 }
 0x7fc   : > { %3575 = vmatmul.msk.bf16.vlgmr.msrb.gmra.mxu3 %vm3287_vm3, %v3278_v62 }
 0x87e   : > { %v3307_v18 = vpop.f32.mrf.mxu2 }
 0x87f   : > { %v3308_v33 = vadd.f32 %v3307_v18, %v3285_v3  ;;  %v3320_v59 = vpop.f32.mrf.mxu3 }
 0x880   : > { %v3321_v40 = vadd.f32 %v3320_v59, %v3285_v3 }
 0x881   : > { %v3576_v8 = vmul.f32 -1.442695, %v3308_v33 }
 0x882   : > { %v3577_v25 = vmul.f32 -1.442695, %v3321_v40 }
 0x883   : > { %3749 = vpow2.f32 %v3576_v8 }
 0x884   : > { %3751 = vpow2.f32 %v3577_v25 }
 0x886   : > { %v3309_v37 = vpop.f32.mrf.mxu2 }
 0x887   : > { %v3322_v35 = vpop.f32.mrf.mxu3 }
 0x889   : > { %v3750_v52 = vpop.eup %3749 }
 0x88a   : > { %v3752_v15 = vpop.eup %3751  ;;  %v3330_v34 = vadd.f32 1.0, %v3750_v52 }
 0x88b   : > { %v3331_v45 = vadd.f32 1.0, %v3752_v15 }
 0x88c   : > { %3753 = vrcp.f32 %v3330_v34  ;;  %v3343_v51 = vand.u32 2147483648, %v3330_v34  ;;  %v3341_v22 = vand.u32 2147483647, %v3330_v34  ;;  %vm3337_vm6 = vweird.f32 %v3330_v34 }
 0x88d   : > { %3755 = vrcp.f32 %v3331_v45  ;;  %v3358_v50 = vand.u32 2147483648, %v3331_v45  ;;  %v3356_v14 = vand.u32 2147483647, %v3331_v45  ;;  %vm3352_vm8 = vweird.f32 %v3331_v45 }
 0x88e   : > { %v3344_v20 = vor.u32 1.1754944e-38, %v3343_v51  ;;  %vm3342_vm9 = vcmp.eq.f32.partialorder %v3341_v22, 8.507059e+37 }
 0x88f   : > { %v3359_v60 = vor.u32 1.1754944e-38, %v3358_v50  ;;  %vm3357_vm11 = vcmp.eq.f32.partialorder %v3356_v14, 8.507059e+37 }
 0x892   : > { %v3754_v4 = vpop.eup %3753 }
 0x893   : > { %v3756_v49 = vpop.eup %3755  ;;  %v3333_v13 = vmul.f32 %v3754_v4, %v3330_v34  ;;  %vm3338_vm4 = vweird.f32 %v3754_v4 }
 0x894   : > { %v3348_v46 = vmul.f32 %v3756_v49, %v3331_v45  ;;  %vm3353_vm5 = vweird.f32 %v3756_v49  ;;  %vm3339_vm7 = vmor %vm3337_vm6, %vm3338_vm4 }
 0x895   : > { %v3334_v39 = vsub.f32 1.0, %v3333_v13  ;;  %vm3354_vm10 = vmor %vm3352_vm8, %vm3353_vm5 }
 0x896   : > { %v3349_v24 = vsub.f32 1.0, %v3348_v46 }
 0x897   : > { %v3335_v58 = vmul.f32 %v3754_v4, %v3334_v39 }
 0x898   : > { %v3350_v1 = vmul.f32 %v3756_v49, %v3349_v24 }
 0x899   : > { %v3336_v0 = vadd.f32 %v3754_v4, %v3335_v58 }
 0x89a   : > { %v3351_v29 = vadd.f32 %v3756_v49, %v3350_v1 }
 0x89b   : > { %v3340_v30 = vsel %vm3339_vm7, %v3754_v4, %v3336_v0 }
 0x89c   : > { %v3345_v11 = vsel %vm3342_vm9, %v3344_v20, %v3340_v30  ;;  %v3355_v63 = vsel %vm3354_vm10, %v3756_v49, %v3351_v29 }
 0x89d   : > { %v3362_v38 = vperm.slane %v3345_v11, 0  ;;  %v3366_v53 = vperm.slane %v3345_v11, 1  ;;  %v3360_v19 = vsel %vm3357_vm11, %v3359_v60, %v3355_v63 }
 0x89e   : > { %v3363_v6 = vperm.slane %v3360_v19, 0  ;;  %v3367_v16 = vperm.slane %v3360_v19, 1 }
 0x89f   : > { %v3364_v26 = vmul.f32 %v3362_v38, %v4534_v2  ;;  %v3368_v27 = vmul.f32 %v3366_v53, %v4584_v47 }
 0x8a0   : > { %v3365_v55 = vmul.f32 %v3363_v6, %v4536_v21  ;;  %v3369_v5 = vmul.f32 %v3367_v16, %v4586_v56 }
 0x8a1   : > { %v3370_v12 = vadd.f32 %v3368_v27, %v3364_v26 }
 0x8a2   : > { %v3371_v32 = vadd.f32 %v3369_v5, %v3365_v55 }
 0x8a3   : > { %3372 = vst [vmem:[%s1042_s0] sm:$0xff] %v3370_v12 }
 0x8a4   : > { %3373 = vst [vmem:[%s1042_s0 + $0x8] sm:$0xff] %v3371_v32 }
 0x8a5 PF: > { %s79_s15 = sadd.s32 1, %s3767_s15  }
 0x8a6   : > { %p76_p4 = scmp.ge.s32.totalorder %s79_s15, 4  }
 0x8a8   :  { %78 = sbr.rel (!%p76_p4) target bundleno = 56 (0x38), region = 244 }

</bundles_post_ra>
